<compile_context>
chip_gen: v6e
topology: v6e:2x2x1
jax: 0.10.0
libtpu: 0.0.40
codegen_flags: <defaults>
</compile_context>

<pallas_src>
import functools

import jax
import jax.numpy as jnp
from jax.experimental import pallas as pl
from jax.experimental.pallas import tpu as pltpu


def _round_up(x, m):
    return (x + m - 1) // m * m


def _vmem_limit(footprint_bytes):
    """2x slack over the real tile footprint, clamped to [8 MiB, 56 MiB]."""
    return int(min(max(2 * footprint_bytes, 8 << 20), 56 << 20))


# ----------------------------------------------------------------------------
# Pallas kernels
# ----------------------------------------------------------------------------
def _matmul_fused_kernel(p_ref, w_ref, b_ref, o_ref, acc_ref, *,
                         negative_slope, instance_norm, eps):
    """Tiled GEMM: out = P @ W + b, with optional fused InstanceNorm + LeakyReLU.

    Grid = (M/tm, Cout/tn, K/tk), reduction (k) axis last.  Bias is folded into
    the accumulator init (k == 0); the epilogue (optional per-column IN over
    the tile rows, optional LeakyReLU, cast, store) runs only on the last k
    step.  When instance_norm=True the caller guarantees each (i, j) tile holds
    exactly one sample's full spatial extent (no row padding).
    """
    k_idx = pl.program_id(2)

    @pl.when(k_idx == 0)
    def _():
        acc_ref[...] = jnp.broadcast_to(
            b_ref[...].astype(jnp.float32), acc_ref.shape)

    acc_ref[...] += jnp.dot(p_ref[...], w_ref[...],
                            preferred_element_type=jnp.float32)

    @pl.when(k_idx == pl.num_programs(2) - 1)
    def _():
        acc = acc_ref[...]
        if instance_norm:
            mean = jnp.mean(acc, axis=0, keepdims=True)
            d = acc - mean
            var = jnp.mean(d * d, axis=0, keepdims=True)
            acc = d * jax.lax.rsqrt(var + eps)
        if negative_slope is not None:
            acc = jnp.where(acc >= 0, acc, negative_slope * acc)
        o_ref[...] = acc.astype(o_ref.dtype)


def _instnorm_lrelu_kernel(x_ref, o_ref, *, eps, negative_slope):
    """Fallback InstanceNorm (biased var, no affine) + LeakyReLU on (1, H*W, Ct).

    Single-pass E[x^2]-E[x]^2 variance; reduction over the H*W (sublane) axis,
    channels on lanes.
    """
    x = x_ref[...].astype(jnp.float32)
    mean = jnp.mean(x, axis=1, keepdims=True)
    ex2 = jnp.mean(x * x, axis=1, keepdims=True)
    var = ex2 - mean * mean
    y = (x - mean) * jax.lax.rsqrt(var + eps)
    o_ref[...] = jnp.where(y >= 0, y, negative_slope * y).astype(o_ref.dtype)


# ----------------------------------------------------------------------------
# Wrappers
# ----------------------------------------------------------------------------
def _im2col_nhwc(x, k, stride, pad):
    """x: (N, H, W, C) -> patches (N*Ho*Wo, k*k*C), K ordered (kh, kw, C)."""
    n, h, w, c = x.shape
    xp = jnp.pad(x, ((0, 0), (pad, pad), (pad, pad), (0, 0)))
    ho = (h + 2 * pad - k) // stride + 1
    wo = (w + 2 * pad - k) // stride + 1
    cols = []
    for kh in range(k):
        for kw in range(k):
            cols.append(xp[:, kh:kh + stride * ho:stride,
                           kw:kw + stride * wo:stride, :])
    patches = jnp.stack(cols, axis=3).reshape(n, ho, wo, k * k * c)
    return patches.reshape(n * ho * wo, k * k * c), ho, wo


def _pick_tile(dim, max_tile, align):
    """Pick (tile, padded_dim) so tile | padded_dim and tile obeys layout rules."""
    if dim >= max_tile and dim % max_tile == 0:
        return max_tile, dim
    if dim <= max_tile:
        padded = _round_up(dim, align)
        return padded, padded
    padded = _round_up(dim, max_tile)
    return max_tile, padded


def instance_norm_lrelu_pallas(x_nhwc, *, eps=1e-5, leaky_slope=0.2):
    """Standalone InstanceNorm2d (no affine) + LeakyReLU, NHWC input (fallback)."""
    n, h, w, c = x_nhwc.shape
    hw = h * w
    xr = x_nhwc.reshape(n, hw, c)
    ct = 128 if c % 128 == 0 else c     # channel tile on the lane axis
    itemsize = jnp.dtype(x_nhwc.dtype).itemsize
    # TODO(synk): for very large H*W, tile the spatial axis with a sum /
    # sum-of-squares accumulation instead of a single full-spatial block.
    footprint = 4 * hw * ct * itemsize  # double-buffered in + out

    kern = functools.partial(_instnorm_lrelu_kernel, eps=eps,
                             negative_slope=leaky_slope)
    out = pl.pallas_call(
        kern,
        out_shape=jax.ShapeDtypeStruct((n, hw, c), x_nhwc.dtype),
        grid=(n, c // ct),
        in_specs=[pl.BlockSpec((1, hw, ct), lambda i, j: (i, 0, j))],
        out_specs=pl.BlockSpec((1, hw, ct), lambda i, j: (i, 0, j)),
        compiler_params=pltpu.CompilerParams(
            dimension_semantics=("parallel", "parallel"),
            vmem_limit_bytes=_vmem_limit(footprint)),
    )(xr)
    return out.reshape(n, h, w, c)


def conv2d_pallas(x_nhwc, w, b, *, stride, pad, leaky_slope=None,
                  instance_norm=False, eps=1e-5, out_dtype=jnp.bfloat16,
                  tm_max=256, tk_max=4096, tn_max=256):
    """Conv2d (PyTorch semantics, NHWC activations) via im2col + tiled Pallas GEMM.

    w: (Cout, Cin, kh, kw) torch layout, b: (Cout,).  Returns NHWC output with
    (optional) InstanceNorm + LeakyReLU already applied.
    """
    n = x_nhwc.shape[0]
    cout, cin, k, _ = w.shape

    patches, ho, wo = _im2col_nhwc(x_nhwc, k, stride, pad)   # (M, K)
    m, kk = patches.shape
    per_sample = ho * wo

    # weights reordered to (kh, kw, Cin, Cout) to match the patch K-ordering
    wm = w.transpose(2, 3, 1, 0).reshape(k * k * cin, cout)

    # --- tile selection -------------------------------------------------
    tk, k_p = _pick_tile(kk, tk_max, 128)        # lane-aligned K tile (full K
                                                 # for the deep layers)
    cout_p = _round_up(cout, 128)                # always lane-dense output
    if cout_p <= tn_max:
        tn = cout_p
    elif cout_p % tn_max == 0:
        tn = tn_max
    else:
        tn = 128
    out_bytes = jnp.dtype(out_dtype).itemsize

    def gemm_footprint(tm):
        return (2 * (tm * tk + tk * tn) * 2        # double-buffered bf16 inputs
                + 2 * tm * tn * out_bytes          # double-buffered output
                + tm * tn * 4                      # fp32 accumulator scratch
                + 2 * 8 * tn * 4)                  # bias tile

    # Fuse IN into the GEMM epilogue when a sample's spatial extent forms a
    # clean 16-aligned M tile that fits comfortably in VMEM.
    fuse_in = (instance_norm
               and per_sample % 16 == 0
               and gemm_footprint(per_sample) <= (24 << 20))

    if fuse_in:
        tm, m_p = per_sample, m                  # M grid iterates samples
    else:
        tm, m_p = _pick_tile(m, tm_max, 16)      # 16-aligned (bf16 sublanes)

    epilogue_in = fuse_in
    epilogue_slope = leaky_slope if (fuse_in or not instance_norm) else None

    # --- operand padding (exact: zero pads, sliced off afterwards) -------
    patches = jnp.pad(patches, ((0, m_p - m), (0, k_p - kk)))
    if patches.dtype != jnp.bfloat16:
        patches = patches.astype(jnp.bfloat16)
    wm = jnp.pad(wm, ((0, k_p - kk), (0, cout_p - cout))).astype(jnp.bfloat16)
    bm = jnp.pad(b, (0, cout_p - cout)).reshape(1, cout_p).astype(jnp.float32)

    grid = (m_p // tm, cout_p // tn, k_p // tk)
    kern = functools.partial(_matmul_fused_kernel,
                             negative_slope=epilogue_slope,
                             instance_norm=epilogue_in, eps=eps)

    out = pl.pallas_call(
        kern,
        out_shape=jax.ShapeDtypeStruct((m_p, cout_p), out_dtype),
        grid=grid,
        in_specs=[
            pl.BlockSpec((tm, tk), lambda i, j, kq: (i, kq)),
            pl.BlockSpec((tk, tn), lambda i, j, kq: (kq, j)),
            pl.BlockSpec((1, tn), lambda i, j, kq: (0, j)),
        ],
        out_specs=pl.BlockSpec((tm, tn), lambda i, j, kq: (i, j)),
        scratch_shapes=[pltpu.VMEM((tm, tn), jnp.float32)],
        compiler_params=pltpu.CompilerParams(
            dimension_semantics=("parallel", "parallel", "arbitrary"),
            vmem_limit_bytes=_vmem_limit(gemm_footprint(tm))),
    )(patches, wm, bm)

    out = out[:m, :cout].reshape(n, ho, wo, cout)

    if instance_norm and not fuse_in:
        out = instance_norm_lrelu_pallas(out, eps=eps, leaky_slope=leaky_slope)
    return out


# ----------------------------------------------------------------------------
# Discriminator
# ----------------------------------------------------------------------------
_LAYER_CFG = [
    # (cin, cout, kernel, stride, pad)
    (3, 64, 4, 2, 1),
    (64, 128, 4, 2, 1),
    (128, 256, 4, 2, 1),
    (256, 1, 4, 1, 1),
]


def init_discriminator_params(key):
    """Deterministic init mimicking PyTorch Conv2d default (uniform ±1/sqrt(fan_in))."""
    params = []
    keys = jax.random.split(key, 2 * len(_LAYER_CFG))
    for idx, (cin, cout, k, _, _) in enumerate(_LAYER_CFG):
        fan_in = cin * k * k
        bound = 1.0 / (fan_in ** 0.5)
        w = jax.random.uniform(keys[2 * idx], (cout, cin, k, k),
                               jnp.float32, -bound, bound)
        b = jax.random.uniform(keys[2 * idx + 1], (cout,),
                               jnp.float32, -bound, bound)
        params.append((w, b))
    return params


def discriminator_forward(params, x_nchw):
    (w1, b1), (w2, b2), (w3, b3), (w4, b4) = params
    x = x_nchw.transpose(0, 2, 3, 1)                  # NCHW -> NHWC (once)
    # Conv(3->64, s2) + LeakyReLU(0.2)                   -> bf16 intermediate
    h = conv2d_pallas(x, w1, b1, stride=2, pad=1, leaky_slope=0.2,
                      out_dtype=jnp.bfloat16)
    # Conv(64->128, s2) + InstanceNorm + LeakyReLU(0.2) (IN fused in epilogue)
    h = conv2d_pallas(h, w2, b2, stride=2, pad=1, leaky_slope=0.2,
                      instance_norm=True, out_dtype=jnp.bfloat16)
    # Conv(128->256, s2) + InstanceNorm + LeakyReLU(0.2) (IN fused in epilogue)
    h = conv2d_pallas(h, w3, b3, stride=2, pad=1, leaky_slope=0.2,
                      instance_norm=True, out_dtype=jnp.bfloat16)
    # Conv(256->1, s1), fp32 output
    h = conv2d_pallas(h, w4, b4, stride=1, pad=1, leaky_slope=None,
                      out_dtype=jnp.float32)
    return h.transpose(0, 3, 1, 2)                    # NHWC -> NCHW (once)


if __name__ == "__main__":
    key = jax.random.PRNGKey(0)
    k_param, k_input = jax.random.split(key)
    params = init_discriminator_params(k_param)

    # Small input consistent with the module: NCHW, 3 channels.
    x = jax.random.normal(k_input, (2, 3, 32, 32), dtype=jnp.float32)

    fwd = jax.jit(discriminator_forward)
    out = fwd(params, x)
    out = jax.block_until_ready(out)

    # Expected patch-output shape for 32x32 input: (2, 1, 3, 3)
    assert out.shape == (2, 1, 3, 3), out.shape
    assert jnp.all(jnp.isfinite(out))
    print("KERNEL_OK")
</pallas_src>

<mosaic_0001>
module attributes {stable_mosaic.version = 11 : i64} {
  func.func @_matmul_fused_kernel(%arg0: i32, %arg1: i32, %arg2: i32, %arg3: memref<256x128xbf16, #tpu.memory_space<vmem>>, %arg4: memref<128x128xbf16, #tpu.memory_space<vmem>>, %arg5: memref<1x128xf32, #tpu.memory_space<vmem>>, %arg6: memref<256x128xbf16, #tpu.memory_space<vmem>>, %arg7: memref<256x128xf32, #tpu.memory_space<vmem>>) attributes {dimension_semantics = [#tpu.dimension_semantics<parallel>, #tpu.dimension_semantics<parallel>, #tpu.dimension_semantics<arbitrary>], iteration_bounds = array<i64: 2, 1, 1>, scalar_prefetch = 0 : i64, scratch_operands = 1 : i64, tpu.core_type = #tpu.core_type<tc>, window_params = [{transform_indices = @transform_0, window_bounds = array<i64: 256, 128>}, {transform_indices = @transform_1, window_bounds = array<i64: 128, 128>}, {transform_indices = @transform_2, window_bounds = array<i64: 1, 128>}, {transform_indices = @transform_3, window_bounds = array<i64: 256, 128>}]} {
    %c0_i32 = arith.constant 0 : i32
    %0 = arith.cmpi eq, %arg2, %c0_i32 : i32
    %1 = arith.extui %0 : i1 to i32
    %c0_i32_0 = arith.constant 0 : i32
    %2 = arith.cmpi ne, %1, %c0_i32_0 : i32
    scf.if %2 {
      %c0_10 = arith.constant 0 : index
      %c0_11 = arith.constant 0 : index
      %12 = vector.load %arg5[%c0_10, %c0_11] : memref<1x128xf32, #tpu.memory_space<vmem>>, vector<1x128xf32>
      %13 = vector.shape_cast %12 : vector<1x128xf32> to vector<1x128xf32>
      %14 = vector.broadcast %13 : vector<1x128xf32> to vector<256x128xf32>
      %c0_12 = arith.constant 0 : index
      %c0_13 = arith.constant 0 : index
      %15 = vector.load %arg7[%c0_12, %c0_13] : memref<256x128xf32, #tpu.memory_space<vmem>>, vector<256x128xf32>
      tpu.vector_store %arg7[%c0_12, %c0_13], %14 {strides = array<i32>} : memref<256x128xf32, #tpu.memory_space<vmem>>, vector<256x128xf32>,
    } else {
    }
    %c0 = arith.constant 0 : index
    %c0_1 = arith.constant 0 : index
    %3 = vector.load %arg7[%c0, %c0_1] : memref<256x128xf32, #tpu.memory_space<vmem>>, vector<256x128xf32>
    %c0_2 = arith.constant 0 : index
    %c0_3 = arith.constant 0 : index
    %4 = vector.load %arg3[%c0_2, %c0_3] : memref<256x128xbf16, #tpu.memory_space<vmem>>, vector<256x128xbf16>
    %c0_4 = arith.constant 0 : index
    %c0_5 = arith.constant 0 : index
    %5 = vector.load %arg4[%c0_4, %c0_5] : memref<128x128xbf16, #tpu.memory_space<vmem>>, vector<128x128xbf16>
    %cst = arith.constant dense<0.000000e+00> : vector<256x128xf32>
    %6 = tpu.matmul %4, %5, %cst {dimension_numbers = #tpu.dot_dimension_numbers<[1], [0], [0], [1], [0, 0, 1, 1], [], []>} : vector<256x128xbf16>, vector<128x128xbf16>, vector<256x128xf32> -> vector<256x128xf32>
    %7 = arith.addf %3, %6 : vector<256x128xf32>
    %c0_6 = arith.constant 0 : index
    %c0_7 = arith.constant 0 : index
    %8 = vector.load %arg7[%c0_6, %c0_7] : memref<256x128xf32, #tpu.memory_space<vmem>>, vector<256x128xf32>
    tpu.vector_store %arg7[%c0_6, %c0_7], %7 {strides = array<i32>} : memref<256x128xf32, #tpu.memory_space<vmem>>, vector<256x128xf32>,
    %c0_i32_8 = arith.constant 0 : i32
    %9 = arith.cmpi eq, %arg2, %c0_i32_8 : i32
    %10 = arith.extui %9 : i1 to i32
    %c0_i32_9 = arith.constant 0 : i32
    %11 = arith.cmpi ne, %10, %c0_i32_9 : i32
    scf.if %11 {
      %c0_10 = arith.constant 0 : index
      %c0_11 = arith.constant 0 : index
      %12 = vector.load %arg7[%c0_10, %c0_11] : memref<256x128xf32, #tpu.memory_space<vmem>>, vector<256x128xf32>
      %cst_12 = arith.constant 0.000000e+00 : f32
      %13 = vector.broadcast %cst_12 : f32 to vector<256x128xf32>
      %14 = arith.cmpf oge, %12, %13 : vector<256x128xf32>
      %cst_13 = arith.constant 2.000000e-01 : f32
      %15 = vector.broadcast %cst_13 : f32 to vector<256x128xf32>
      %16 = arith.mulf %15, %12 : vector<256x128xf32>
      %17 = arith.select %14, %12, %16 : vector<256x128xi1>, vector<256x128xf32>
      %18 = arith.truncf %17 : vector<256x128xf32> to vector<256x128xbf16>
      %c0_14 = arith.constant 0 : index
      %c0_15 = arith.constant 0 : index
      %19 = vector.load %arg6[%c0_14, %c0_15] : memref<256x128xbf16, #tpu.memory_space<vmem>>, vector<256x128xbf16>
      tpu.vector_store %arg6[%c0_14, %c0_15], %18 {strides = array<i32>} : memref<256x128xbf16, #tpu.memory_space<vmem>>, vector<256x128xbf16>,
    } else {
    }
    return
  }
  func.func @transform_0(%arg0: i32, %arg1: i32, %arg2: i32) -> (i32, i32) {
    %c0_i32 = arith.constant 0 : i32
    return %arg0, %arg2 : i32, i32
  }
  func.func @transform_1(%arg0: i32, %arg1: i32, %arg2: i32) -> (i32, i32) {
    %c0_i32 = arith.constant 0 : i32
    return %arg2, %arg1 : i32, i32
  }
  func.func @transform_2(%arg0: i32, %arg1: i32, %arg2: i32) -> (i32, i32) {
    %c0_i32 = arith.constant 0 : i32
    %c0_i32_0 = arith.constant 0 : i32
    return %c0_i32, %arg1 : i32, i32
  }
  func.func @transform_3(%arg0: i32, %arg1: i32, %arg2: i32) -> (i32, i32) {
    %c0_i32 = arith.constant 0 : i32
    return %arg0, %arg1 : i32, i32
  }
}

module attributes {stable_mosaic.version = 11 : i64} {
  func.func @_matmul_fused_kernel(%arg0: i32, %arg1: i32, %arg2: i32, %arg3: memref<64x1024xbf16, #tpu.memory_space<vmem>>, %arg4: memref<1024x128xbf16, #tpu.memory_space<vmem>>, %arg5: memref<1x128xf32, #tpu.memory_space<vmem>>, %arg6: memref<64x128xbf16, #tpu.memory_space<vmem>>, %arg7: memref<64x128xf32, #tpu.memory_space<vmem>>) attributes {dimension_semantics = [#tpu.dimension_semantics<parallel>, #tpu.dimension_semantics<parallel>, #tpu.dimension_semantics<arbitrary>], iteration_bounds = array<i64: 2, 1, 1>, scalar_prefetch = 0 : i64, scratch_operands = 1 : i64, tpu.core_type = #tpu.core_type<tc>, window_params = [{transform_indices = @transform_0, window_bounds = array<i64: 64, 1024>}, {transform_indices = @transform_1, window_bounds = array<i64: 1024, 128>}, {transform_indices = @transform_2, window_bounds = array<i64: 1, 128>}, {transform_indices = @transform_3, window_bounds = array<i64: 64, 128>}]} {
    %c0_i32 = arith.constant 0 : i32
    %0 = arith.cmpi eq, %arg2, %c0_i32 : i32
    %1 = arith.extui %0 : i1 to i32
    %c0_i32_0 = arith.constant 0 : i32
    %2 = arith.cmpi ne, %1, %c0_i32_0 : i32
    scf.if %2 {
      %c0_10 = arith.constant 0 : index
      %c0_11 = arith.constant 0 : index
      %12 = vector.load %arg5[%c0_10, %c0_11] : memref<1x128xf32, #tpu.memory_space<vmem>>, vector<1x128xf32>
      %13 = vector.shape_cast %12 : vector<1x128xf32> to vector<1x128xf32>
      %14 = vector.broadcast %13 : vector<1x128xf32> to vector<64x128xf32>
      %c0_12 = arith.constant 0 : index
      %c0_13 = arith.constant 0 : index
      %15 = vector.load %arg7[%c0_12, %c0_13] : memref<64x128xf32, #tpu.memory_space<vmem>>, vector<64x128xf32>
      tpu.vector_store %arg7[%c0_12, %c0_13], %14 {strides = array<i32>} : memref<64x128xf32, #tpu.memory_space<vmem>>, vector<64x128xf32>,
    } else {
    }
    %c0 = arith.constant 0 : index
    %c0_1 = arith.constant 0 : index
    %3 = vector.load %arg7[%c0, %c0_1] : memref<64x128xf32, #tpu.memory_space<vmem>>, vector<64x128xf32>
    %c0_2 = arith.constant 0 : index
    %c0_3 = arith.constant 0 : index
    %4 = vector.load %arg3[%c0_2, %c0_3] : memref<64x1024xbf16, #tpu.memory_space<vmem>>, vector<64x1024xbf16>
    %c0_4 = arith.constant 0 : index
    %c0_5 = arith.constant 0 : index
    %5 = vector.load %arg4[%c0_4, %c0_5] : memref<1024x128xbf16, #tpu.memory_space<vmem>>, vector<1024x128xbf16>
    %cst = arith.constant dense<0.000000e+00> : vector<64x128xf32>
    %6 = tpu.matmul %4, %5, %cst {dimension_numbers = #tpu.dot_dimension_numbers<[1], [0], [0], [1], [0, 0, 1, 1], [], []>} : vector<64x1024xbf16>, vector<1024x128xbf16>, vector<64x128xf32> -> vector<64x128xf32>
    %7 = arith.addf %3, %6 : vector<64x128xf32>
    %c0_6 = arith.constant 0 : index
    %c0_7 = arith.constant 0 : index
    %8 = vector.load %arg7[%c0_6, %c0_7] : memref<64x128xf32, #tpu.memory_space<vmem>>, vector<64x128xf32>
    tpu.vector_store %arg7[%c0_6, %c0_7], %7 {strides = array<i32>} : memref<64x128xf32, #tpu.memory_space<vmem>>, vector<64x128xf32>,
    %c0_i32_8 = arith.constant 0 : i32
    %9 = arith.cmpi eq, %arg2, %c0_i32_8 : i32
    %10 = arith.extui %9 : i1 to i32
    %c0_i32_9 = arith.constant 0 : i32
    %11 = arith.cmpi ne, %10, %c0_i32_9 : i32
    scf.if %11 {
      %c0_10 = arith.constant 0 : index
      %c0_11 = arith.constant 0 : index
      %12 = vector.load %arg7[%c0_10, %c0_11] : memref<64x128xf32, #tpu.memory_space<vmem>>, vector<64x128xf32>
      %cst_12 = arith.constant dense<0.000000e+00> : vector<128xf32>
      %13 = vector.multi_reduction <add>, %12, %cst_12 [0] : vector<64x128xf32> to vector<128xf32>
      %14 = vector.shape_cast %13 : vector<128xf32> to vector<1x128xf32>
      %cst_13 = arith.constant 6.400000e+01 : f32
      %15 = vector.broadcast %cst_13 : f32 to vector<1x128xf32>
      %16 = arith.divf %14, %15 : vector<1x128xf32>
      %17 = vector.broadcast %16 : vector<1x128xf32> to vector<64x128xf32>
      %18 = arith.subf %12, %17 : vector<64x128xf32>
      %19 = arith.mulf %18, %18 : vector<64x128xf32>
      %cst_14 = arith.constant dense<0.000000e+00> : vector<128xf32>
      %20 = vector.multi_reduction <add>, %19, %cst_14 [0] : vector<64x128xf32> to vector<128xf32>
      %21 = vector.shape_cast %20 : vector<128xf32> to vector<1x128xf32>
      %cst_15 = arith.constant 6.400000e+01 : f32
      %22 = vector.broadcast %cst_15 : f32 to vector<1x128xf32>
      %23 = arith.divf %21, %22 : vector<1x128xf32>
      %cst_16 = arith.constant 9.99999974E-6 : f32
      %24 = vector.broadcast %cst_16 : f32 to vector<1x128xf32>
      %25 = arith.addf %23, %24 : vector<1x128xf32>
      %26 = math.rsqrt %25 : vector<1x128xf32>
      %27 = vector.broadcast %26 : vector<1x128xf32> to vector<64x128xf32>
      %28 = arith.mulf %18, %27 : vector<64x128xf32>
      %cst_17 = arith.constant 0.000000e+00 : f32
      %29 = vector.broadcast %cst_17 : f32 to vector<64x128xf32>
      %30 = arith.cmpf oge, %28, %29 : vector<64x128xf32>
      %cst_18 = arith.constant 2.000000e-01 : f32
      %31 = vector.broadcast %cst_18 : f32 to vector<64x128xf32>
      %32 = arith.mulf %31, %28 : vector<64x128xf32>
      %33 = arith.select %30, %28, %32 : vector<64x128xi1>, vector<64x128xf32>
      %34 = arith.truncf %33 : vector<64x128xf32> to vector<64x128xbf16>
      %c0_19 = arith.constant 0 : index
      %c0_20 = arith.constant 0 : index
      %35 = vector.load %arg6[%c0_19, %c0_20] : memref<64x128xbf16, #tpu.memory_space<vmem>>, vector<64x128xbf16>
      tpu.vector_store %arg6[%c0_19, %c0_20], %34 {strides = array<i32>} : memref<64x128xbf16, #tpu.memory_space<vmem>>, vector<64x128xbf16>,
    } else {
    }
    return
  }
  func.func @transform_0(%arg0: i32, %arg1: i32, %arg2: i32) -> (i32, i32) {
    %c0_i32 = arith.constant 0 : i32
    return %arg0, %arg2 : i32, i32
  }
  func.func @transform_1(%arg0: i32, %arg1: i32, %arg2: i32) -> (i32, i32) {
    %c0_i32 = arith.constant 0 : i32
    return %arg2, %arg1 : i32, i32
  }
  func.func @transform_2(%arg0: i32, %arg1: i32, %arg2: i32) -> (i32, i32) {
    %c0_i32 = arith.constant 0 : i32
    %c0_i32_0 = arith.constant 0 : i32
    return %c0_i32, %arg1 : i32, i32
  }
  func.func @transform_3(%arg0: i32, %arg1: i32, %arg2: i32) -> (i32, i32) {
    %c0_i32 = arith.constant 0 : i32
    return %arg0, %arg1 : i32, i32
  }
}

module attributes {stable_mosaic.version = 11 : i64} {
  func.func @_matmul_fused_kernel(%arg0: i32, %arg1: i32, %arg2: i32, %arg3: memref<16x2048xbf16, #tpu.memory_space<vmem>>, %arg4: memref<2048x256xbf16, #tpu.memory_space<vmem>>, %arg5: memref<1x256xf32, #tpu.memory_space<vmem>>, %arg6: memref<16x256xbf16, #tpu.memory_space<vmem>>, %arg7: memref<16x256xf32, #tpu.memory_space<vmem>>) attributes {dimension_semantics = [#tpu.dimension_semantics<parallel>, #tpu.dimension_semantics<parallel>, #tpu.dimension_semantics<arbitrary>], iteration_bounds = array<i64: 2, 1, 1>, scalar_prefetch = 0 : i64, scratch_operands = 1 : i64, tpu.core_type = #tpu.core_type<tc>, window_params = [{transform_indices = @transform_0, window_bounds = array<i64: 16, 2048>}, {transform_indices = @transform_1, window_bounds = array<i64: 2048, 256>}, {transform_indices = @transform_2, window_bounds = array<i64: 1, 256>}, {transform_indices = @transform_3, window_bounds = array<i64: 16, 256>}]} {
    %c0_i32 = arith.constant 0 : i32
    %0 = arith.cmpi eq, %arg2, %c0_i32 : i32
    %1 = arith.extui %0 : i1 to i32
    %c0_i32_0 = arith.constant 0 : i32
    %2 = arith.cmpi ne, %1, %c0_i32_0 : i32
    scf.if %2 {
      %c0_10 = arith.constant 0 : index
      %c0_11 = arith.constant 0 : index
      %12 = vector.load %arg5[%c0_10, %c0_11] : memref<1x256xf32, #tpu.memory_space<vmem>>, vector<1x256xf32>
      %13 = vector.shape_cast %12 : vector<1x256xf32> to vector<1x256xf32>
      %14 = vector.broadcast %13 : vector<1x256xf32> to vector<16x256xf32>
      %c0_12 = arith.constant 0 : index
      %c0_13 = arith.constant 0 : index
      %15 = vector.load %arg7[%c0_12, %c0_13] : memref<16x256xf32, #tpu.memory_space<vmem>>, vector<16x256xf32>
      tpu.vector_store %arg7[%c0_12, %c0_13], %14 {strides = array<i32>} : memref<16x256xf32, #tpu.memory_space<vmem>>, vector<16x256xf32>,
    } else {
    }
    %c0 = arith.constant 0 : index
    %c0_1 = arith.constant 0 : index
    %3 = vector.load %arg7[%c0, %c0_1] : memref<16x256xf32, #tpu.memory_space<vmem>>, vector<16x256xf32>
    %c0_2 = arith.constant 0 : index
    %c0_3 = arith.constant 0 : index
    %4 = vector.load %arg3[%c0_2, %c0_3] : memref<16x2048xbf16, #tpu.memory_space<vmem>>, vector<16x2048xbf16>
    %c0_4 = arith.constant 0 : index
    %c0_5 = arith.constant 0 : index
    %5 = vector.load %arg4[%c0_4, %c0_5] : memref<2048x256xbf16, #tpu.memory_space<vmem>>, vector<2048x256xbf16>
    %cst = arith.constant dense<0.000000e+00> : vector<16x256xf32>
    %6 = tpu.matmul %4, %5, %cst {dimension_numbers = #tpu.dot_dimension_numbers<[1], [0], [0], [1], [0, 0, 1, 1], [], []>} : vector<16x2048xbf16>, vector<2048x256xbf16>, vector<16x256xf32> -> vector<16x256xf32>
    %7 = arith.addf %3, %6 : vector<16x256xf32>
    %c0_6 = arith.constant 0 : index
    %c0_7 = arith.constant 0 : index
    %8 = vector.load %arg7[%c0_6, %c0_7] : memref<16x256xf32, #tpu.memory_space<vmem>>, vector<16x256xf32>
    tpu.vector_store %arg7[%c0_6, %c0_7], %7 {strides = array<i32>} : memref<16x256xf32, #tpu.memory_space<vmem>>, vector<16x256xf32>,
    %c0_i32_8 = arith.constant 0 : i32
    %9 = arith.cmpi eq, %arg2, %c0_i32_8 : i32
    %10 = arith.extui %9 : i1 to i32
    %c0_i32_9 = arith.constant 0 : i32
    %11 = arith.cmpi ne, %10, %c0_i32_9 : i32
    scf.if %11 {
      %c0_10 = arith.constant 0 : index
      %c0_11 = arith.constant 0 : index
      %12 = vector.load %arg7[%c0_10, %c0_11] : memref<16x256xf32, #tpu.memory_space<vmem>>, vector<16x256xf32>
      %cst_12 = arith.constant dense<0.000000e+00> : vector<256xf32>
      %13 = vector.multi_reduction <add>, %12, %cst_12 [0] : vector<16x256xf32> to vector<256xf32>
      %14 = vector.shape_cast %13 : vector<256xf32> to vector<1x256xf32>
      %cst_13 = arith.constant 1.600000e+01 : f32
      %15 = vector.broadcast %cst_13 : f32 to vector<1x256xf32>
      %16 = arith.divf %14, %15 : vector<1x256xf32>
      %17 = vector.broadcast %16 : vector<1x256xf32> to vector<16x256xf32>
      %18 = arith.subf %12, %17 : vector<16x256xf32>
      %19 = arith.mulf %18, %18 : vector<16x256xf32>
      %cst_14 = arith.constant dense<0.000000e+00> : vector<256xf32>
      %20 = vector.multi_reduction <add>, %19, %cst_14 [0] : vector<16x256xf32> to vector<256xf32>
      %21 = vector.shape_cast %20 : vector<256xf32> to vector<1x256xf32>
      %cst_15 = arith.constant 1.600000e+01 : f32
      %22 = vector.broadcast %cst_15 : f32 to vector<1x256xf32>
      %23 = arith.divf %21, %22 : vector<1x256xf32>
      %cst_16 = arith.constant 9.99999974E-6 : f32
      %24 = vector.broadcast %cst_16 : f32 to vector<1x256xf32>
      %25 = arith.addf %23, %24 : vector<1x256xf32>
      %26 = math.rsqrt %25 : vector<1x256xf32>
      %27 = vector.broadcast %26 : vector<1x256xf32> to vector<16x256xf32>
      %28 = arith.mulf %18, %27 : vector<16x256xf32>
      %cst_17 = arith.constant 0.000000e+00 : f32
      %29 = vector.broadcast %cst_17 : f32 to vector<16x256xf32>
      %30 = arith.cmpf oge, %28, %29 : vector<16x256xf32>
      %cst_18 = arith.constant 2.000000e-01 : f32
      %31 = vector.broadcast %cst_18 : f32 to vector<16x256xf32>
      %32 = arith.mulf %31, %28 : vector<16x256xf32>
      %33 = arith.select %30, %28, %32 : vector<16x256xi1>, vector<16x256xf32>
      %34 = arith.truncf %33 : vector<16x256xf32> to vector<16x256xbf16>
      %c0_19 = arith.constant 0 : index
      %c0_20 = arith.constant 0 : index
      %35 = vector.load %arg6[%c0_19, %c0_20] : memref<16x256xbf16, #tpu.memory_space<vmem>>, vector<16x256xbf16>
      tpu.vector_store %arg6[%c0_19, %c0_20], %34 {strides = array<i32>} : memref<16x256xbf16, #tpu.memory_space<vmem>>, vector<16x256xbf16>,
    } else {
    }
    return
  }
  func.func @transform_0(%arg0: i32, %arg1: i32, %arg2: i32) -> (i32, i32) {
    %c0_i32 = arith.constant 0 : i32
    return %arg0, %arg2 : i32, i32
  }
  func.func @transform_1(%arg0: i32, %arg1: i32, %arg2: i32) -> (i32, i32) {
    %c0_i32 = arith.constant 0 : i32
    return %arg2, %arg1 : i32, i32
  }
  func.func @transform_2(%arg0: i32, %arg1: i32, %arg2: i32) -> (i32, i32) {
    %c0_i32 = arith.constant 0 : i32
    %c0_i32_0 = arith.constant 0 : i32
    return %c0_i32, %arg1 : i32, i32
  }
  func.func @transform_3(%arg0: i32, %arg1: i32, %arg2: i32) -> (i32, i32) {
    %c0_i32 = arith.constant 0 : i32
    return %arg0, %arg1 : i32, i32
  }
}

module attributes {stable_mosaic.version = 11 : i64} {
  func.func @_matmul_fused_kernel(%arg0: i32, %arg1: i32, %arg2: i32, %arg3: memref<32x4096xbf16, #tpu.memory_space<vmem>>, %arg4: memref<4096x128xbf16, #tpu.memory_space<vmem>>, %arg5: memref<1x128xf32, #tpu.memory_space<vmem>>, %arg6: memref<32x128xf32, #tpu.memory_space<vmem>>, %arg7: memref<32x128xf32, #tpu.memory_space<vmem>>) attributes {dimension_semantics = [#tpu.dimension_semantics<parallel>, #tpu.dimension_semantics<parallel>, #tpu.dimension_semantics<arbitrary>], iteration_bounds = array<i64: 1, 1, 1>, scalar_prefetch = 0 : i64, scratch_operands = 1 : i64, tpu.core_type = #tpu.core_type<tc>, window_params = [{transform_indices = @transform_0, window_bounds = array<i64: 32, 4096>}, {transform_indices = @transform_1, window_bounds = array<i64: 4096, 128>}, {transform_indices = @transform_2, window_bounds = array<i64: 1, 128>}, {transform_indices = @transform_3, window_bounds = array<i64: 32, 128>}]} {
    %c0_i32 = arith.constant 0 : i32
    %0 = arith.cmpi eq, %arg2, %c0_i32 : i32
    %1 = arith.extui %0 : i1 to i32
    %c0_i32_0 = arith.constant 0 : i32
    %2 = arith.cmpi ne, %1, %c0_i32_0 : i32
    scf.if %2 {
      %c0_10 = arith.constant 0 : index
      %c0_11 = arith.constant 0 : index
      %12 = vector.load %arg5[%c0_10, %c0_11] : memref<1x128xf32, #tpu.memory_space<vmem>>, vector<1x128xf32>
      %13 = vector.shape_cast %12 : vector<1x128xf32> to vector<1x128xf32>
      %14 = vector.broadcast %13 : vector<1x128xf32> to vector<32x128xf32>
      %c0_12 = arith.constant 0 : index
      %c0_13 = arith.constant 0 : index
      %15 = vector.load %arg7[%c0_12, %c0_13] : memref<32x128xf32, #tpu.memory_space<vmem>>, vector<32x128xf32>
      tpu.vector_store %arg7[%c0_12, %c0_13], %14 {strides = array<i32>} : memref<32x128xf32, #tpu.memory_space<vmem>>, vector<32x128xf32>,
    } else {
    }
    %c0 = arith.constant 0 : index
    %c0_1 = arith.constant 0 : index
    %3 = vector.load %arg7[%c0, %c0_1] : memref<32x128xf32, #tpu.memory_space<vmem>>, vector<32x128xf32>
    %c0_2 = arith.constant 0 : index
    %c0_3 = arith.constant 0 : index
    %4 = vector.load %arg3[%c0_2, %c0_3] : memref<32x4096xbf16, #tpu.memory_space<vmem>>, vector<32x4096xbf16>
    %c0_4 = arith.constant 0 : index
    %c0_5 = arith.constant 0 : index
    %5 = vector.load %arg4[%c0_4, %c0_5] : memref<4096x128xbf16, #tpu.memory_space<vmem>>, vector<4096x128xbf16>
    %cst = arith.constant dense<0.000000e+00> : vector<32x128xf32>
    %6 = tpu.matmul %4, %5, %cst {dimension_numbers = #tpu.dot_dimension_numbers<[1], [0], [0], [1], [0, 0, 1, 1], [], []>} : vector<32x4096xbf16>, vector<4096x128xbf16>, vector<32x128xf32> -> vector<32x128xf32>
    %7 = arith.addf %3, %6 : vector<32x128xf32>
    %c0_6 = arith.constant 0 : index
    %c0_7 = arith.constant 0 : index
    %8 = vector.load %arg7[%c0_6, %c0_7] : memref<32x128xf32, #tpu.memory_space<vmem>>, vector<32x128xf32>
    tpu.vector_store %arg7[%c0_6, %c0_7], %7 {strides = array<i32>} : memref<32x128xf32, #tpu.memory_space<vmem>>, vector<32x128xf32>,
    %c0_i32_8 = arith.constant 0 : i32
    %9 = arith.cmpi eq, %arg2, %c0_i32_8 : i32
    %10 = arith.extui %9 : i1 to i32
    %c0_i32_9 = arith.constant 0 : i32
    %11 = arith.cmpi ne, %10, %c0_i32_9 : i32
    scf.if %11 {
      %c0_10 = arith.constant 0 : index
      %c0_11 = arith.constant 0 : index
      %12 = vector.load %arg7[%c0_10, %c0_11] : memref<32x128xf32, #tpu.memory_space<vmem>>, vector<32x128xf32>
      %c0_12 = arith.constant 0 : index
      %c0_13 = arith.constant 0 : index
      %13 = vector.load %arg6[%c0_12, %c0_13] : memref<32x128xf32, #tpu.memory_space<vmem>>, vector<32x128xf32>
      tpu.vector_store %arg6[%c0_12, %c0_13], %12 {strides = array<i32>} : memref<32x128xf32, #tpu.memory_space<vmem>>, vector<32x128xf32>,
    } else {
    }
    return
  }
  func.func @transform_0(%arg0: i32, %arg1: i32, %arg2: i32) -> (i32, i32) {
    %c0_i32 = arith.constant 0 : i32
    return %arg0, %arg2 : i32, i32
  }
  func.func @transform_1(%arg0: i32, %arg1: i32, %arg2: i32) -> (i32, i32) {
    %c0_i32 = arith.constant 0 : i32
    return %arg2, %arg1 : i32, i32
  }
  func.func @transform_2(%arg0: i32, %arg1: i32, %arg2: i32) -> (i32, i32) {
    %c0_i32 = arith.constant 0 : i32
    %c0_i32_0 = arith.constant 0 : i32
    return %c0_i32, %arg1 : i32, i32
  }
  func.func @transform_3(%arg0: i32, %arg1: i32, %arg2: i32) -> (i32, i32) {
    %c0_i32 = arith.constant 0 : i32
    return %arg0, %arg1 : i32, i32
  }
}

</mosaic_0001>

<bundles_post_ra>
// kernel: discriminator_forward.4
= control target key start
LH: loop header
LB: loop body
LE: loop exit
PB: predicated region body
PF: predicated region fallthrough
CT: control target
= control target key end

     0   :  { %s1531_s12 = smov 0   ;;  %s1533_s13 = smov 0   ;;  %s1672_s0 = inlined_call_operand.vmem [shape: bf16[512,128], index: 0, kind: input, shape index: {}]   ;;  %s1673_s1 = inlined_call_operand.vmem [shape: bf16[128,128], index: 1, kind: input, shape index: {}]   ;;  %s1674_s2 = inlined_call_operand.vmem [shape: f32[1,128], index: 2, kind: input, shape index: {}]   ;;  %s1675_s3 = inlined_call_operand.vmem [shape: bf16[512,128], index: 3, kind: output, shape index: {}]  }
   0x1   :  { %s1535_s14 = smov 0  }
   0x2 LB: > { %s32_s15 = sadd.s32 1, %s1505_s13  ;;  %p1160_p0 = scmp.ge.s32.totalorder %s1509_s14, 1  ;;  %s1509_s14 = sphi %s1535_s14, %s13_s14   ;;  %s1505_s13 = sphi %s1533_s13, %s1677_s13   ;;  %s1501_s12 = sphi %s1531_s12, %s1676_s12  }
   0x3   : > { %p34_p1 = scmp.ge.s32.totalorder %s32_s15, 2  ;;  %p188_p2 = scmp.lt.s32.totalorder %s1509_s14, 3 }
   0x5   : > { %s1679_s15 = smov (%p34_p1, %s32_s15), 0  ;;  %p189_p3 = pnand %p1160_p0, %p188_p2 }
   0x6   : > { %s1161_s18 = sshll.u32 (!%p189_p3), %s1501_s12, 5 }
   0x7   : > { %192 = sbr.rel (%p189_p3) target bundleno = 280 (0x118), region = 32  ;;  %p230_p4 = scmp.lt.s32.totalorder (!%p189_p3), %s1161_s18, 63 }
   0xc   : > { %v1463_v0 = vld [vmem:[%s1673_s1 + $0x38] sm:$0xff]   ;;  %v1464_v1 = vld [vmem:[%s1673_s1 + $0x30] sm:$0xff]   ;;  %s1681_s18 = smov (!%p230_p4, %s1161_s18), 63  ;;  %v1465_v2 = vld [vmem:[%s1673_s1 + $0x28] sm:$0xff]  }
   0xd   : > { %1375 = vmatprep.subr.bf16.mxu0 %v1463_v0  ;;  %1423 = vmatprep.subr.bf16.mxu1 %v1463_v0  ;;  %s1162_s23 = sshll.u32 %s1681_s18, 2  ;;  %v1466_v3 = vld [vmem:[%s1673_s1 + $0x20] sm:$0xff]   ;;  %v1467_v6 = vld [vmem:[%s1673_s1 + $0x18] sm:$0xff]   ;;  %v1468_v7 = vld [vmem:[%s1673_s1 + $0x10] sm:$0xff]  }
   0xe   : > { %1376 = vmatpush3.bf16.msra.mxu0 %v1463_v0  ;;  %1431 = vmatpush3.bf16.msra.mxu1 %v1463_v0  ;;  %s1566_s26 = scalar_lea.vmem %s1672_s0, %s1162_s23  ;;  %v1469_v8 = vld [vmem:[%s1673_s1 + $0x8] sm:$0xff]   ;;  %v1470_v9 = vld [vmem:[%s1673_s1] sm:$0xff]   ;;  %s1617_s17 = scalar_lea.vmem %s1675_s3, %s1162_s23 }
   0xf   : > { %1377 = vmatprep.subr.bf16.mxu0 %v1464_v1  ;;  %1424 = vmatprep.subr.bf16.mxu1 %v1464_v1  ;;  %v1471_v4 = vld [vmem:[%s1566_s26] sm:$0xff]   ;;  %v1473_v10 = vld [vmem:[%s1566_s26 + $0x8] sm:$0xff]   ;;  %v1475_v12 = vld [vmem:[%s1566_s26 + $0x10] sm:$0xff]  }
  0x10   : > { %v1472_v5 = vld [vmem:[%s1566_s26 + $0x40] sm:$0xff]   ;;  %1391 = vmatprep.mubr.bf16.mxu0 %v1471_v4  ;;  %v1474_v11 = vld [vmem:[%s1566_s26 + $0x48] sm:$0xff]   ;;  %v1476_v13 = vld [vmem:[%s1566_s26 + $0x50] sm:$0xff]  }
  0x11   : > { %1407 = vmatprep.mubr.bf16.mxu1 %v1472_v5  ;;  %v1477_v14 = vld [vmem:[%s1566_s26 + $0x18] sm:$0xff]   ;;  %v1479_v16 = vld [vmem:[%s1566_s26 + $0x20] sm:$0xff]   ;;  %v1481_v18 = vld [vmem:[%s1566_s26 + $0x28] sm:$0xff]  }
  0x12   : > { %1378 = vmatpush3.bf16.msra.mxu0 %v1464_v1  ;;  %1432 = vmatpush3.bf16.msra.mxu1 %v1464_v1  ;;  %v1478_v15 = vld [vmem:[%s1566_s26 + $0x58] sm:$0xff]   ;;  %v1480_v17 = vld [vmem:[%s1566_s26 + $0x60] sm:$0xff]   ;;  %v1482_v19 = vld [vmem:[%s1566_s26 + $0x68] sm:$0xff]  }
  0x13   : > { %1379 = vmatprep.subr.bf16.mxu0 %v1465_v2  ;;  %1425 = vmatprep.subr.bf16.mxu1 %v1465_v2  ;;  %v1483_v20 = vld [vmem:[%s1566_s26 + $0x30] sm:$0xff]   ;;  %v1485_v22 = vld [vmem:[%s1566_s26 + $0x38] sm:$0xff]   ;;  %v1602_v24 = vld [vmem:[%s1674_s2] ss:$0 sm:$0xff] }
  0x14   : > { %v1484_v21 = vld [vmem:[%s1566_s26 + $0x70] sm:$0xff]   ;;  %v1486_v23 = vld [vmem:[%s1566_s26 + $0x78] sm:$0xff]  }
  0x16   : > { %1380 = vmatpush3.bf16.msra.mxu0 %v1465_v2  ;;  %1433 = vmatpush3.bf16.msra.mxu1 %v1465_v2 }
  0x17   : > { %1381 = vmatprep.subr.bf16.mxu0 %v1466_v3  ;;  %1426 = vmatprep.subr.bf16.mxu1 %v1466_v3 }
  0x1a   : > { %1382 = vmatpush3.bf16.msra.mxu0 %v1466_v3  ;;  %1434 = vmatpush3.bf16.msra.mxu1 %v1466_v3 }
  0x1b   : > { %1383 = vmatprep.subr.bf16.mxu0 %v1467_v6  ;;  %1427 = vmatprep.subr.bf16.mxu1 %v1467_v6 }
  0x1e   : > { %1384 = vmatpush3.bf16.msra.mxu0 %v1467_v6  ;;  %1435 = vmatpush3.bf16.msra.mxu1 %v1467_v6 }
  0x1f   : > { %1385 = vmatprep.subr.bf16.mxu0 %v1468_v7  ;;  %1428 = vmatprep.subr.bf16.mxu1 %v1468_v7 }
  0x22   : > { %1386 = vmatpush3.bf16.msra.mxu0 %v1468_v7  ;;  %1436 = vmatpush3.bf16.msra.mxu1 %v1468_v7 }
  0x23   : > { %1387 = vmatprep.subr.bf16.mxu0 %v1469_v8  ;;  %1429 = vmatprep.subr.bf16.mxu1 %v1469_v8 }
  0x26   : > { %1388 = vmatpush3.bf16.msra.mxu0 %v1469_v8  ;;  %1437 = vmatpush3.bf16.msra.mxu1 %v1469_v8 }
  0x27   : > { %1389 = vmatprep.subr.bf16.mxu0 %v1470_v9  ;;  %1430 = vmatprep.subr.bf16.mxu1 %v1470_v9 }
  0x2a   : > { %1390 = vmatpush3.bf16.msra.mxu0 %v1470_v9  ;;  %1438 = vmatpush3.bf16.msra.mxu1 %v1470_v9 }
  0x2d   : > { %1392 = vmatmul.mubr.bf16.vlgmr.msra.gmra.mxu0 %v1473_v10  ;;  %1408 = vmatmul.mubr.bf16.vlgmr.msra.gmra.mxu1 %v1474_v11 }
  0x2e   : > { %1395 = vmatprep.mubr.bf16.mxu0 %v1475_v12  ;;  %1411 = vmatprep.mubr.bf16.mxu1 %v1476_v13 }
  0x35   : > { %1396 = vmatmul.mubr.bf16.gmra.mxu0 %v1477_v14  ;;  %1412 = vmatmul.mubr.bf16.gmra.mxu1 %v1478_v15 }
  0x36   : > { %1399 = vmatprep.mubr.bf16.mxu0 %v1479_v16  ;;  %1415 = vmatprep.mubr.bf16.mxu1 %v1480_v17 }
  0x3d   : > { %1400 = vmatmul.mubr.bf16.gmra.mxu0 %v1481_v18  ;;  %1416 = vmatmul.mubr.bf16.gmra.mxu1 %v1482_v19 }
  0x3e   : > { %1403 = vmatprep.mubr.bf16.mxu0 %v1483_v20  ;;  %1419 = vmatprep.mubr.bf16.mxu1 %v1484_v21 }
  0x45   : > { %1404 = vmatmul.mubr.bf16.gmra.mxu0 %v1485_v22  ;;  %1420 = vmatmul.mubr.bf16.gmra.mxu1 %v1486_v23 }
  0xed   : > { %v1393_v25 = vpop.f32.mrf.mxu0  ;;  %v1409_v26 = vpop.f32.mrf.mxu1 }
  0xee   : > { %v690_v27 = vadd.f32 %v1393_v25, %v1602_v24  ;;  %v706_v28 = vadd.f32 %v1409_v26, %v1602_v24 }
  0xef   : > { %v561_v29 = vpop.f32.mrf.mxu0  ;;  %v625_v30 = vpop.f32.mrf.mxu1 }
  0xf0   : > { %vm789_vm0 = vcmp.ge.f32.partialorder %v690_v27, 0.0  ;;  %v821_v31 = vmul.f32 0.2, %v690_v27  ;;  %vm805_vm1 = vcmp.ge.f32.partialorder %v706_v28, 0.0  ;;  %v837_v32 = vmul.f32 0.2, %v706_v28 }
  0xf1   : > { %v688_v33 = vadd.f32 %v1602_v24, %v561_v29  ;;  %v704_v34 = vadd.f32 %v1602_v24, %v625_v30  ;;  %v1394_v35 = vpop.f32.mrf.mxu0  ;;  %v1410_v36 = vpop.f32.mrf.mxu1 }
  0xf2   : > { %v853_v37 = vsel %vm789_vm0, %v690_v27, %v821_v31  ;;  %v691_v38 = vadd.f32 %v1394_v35, %v1602_v24  ;;  %v707_v39 = vadd.f32 %v1410_v36, %v1602_v24  ;;  %v869_v40 = vsel %vm805_vm1, %v706_v28, %v837_v32 }
  0xf3   : > { %vm787_vm2 = vcmp.ge.f32.partialorder %v688_v33, 0.0  ;;  %v819_v41 = vmul.f32 0.2, %v688_v33  ;;  %vm803_vm3 = vcmp.ge.f32.partialorder %v704_v34, 0.0  ;;  %v564_v42 = vpop.f32.mrf.mxu0  ;;  %v628_v43 = vpop.f32.mrf.mxu1  ;;  %v835_v47 = vmul.f32 0.2, %v704_v34 }
  0xf4   : > { %vm790_vm4 = vcmp.ge.f32.partialorder %v691_v38, 0.0  ;;  %v822_v44 = vmul.f32 0.2, %v691_v38  ;;  %vm806_vm5 = vcmp.ge.f32.partialorder %v707_v39, 0.0  ;;  %v838_v45 = vmul.f32 0.2, %v707_v39 }
  0xf5   : > { %v851_v46 = vsel %vm787_vm2, %v688_v33, %v819_v41  ;;  %v689_v48 = vadd.f32 %v1602_v24, %v564_v42  ;;  %v705_v49 = vadd.f32 %v1602_v24, %v628_v43  ;;  %v1397_v50 = vpop.f32.mrf.mxu0  ;;  %v1413_v51 = vpop.f32.mrf.mxu1  ;;  %v867_v63 = vsel %vm803_vm3, %v704_v34, %v835_v47 }
  0xf6   : > { %v854_v52 = vsel %vm790_vm4, %v691_v38, %v822_v44  ;;  %v870_v53 = vsel %vm806_vm5, %v707_v39, %v838_v45  ;;  %v694_v54 = vadd.f32 %v1397_v50, %v1602_v24  ;;  %v710_v55 = vadd.f32 %v1413_v51, %v1602_v24 }
  0xf7   : > { %v1264_v56 = vpack.c.bf16 %v854_v52, %v853_v37  ;;  %v1304_v57 = vpack.c.bf16 %v870_v53, %v869_v40  ;;  %vm788_vm6 = vcmp.ge.f32.partialorder %v689_v48, 0.0  ;;  %v820_v58 = vmul.f32 0.2, %v689_v48  ;;  %v577_v59 = vpop.f32.mrf.mxu0  ;;  %v641_v60 = vpop.f32.mrf.mxu1 }
  0xf8   : > { %vm804_vm7 = vcmp.ge.f32.partialorder %v705_v49, 0.0  ;;  %v836_v61 = vmul.f32 0.2, %v705_v49  ;;  %vm793_vm8 = vcmp.ge.f32.partialorder %v694_v54, 0.0  ;;  %v825_v62 = vmul.f32 0.2, %v694_v54 }
  0xf9   : > { %1336 = vst [vmem:[%s1617_s17 + $0x8] sm:$0xff] %v1264_v56   ;;  %1344 = vst [vmem:[%s1617_s17 + $0x48] sm:$0xff] %v1304_v57   ;;  %v852_v0 = vsel %vm788_vm6, %v689_v48, %v820_v58  ;;  %v841_v1 = vmul.f32 0.2, %v710_v55  ;;  %v692_v2 = vadd.f32 %v1602_v24, %v577_v59  ;;  %v1398_v3 = vpop.f32.mrf.mxu0  ;;  %v1414_v4 = vpop.f32.mrf.mxu1  ;;  %vm809_vm9 = vcmp.ge.f32.partialorder %v710_v55, 0.0 }
  0xfa   : > { %v1259_v5 = vpack.c.bf16 %v852_v0, %v851_v46  ;;  %v868_v6 = vsel %vm804_vm7, %v705_v49, %v836_v61  ;;  %v708_v7 = vadd.f32 %v1602_v24, %v641_v60  ;;  %v857_v9 = vsel %vm793_vm8, %v694_v54, %v825_v62 }
  0xfb   : > { %v1299_v8 = vpack.c.bf16 %v868_v6, %v867_v63  ;;  %vm791_vm10 = vcmp.ge.f32.partialorder %v692_v2, 0.0  ;;  %v823_v10 = vmul.f32 0.2, %v692_v2  ;;  %v580_v11 = vpop.f32.mrf.mxu0  ;;  %v644_v12 = vpop.f32.mrf.mxu1  ;;  %v695_v14 = vadd.f32 %v1398_v3, %v1602_v24 }
  0xfc   : > { %1260 = vst [vmem:[%s1617_s17] sm:$0xff] %v1259_v5   ;;  %vm807_vm11 = vcmp.ge.f32.partialorder %v708_v7, 0.0  ;;  %v839_v13 = vmul.f32 0.2, %v708_v7  ;;  %v711_v15 = vadd.f32 %v1414_v4, %v1602_v24  ;;  %v873_v16 = vsel %vm809_vm9, %v710_v55, %v841_v1 }
  0xfd   : > { %1343 = vst [vmem:[%s1617_s17 + $0x40] sm:$0xff] %v1299_v8   ;;  %v855_v17 = vsel %vm791_vm10, %v692_v2, %v823_v10  ;;  %v693_v18 = vadd.f32 %v1602_v24, %v580_v11  ;;  %v709_v19 = vadd.f32 %v1602_v24, %v644_v12  ;;  %v1401_v20 = vpop.f32.mrf.mxu0  ;;  %v1417_v21 = vpop.f32.mrf.mxu1  ;;  %vm794_vm12 = vcmp.ge.f32.partialorder %v695_v14, 0.0 }
  0xfe   : > { %v871_v22 = vsel %vm807_vm11, %v708_v7, %v839_v13  ;;  %v826_v23 = vmul.f32 0.2, %v695_v14  ;;  %vm810_vm13 = vcmp.ge.f32.partialorder %v711_v15, 0.0  ;;  %v842_v25 = vmul.f32 0.2, %v711_v15 }
  0xff   : > { %vm792_vm14 = vcmp.ge.f32.partialorder %v693_v18, 0.0  ;;  %v824_v26 = vmul.f32 0.2, %v693_v18  ;;  %vm808_vm15 = vcmp.ge.f32.partialorder %v709_v19, 0.0  ;;  %v593_v27 = vpop.f32.mrf.mxu0  ;;  %v657_v28 = vpop.f32.mrf.mxu1  ;;  %v840_v30 = vmul.f32 0.2, %v709_v19 }
 0x100   : > { %v858_v29 = vsel %vm794_vm12, %v695_v14, %v826_v23  ;;  %v698_v31 = vadd.f32 %v1401_v20, %v1602_v24  ;;  %v714_v32 = vadd.f32 %v1417_v21, %v1602_v24  ;;  %v874_v34 = vsel %vm810_vm13, %v711_v15, %v842_v25 }
 0x101   : > { %v1274_v33 = vpack.c.bf16 %v858_v29, %v857_v9  ;;  %v856_v35 = vsel %vm792_vm14, %v693_v18, %v824_v26  ;;  %v696_v36 = vadd.f32 %v1602_v24, %v593_v27  ;;  %v1402_v37 = vpop.f32.mrf.mxu0  ;;  %v1418_v38 = vpop.f32.mrf.mxu1  ;;  %v1314_v39 = vpack.c.bf16 %v874_v34, %v873_v16 }
 0x102   : > { %v1269_v40 = vpack.c.bf16 %v856_v35, %v855_v17  ;;  %v872_v41 = vsel %vm808_vm15, %v709_v19, %v840_v30  ;;  %vm797_vm0 = vcmp.ge.f32.partialorder %v698_v31, 0.0  ;;  %v829_v43 = vmul.f32 0.2, %v698_v31 }
 0x103   : > { %1338 = vst [vmem:[%s1617_s17 + $0x18] sm:$0xff] %v1274_v33   ;;  %v1309_v42 = vpack.c.bf16 %v872_v41, %v871_v22  ;;  %vm813_vm1 = vcmp.ge.f32.partialorder %v714_v32, 0.0  ;;  %v845_v44 = vmul.f32 0.2, %v714_v32  ;;  %v596_v45 = vpop.f32.mrf.mxu0  ;;  %v660_v46 = vpop.f32.mrf.mxu1  ;;  %1346 = vst [vmem:[%s1617_s17 + $0x58] sm:$0xff] %v1314_v39   ;;  %vm795_vm2 = vcmp.ge.f32.partialorder %v696_v36, 0.0 }
 0x104   : > { %1337 = vst [vmem:[%s1617_s17 + $0x10] sm:$0xff] %v1269_v40   ;;  %v827_v47 = vmul.f32 0.2, %v696_v36  ;;  %v712_v48 = vadd.f32 %v1602_v24, %v657_v28  ;;  %v699_v49 = vadd.f32 %v1402_v37, %v1602_v24  ;;  %v861_v50 = vsel %vm797_vm0, %v698_v31, %v829_v43 }
 0x105   : > { %1345 = vst [vmem:[%s1617_s17 + $0x50] sm:$0xff] %v1309_v42   ;;  %v715_v51 = vadd.f32 %v1418_v38, %v1602_v24  ;;  %v697_v52 = vadd.f32 %v1602_v24, %v596_v45  ;;  %v1405_v53 = vpop.f32.mrf.mxu0  ;;  %v1421_v54 = vpop.f32.mrf.mxu1  ;;  %v877_v55 = vsel %vm813_vm1, %v714_v32, %v845_v44  ;;  %v713_v63 = vadd.f32 %v1602_v24, %v660_v46 }
 0x106   : > { %v859_v56 = vsel %vm795_vm2, %v696_v36, %v827_v47  ;;  %vm811_vm3 = vcmp.ge.f32.partialorder %v712_v48, 0.0  ;;  %vm798_vm4 = vcmp.ge.f32.partialorder %v699_v49, 0.0  ;;  %v830_v57 = vmul.f32 0.2, %v699_v49 }
 0x107   : > { %vm814_vm5 = vcmp.ge.f32.partialorder %v715_v51, 0.0  ;;  %v846_v58 = vmul.f32 0.2, %v715_v51  ;;  %vm796_vm6 = vcmp.ge.f32.partialorder %v697_v52, 0.0  ;;  %v609_v59 = vpop.f32.mrf.mxu0  ;;  %v673_v60 = vpop.f32.mrf.mxu1  ;;  %v843_v61 = vmul.f32 0.2, %v712_v48 }
 0x108   : > { %v828_v62 = vmul.f32 0.2, %v697_v52  ;;  %v702_v0 = vadd.f32 %v1405_v53, %v1602_v24  ;;  %v862_v1 = vsel %vm798_vm4, %v699_v49, %v830_v57  ;;  %v718_v3 = vadd.f32 %v1421_v54, %v1602_v24 }
 0x109   : > { %v878_v2 = vsel %vm814_vm5, %v715_v51, %v846_v58  ;;  %v700_v4 = vadd.f32 %v1602_v24, %v609_v59  ;;  %v1406_v5 = vpop.f32.mrf.mxu0  ;;  %v1422_v6 = vpop.f32.mrf.mxu1  ;;  %v1284_v7 = vpack.c.bf16 %v862_v1, %v861_v50  ;;  %vm812_vm7 = vcmp.ge.f32.partialorder %v713_v63, 0.0 }
 0x10a   : > { %v1324_v8 = vpack.c.bf16 %v878_v2, %v877_v55  ;;  %v860_v9 = vsel %vm796_vm6, %v697_v52, %v828_v62  ;;  %v844_v11 = vmul.f32 0.2, %v713_v63  ;;  %v833_v12 = vmul.f32 0.2, %v702_v0 }
 0x10b   : > { %v1279_v10 = vpack.c.bf16 %v860_v9, %v859_v56  ;;  %v875_v13 = vsel %vm811_vm3, %v712_v48, %v843_v61  ;;  %1340 = vst [vmem:[%s1617_s17 + $0x28] sm:$0xff] %v1284_v7   ;;  %vm801_vm8 = vcmp.ge.f32.partialorder %v702_v0, 0.0  ;;  %v849_v15 = vmul.f32 0.2, %v718_v3  ;;  %v612_v18 = vpop.f32.mrf.mxu0  ;;  %v676_v19 = vpop.f32.mrf.mxu1 }
 0x10c   : > { %1348 = vst [vmem:[%s1617_s17 + $0x68] sm:$0xff] %v1324_v8   ;;  %v876_v14 = vsel %vm812_vm7, %v713_v63, %v844_v11  ;;  %v716_v16 = vadd.f32 %v1602_v24, %v673_v60  ;;  %v703_v17 = vadd.f32 %v1406_v5, %v1602_v24  ;;  %vm817_vm9 = vcmp.ge.f32.partialorder %v718_v3, 0.0 }
 0x10d   : > { %1339 = vst [vmem:[%s1617_s17 + $0x20] sm:$0xff] %v1279_v10   ;;  %v1319_v20 = vpack.c.bf16 %v876_v14, %v875_v13  ;;  %vm799_vm10 = vcmp.ge.f32.partialorder %v700_v4, 0.0  ;;  %v719_v21 = vadd.f32 %v1422_v6, %v1602_v24  ;;  %v865_v22 = vsel %vm801_vm8, %v702_v0, %v833_v12 }
 0x10e   : > { %v831_v23 = vmul.f32 0.2, %v700_v4  ;;  %vm802_vm11 = vcmp.ge.f32.partialorder %v703_v17, 0.0  ;;  %v834_v25 = vmul.f32 0.2, %v703_v17  ;;  %v701_v27 = vadd.f32 %v1602_v24, %v612_v18 }
 0x10f   : > { %1347 = vst [vmem:[%s1617_s17 + $0x60] sm:$0xff] %v1319_v20   ;;  %vm818_vm12 = vcmp.ge.f32.partialorder %v719_v21, 0.0  ;;  %v850_v26 = vmul.f32 0.2, %v719_v21  ;;  %v717_v28 = vadd.f32 %v1602_v24, %v676_v19  ;;  %v881_v29 = vsel %vm817_vm9, %v718_v3, %v849_v15 }
 0x110   : > { %vm815_vm13 = vcmp.ge.f32.partialorder %v716_v16, 0.0  ;;  %v847_v30 = vmul.f32 0.2, %v716_v16  ;;  %v866_v31 = vsel %vm802_vm11, %v703_v17, %v834_v25  ;;  %vm800_vm14 = vcmp.ge.f32.partialorder %v701_v27, 0.0 }
 0x111   : > { %v1294_v32 = vpack.c.bf16 %v866_v31, %v865_v22  ;;  %v882_v33 = vsel %vm818_vm12, %v719_v21, %v850_v26  ;;  %v832_v34 = vmul.f32 0.2, %v701_v27  ;;  %vm816_vm15 = vcmp.ge.f32.partialorder %v717_v28, 0.0 }
 0x112   : > { %v1334_v35 = vpack.c.bf16 %v882_v33, %v881_v29  ;;  %v848_v36 = vmul.f32 0.2, %v717_v28  ;;  %v863_v37 = vsel %vm799_vm10, %v700_v4, %v831_v23  ;;  %v879_v39 = vsel %vm815_vm13, %v716_v16, %v847_v30 }
 0x113   : > { %1342 = vst [vmem:[%s1617_s17 + $0x38] sm:$0xff] %v1294_v32   ;;  %v864_v38 = vsel %vm800_vm14, %v701_v27, %v832_v34 }
 0x114   : > { %1350 = vst [vmem:[%s1617_s17 + $0x78] sm:$0xff] %v1334_v35   ;;  %v1289_v24 = vpack.c.bf16 %v864_v38, %v863_v37  ;;  %v880_v40 = vsel %vm816_vm15, %v717_v28, %v848_v36 }
 0x115   : > { %v1329_v41 = vpack.c.bf16 %v880_v40, %v879_v39 }
 0x116   : > { %1341 = vst [vmem:[%s1617_s17 + $0x30] sm:$0xff] %v1289_v24  }
 0x117   : > { %1349 = vst [vmem:[%s1617_s17 + $0x70] sm:$0xff] %v1329_v41  }
 0x118 PF: > { %s13_s14 = sadd.s32 1, %s1509_s14   ;;  %s1676_s12 = smov %s1505_s13 }
 0x119   : > { %p10_p5 = scmp.ge.s32.totalorder %s13_s14, 4   ;;  %s1677_s13 = smov %s1679_s15 }
 0x11b   :  { %12 = sbr.rel (!%p10_p5) target bundleno = 2 (0x2), region = 76 }

// kernel: discriminator_forward.5
= control target key start
LH: loop header
LB: loop body
LE: loop exit
PB: predicated region body
PF: predicated region fallthrough
CT: control target
= control target key end

     0   :  { %s1964_s12 = smov 0   ;;  %s1966_s13 = smov 0   ;;  %s2265_s0 = inlined_call_operand.vmem [shape: bf16[128,1024], index: 0, kind: input, shape index: {}]   ;;  %s2266_s1 = inlined_call_operand.vmem [shape: bf16[1024,128], index: 1, kind: input, shape index: {}]   ;;  %s2267_s2 = inlined_call_operand.vmem [shape: f32[1,128], index: 2, kind: input, shape index: {}]   ;;  %s2268_s3 = inlined_call_operand.vmem [shape: bf16[128,128], index: 3, kind: output, shape index: {}]  }
   0x1   :  { %s1968_s14 = smov 0  }
   0x2 LB: > { %s32_s15 = sadd.s32 1, %s1938_s13  ;;  %p1525_p0 = scmp.ge.s32.totalorder %s1942_s14, 1  ;;  %s1942_s14 = sphi %s1968_s14, %s13_s14   ;;  %s1938_s13 = sphi %s1966_s13, %s2270_s13   ;;  %s1934_s12 = sphi %s1964_s12, %s2269_s12  }
   0x3   : > { %p34_p1 = scmp.ge.s32.totalorder %s32_s15, 2  ;;  %p191_p2 = scmp.lt.s32.totalorder %s1942_s14, 3 }
   0x5   : > { %s2272_s15 = smov (%p34_p1, %s32_s15), 0  ;;  %p192_p3 = pnand %p1525_p0, %p191_p2 }
   0x6   : > { %s1526_s25 = sshll.u32 (!%p192_p3), %s1934_s12, 3 }
   0x7   : > { %195 = sbr.rel (%p192_p3) target bundleno = 385 (0x181), region = 32  ;;  %p236_p4 = scmp.lt.s32.totalorder (!%p192_p3), %s1526_s25, 15 }
   0xc   : > { %v1854_v0 = vld [vmem:[%s2266_s1 + $0x78] sm:$0xff]   ;;  %v1858_v4 = vld [vmem:[%s2266_s1 + $0x70] sm:$0xff]   ;;  %v1862_v8 = vld [vmem:[%s2266_s1 + $0x68] sm:$0xff]   ;;  %s2274_s25 = smov (!%p236_p4, %s1526_s25), 15 }
   0xd   : > { %v1855_v1 = vld [vmem:[%s2266_s1 + $0xf8] sm:$0xff]   ;;  %1670 = vmatprep.subr.bf16.mxu0 %v1854_v0  ;;  %v1859_v5 = vld [vmem:[%s2266_s1 + $0xf0] sm:$0xff]   ;;  %v1863_v9 = vld [vmem:[%s2266_s1 + $0xe8] sm:$0xff]   ;;  %s1638_s24 = sshll.u32 %s2274_s25, 5  ;;  %s1530_s10 = sshll.u32 %s2274_s25, 2 }
   0xe   : > { %v1856_v2 = vld [vmem:[%s2266_s1 + $0x38] sm:$0xff]   ;;  %1710 = vmatprep.subr.bf16.mxu1 %v1855_v1  ;;  %v1860_v6 = vld [vmem:[%s2266_s1 + $0x30] sm:$0xff]   ;;  %v1864_v10 = vld [vmem:[%s2266_s1 + $0x28] sm:$0xff]   ;;  %s2081_s12 = scalar_lea.vmem %s2265_s0, %s1638_s24  ;;  %s265_s25 = scalar_lea.vmem %s2268_s3, %s1530_s10 }
   0xf   : > { %v1857_v3 = vld [vmem:[%s2266_s1 + $0xb8] sm:$0xff]   ;;  %1671 = vmatpush3.bf16.msra.mxu0 %v1856_v2  ;;  %v1861_v7 = vld [vmem:[%s2266_s1 + $0xb0] sm:$0xff]   ;;  %v1865_v11 = vld [vmem:[%s2266_s1 + $0xa8] sm:$0xff]  }
  0x10   : > { %1711 = vmatpush3.bf16.msra.mxu1 %v1857_v3  ;;  %1672 = vmatprep.subr.bf16.mxu0 %v1858_v4  ;;  %v1866_v12 = vld [vmem:[%s2266_s1 + $0x60] sm:$0xff]   ;;  %v1870_v16 = vld [vmem:[%s2266_s1 + $0x58] sm:$0xff]   ;;  %v1874_v20 = vld [vmem:[%s2266_s1 + $0x50] sm:$0xff]  }
  0x11   : > { %1712 = vmatprep.subr.bf16.mxu1 %v1859_v5  ;;  %v1867_v13 = vld [vmem:[%s2266_s1 + $0xe0] sm:$0xff]   ;;  %v1871_v17 = vld [vmem:[%s2266_s1 + $0xd8] sm:$0xff]   ;;  %v1875_v21 = vld [vmem:[%s2266_s1 + $0xd0] sm:$0xff]  }
  0x12   : > { %v1868_v14 = vld [vmem:[%s2266_s1 + $0x20] sm:$0xff]   ;;  %v1872_v18 = vld [vmem:[%s2266_s1 + $0x18] sm:$0xff]   ;;  %v1876_v22 = vld [vmem:[%s2266_s1 + $0x10] sm:$0xff]  }
  0x13   : > { %1673 = vmatpush3.bf16.msra.mxu0 %v1860_v6  ;;  %v1869_v15 = vld [vmem:[%s2266_s1 + $0xa0] sm:$0xff]   ;;  %v1873_v19 = vld [vmem:[%s2266_s1 + $0x98] sm:$0xff]   ;;  %v1877_v23 = vld [vmem:[%s2266_s1 + $0x90] sm:$0xff]  }
  0x14   : > { %1713 = vmatpush3.bf16.msra.mxu1 %v1861_v7  ;;  %1674 = vmatprep.subr.bf16.mxu0 %v1862_v8  ;;  %v1878_v24 = vld [vmem:[%s2266_s1 + $0x48] sm:$0xff]   ;;  %v1882_v28 = vld [vmem:[%s2266_s1 + $0x40] sm:$0xff]   ;;  %v1886_v40 = vld [vmem:[%s2266_s1 + $0x178] sm:$0xff]  }
  0x15   : > { %1714 = vmatprep.subr.bf16.mxu1 %v1863_v9  ;;  %v1879_v25 = vld [vmem:[%s2266_s1 + $0xc8] sm:$0xff]   ;;  %v1883_v29 = vld [vmem:[%s2266_s1 + $0xc0] sm:$0xff]   ;;  %v1887_v41 = vld [vmem:[%s2266_s1 + $0x1f8] sm:$0xff]  }
  0x16   : > { %v1880_v26 = vld [vmem:[%s2266_s1 + $0x8] sm:$0xff]   ;;  %v1884_v30 = vld [vmem:[%s2266_s1] sm:$0xff]   ;;  %v1888_v42 = vld [vmem:[%s2266_s1 + $0x138] sm:$0xff]  }
  0x17   : > { %1675 = vmatpush3.bf16.msra.mxu0 %v1864_v10  ;;  %v1881_v27 = vld [vmem:[%s2266_s1 + $0x88] sm:$0xff]   ;;  %v1885_v31 = vld [vmem:[%s2266_s1 + $0x80] sm:$0xff]   ;;  %v1889_v43 = vld [vmem:[%s2266_s1 + $0x1b8] sm:$0xff]  }
  0x18   : > { %1715 = vmatpush3.bf16.msra.mxu1 %v1865_v11  ;;  %1676 = vmatprep.subr.bf16.mxu0 %v1866_v12  ;;  %v295_v32 = vld [vmem:[%s2081_s12] sm:$0xff]  ;;  %v296_v34 = vld [vmem:[%s2081_s12 + $0x8] sm:$0xff]  ;;  %v1890_v44 = vld [vmem:[%s2266_s1 + $0x170] sm:$0xff]  }
  0x19   : > { %1716 = vmatprep.subr.bf16.mxu1 %v1867_v13  ;;  %v299_v33 = vld [vmem:[%s2081_s12 + $0x20] sm:$0xff]  ;;  %v300_v37 = vld [vmem:[%s2081_s12 + $0x28] sm:$0xff]  ;;  %v1891_v45 = vld [vmem:[%s2266_s1 + $0x1f0] sm:$0xff]  }
  0x1a   : > { %v1532_v35 = vcombine.low %v295_v32, %v299_v33  ;;  %v1533_v36 = vcombine.high %v295_v32, %v299_v33  ;;  %v1534_v38 = vcombine.low %v296_v34, %v300_v37  ;;  %v1535_v39 = vcombine.high %v296_v34, %v300_v37  ;;  %v1892_v46 = vld [vmem:[%s2266_s1 + $0x130] sm:$0xff]   ;;  %v303_v48 = vld [vmem:[%s2081_s12 + $0x40] sm:$0xff]  ;;  %v304_v51 = vld [vmem:[%s2081_s12 + $0x48] sm:$0xff] }
  0x1b   : > { %1677 = vmatpush3.bf16.msra.mxu0 %v1868_v14  ;;  %v1893_v47 = vld [vmem:[%s2266_s1 + $0x1b0] sm:$0xff]   ;;  %v307_v49 = vld [vmem:[%s2081_s12 + $0x60] sm:$0xff]  ;;  %v308_v52 = vld [vmem:[%s2081_s12 + $0x68] sm:$0xff] }
  0x1c   : > { %1717 = vmatpush3.bf16.msra.mxu1 %v1869_v15  ;;  %1678 = vmatprep.subr.bf16.mxu0 %v1870_v16  ;;  %v1541_v50 = vcombine.high %v303_v48, %v307_v49  ;;  %v1540_v53 = vcombine.low %v303_v48, %v307_v49  ;;  %v1543_v54 = vcombine.high %v304_v51, %v308_v52  ;;  %v1894_v56 = vld [vmem:[%s2266_s1 + $0x168] sm:$0xff]   ;;  %v1898_v60 = vld [vmem:[%s2266_s1 + $0x160] sm:$0xff]   ;;  %v1902_v8 = vld [vmem:[%s2266_s1 + $0x158] sm:$0xff]  }
  0x1d   : > { %1718 = vmatprep.subr.bf16.mxu1 %v1871_v17  ;;  %1031 = vmatprep.mubr.bf16.mxu0 %v1533_v36  ;;  %v1542_v55 = vcombine.low %v304_v51, %v308_v52  ;;  %v1895_v57 = vld [vmem:[%s2266_s1 + $0x1e8] sm:$0xff]   ;;  %v1899_v61 = vld [vmem:[%s2266_s1 + $0x1e0] sm:$0xff]   ;;  %v1903_v9 = vld [vmem:[%s2266_s1 + $0x1d8] sm:$0xff]  }
  0x1e   : > { %1096 = vmatprep.mubr.bf16.mxu1 %v1535_v39  ;;  %v1896_v58 = vld [vmem:[%s2266_s1 + $0x128] sm:$0xff]   ;;  %v1900_v62 = vld [vmem:[%s2266_s1 + $0x120] sm:$0xff]   ;;  %v1904_v10 = vld [vmem:[%s2266_s1 + $0x118] sm:$0xff]  }
  0x1f   : > { %1679 = vmatpush3.bf16.msra.mxu0 %v1872_v18  ;;  %v1897_v59 = vld [vmem:[%s2266_s1 + $0x1a8] sm:$0xff]   ;;  %v1901_v63 = vld [vmem:[%s2266_s1 + $0x1a0] sm:$0xff]   ;;  %v1905_v11 = vld [vmem:[%s2266_s1 + $0x198] sm:$0xff]  }
  0x20   : > { %1719 = vmatpush3.bf16.msra.mxu1 %v1873_v19  ;;  %1680 = vmatprep.subr.bf16.mxu0 %v1874_v20  ;;  %v311_v0 = vld [vmem:[%s2081_s12 + $0x80] sm:$0xff]  ;;  %v312_v2 = vld [vmem:[%s2081_s12 + $0x88] sm:$0xff]  ;;  %v1906_v12 = vld [vmem:[%s2266_s1 + $0x150] sm:$0xff]  }
  0x21   : > { %1720 = vmatprep.subr.bf16.mxu1 %v1875_v21  ;;  %v315_v1 = vld [vmem:[%s2081_s12 + $0xa0] sm:$0xff]  ;;  %v316_v3 = vld [vmem:[%s2081_s12 + $0xa8] sm:$0xff]  ;;  %v1907_v13 = vld [vmem:[%s2266_s1 + $0x1d0] sm:$0xff]  }
  0x22   : > { %v1549_v4 = vcombine.high %v311_v0, %v315_v1  ;;  %v1551_v5 = vcombine.high %v312_v2, %v316_v3  ;;  %v1548_v6 = vcombine.low %v311_v0, %v315_v1  ;;  %v1550_v7 = vcombine.low %v312_v2, %v316_v3  ;;  %v1908_v14 = vld [vmem:[%s2266_s1 + $0x110] sm:$0xff]   ;;  %v319_v16 = vld [vmem:[%s2081_s12 + $0xc0] sm:$0xff]  ;;  %v320_v18 = vld [vmem:[%s2081_s12 + $0xc8] sm:$0xff] }
  0x23   : > { %1681 = vmatpush3.bf16.msra.mxu0 %v1876_v22  ;;  %v1909_v15 = vld [vmem:[%s2266_s1 + $0x190] sm:$0xff]   ;;  %v323_v17 = vld [vmem:[%s2081_s12 + $0xe0] sm:$0xff]  ;;  %v324_v20 = vld [vmem:[%s2081_s12 + $0xe8] sm:$0xff] }
  0x24   : > { %1721 = vmatpush3.bf16.msra.mxu1 %v1877_v23  ;;  %1682 = vmatprep.subr.bf16.mxu0 %v1878_v24  ;;  %v1557_v19 = vcombine.high %v319_v16, %v323_v17  ;;  %v1556_v21 = vcombine.low %v319_v16, %v323_v17  ;;  %v1559_v22 = vcombine.high %v320_v18, %v324_v20  ;;  %v1910_v24 = vld [vmem:[%s2266_s1 + $0x148] sm:$0xff]   ;;  %v297_v32 = vld [vmem:[%s2081_s12 + $0x10] sm:$0xff]  ;;  %v298_v36 = vld [vmem:[%s2081_s12 + $0x18] sm:$0xff] }
  0x25   : > { %1722 = vmatprep.subr.bf16.mxu1 %v1879_v25  ;;  %v1558_v23 = vcombine.low %v320_v18, %v324_v20  ;;  %v1911_v25 = vld [vmem:[%s2266_s1 + $0x1c8] sm:$0xff]   ;;  %v301_v33 = vld [vmem:[%s2081_s12 + $0x30] sm:$0xff]  ;;  %v302_v37 = vld [vmem:[%s2081_s12 + $0x38] sm:$0xff] }
  0x26   : > { %v1536_v34 = vcombine.low %v297_v32, %v301_v33  ;;  %v1538_v39 = vcombine.low %v298_v36, %v302_v37  ;;  %v314_v48 = vld [vmem:[%s2081_s12 + $0x98] sm:$0xff] }
  0x27   : > { %1683 = vmatpush3.bf16.msra.mxu0 %v1880_v26  ;;  %v1912_v26 = vld [vmem:[%s2266_s1 + $0x108] sm:$0xff]   ;;  %v318_v49 = vld [vmem:[%s2081_s12 + $0xb8] sm:$0xff] }
  0x28   : > { %1723 = vmatpush3.bf16.msra.mxu1 %v1881_v27  ;;  %1684 = vmatprep.subr.bf16.mxu0 %v1882_v28  ;;  %v1913_v27 = vld [vmem:[%s2266_s1 + $0x188] sm:$0xff]   ;;  %v1914_v28 = vld [vmem:[%s2266_s1 + $0x140] sm:$0xff]  }
  0x29   : > { %1724 = vmatprep.subr.bf16.mxu1 %v1883_v29  ;;  %v1915_v29 = vld [vmem:[%s2266_s1 + $0x1c0] sm:$0xff]  }
  0x2b   : > { %1685 = vmatpush3.bf16.msra.mxu0 %v1884_v30  ;;  %v1916_v30 = vld [vmem:[%s2266_s1 + $0x100] sm:$0xff]  }
  0x2c   : > { %1725 = vmatpush3.bf16.msra.mxu1 %v1885_v31  ;;  %1750 = vmatprep.subr.bf16.mxu0 %v1886_v40  ;;  %v1917_v31 = vld [vmem:[%s2266_s1 + $0x180] sm:$0xff]   ;;  %v1539_v40 = vcombine.high %v298_v36, %v302_v37 }
  0x2d   : > { %1790 = vmatprep.subr.bf16.mxu1 %v1887_v41  ;;  %v309_v41 = vld [vmem:[%s2081_s12 + $0x70] sm:$0xff] }
  0x2e   : > { %1032 = vmatmul.mubr.bf16.vlgmr.msra.gmra.mxu0 %v1532_v35  ;;  %v1537_v35 = vcombine.high %v297_v32, %v301_v33 }
  0x2f   : > { %1097 = vmatmul.mubr.bf16.vlgmr.msra.gmra.mxu1 %v1534_v38  ;;  %1751 = vmatpush3.bf16.msra.mxu0 %v1888_v42  ;;  %v305_v38 = vld [vmem:[%s2081_s12 + $0x50] sm:$0xff]  ;;  %v306_v42 = vld [vmem:[%s2081_s12 + $0x58] sm:$0xff] }
  0x30   : > { %1791 = vmatpush3.bf16.msra.mxu1 %v1889_v43  ;;  %1752 = vmatprep.subr.bf16.mxu0 %v1890_v44  ;;  %v310_v43 = vld [vmem:[%s2081_s12 + $0x78] sm:$0xff]  ;;  %v1545_v44 = vcombine.high %v305_v38, %v309_v41 }
  0x31   : > { %1792 = vmatprep.subr.bf16.mxu1 %v1891_v45  ;;  %1039 = vmatprep.mubr.bf16.mxu0 %v1541_v50  ;;  %v1547_v45 = vcombine.high %v306_v42, %v310_v43  ;;  %v1544_v50 = vcombine.low %v305_v38, %v309_v41  ;;  %v1546_v51 = vcombine.low %v306_v42, %v310_v43 }
  0x32   : > { %1104 = vmatprep.mubr.bf16.mxu1 %v1543_v54  ;;  %v321_v54 = vld [vmem:[%s2081_s12 + $0xd0] sm:$0xff] }
  0x33   : > { %1753 = vmatpush3.bf16.msra.mxu0 %v1892_v46  ;;  %v313_v46 = vld [vmem:[%s2081_s12 + $0x90] sm:$0xff] }
  0x34   : > { %1793 = vmatpush3.bf16.msra.mxu1 %v1893_v47  ;;  %1754 = vmatprep.subr.bf16.mxu0 %v1894_v56  ;;  %v317_v47 = vld [vmem:[%s2081_s12 + $0xb0] sm:$0xff]  ;;  %v322_v56 = vld [vmem:[%s2081_s12 + $0xd8] sm:$0xff] }
  0x35   : > { %1794 = vmatprep.subr.bf16.mxu1 %v1895_v57  ;;  %v1553_v52 = vcombine.high %v313_v46, %v317_v47  ;;  %v326_v57 = vld [vmem:[%s2081_s12 + $0xf8] sm:$0xff] }
  0x36   : > { %1040 = vmatmul.mubr.bf16.gmra.mxu0 %v1540_v53  ;;  %v1555_v53 = vcombine.high %v314_v48, %v318_v49 }
  0x37   : > { %1105 = vmatmul.mubr.bf16.gmra.mxu1 %v1542_v55  ;;  %1755 = vmatpush3.bf16.msra.mxu0 %v1896_v58  ;;  %v325_v55 = vld [vmem:[%s2081_s12 + $0xf0] sm:$0xff]  ;;  %v1552_v58 = vcombine.low %v313_v46, %v317_v47 }
  0x38   : > { %1795 = vmatpush3.bf16.msra.mxu1 %v1897_v59  ;;  %1756 = vmatprep.subr.bf16.mxu0 %v1898_v60  ;;  %v1554_v59 = vcombine.low %v314_v48, %v318_v49  ;;  %v1561_v60 = vcombine.high %v321_v54, %v325_v55 }
  0x39   : > { %1796 = vmatprep.subr.bf16.mxu1 %v1899_v61  ;;  %1047 = vmatprep.mubr.bf16.mxu0 %v1549_v4  ;;  %v1563_v61 = vcombine.high %v322_v56, %v326_v57 }
  0x3a   : > { %1112 = vmatprep.mubr.bf16.mxu1 %v1551_v5 }
  0x3b   : > { %1757 = vmatpush3.bf16.msra.mxu0 %v1900_v62  ;;  %v1560_v62 = vcombine.low %v321_v54, %v325_v55 }
  0x3c   : > { %1797 = vmatpush3.bf16.msra.mxu1 %v1901_v63  ;;  %1758 = vmatprep.subr.bf16.mxu0 %v1902_v8  ;;  %v1562_v63 = vcombine.low %v322_v56, %v326_v57 }
  0x3d   : > { %1798 = vmatprep.subr.bf16.mxu1 %v1903_v9 }
  0x3e   : > { %1048 = vmatmul.mubr.bf16.gmra.mxu0 %v1548_v6 }
  0x3f   : > { %1113 = vmatmul.mubr.bf16.gmra.mxu1 %v1550_v7  ;;  %1759 = vmatpush3.bf16.msra.mxu0 %v1904_v10 }
  0x40   : > { %1799 = vmatpush3.bf16.msra.mxu1 %v1905_v11  ;;  %1760 = vmatprep.subr.bf16.mxu0 %v1906_v12 }
  0x41   : > { %1800 = vmatprep.subr.bf16.mxu1 %v1907_v13  ;;  %1055 = vmatprep.mubr.bf16.mxu0 %v1557_v19 }
  0x42   : > { %1120 = vmatprep.mubr.bf16.mxu1 %v1559_v22 }
  0x43   : > { %1761 = vmatpush3.bf16.msra.mxu0 %v1908_v14 }
  0x44   : > { %1801 = vmatpush3.bf16.msra.mxu1 %v1909_v15  ;;  %1762 = vmatprep.subr.bf16.mxu0 %v1910_v24 }
  0x45   : > { %1802 = vmatprep.subr.bf16.mxu1 %v1911_v25 }
  0x46   : > { %1056 = vmatmul.mubr.bf16.gmra.mxu0 %v1556_v21 }
  0x47   : > { %1121 = vmatmul.mubr.bf16.gmra.mxu1 %v1558_v23  ;;  %1763 = vmatpush3.bf16.msra.mxu0 %v1912_v26 }
  0x48   : > { %1803 = vmatpush3.bf16.msra.mxu1 %v1913_v27  ;;  %1764 = vmatprep.subr.bf16.mxu0 %v1914_v28 }
  0x49   : > { %1804 = vmatprep.subr.bf16.mxu1 %v1915_v29  ;;  %1161 = vmatprep.mubr.bf16.mxu0 %v1537_v35 }
  0x4a   : > { %1226 = vmatprep.mubr.bf16.mxu1 %v1539_v40 }
  0x4b   : > { %1765 = vmatpush3.bf16.msra.mxu0 %v1916_v30 }
  0x4c   : > { %1805 = vmatpush3.bf16.msra.mxu1 %v1917_v31 }
  0x4e   : > { %1162 = vmatmul.mubr.bf16.vlgmr.msra.gmra.mxu0 %v1536_v34 }
  0x4f   : > { %1227 = vmatmul.mubr.bf16.vlgmr.msra.gmra.mxu1 %v1538_v39  ;;  %1169 = vmatprep.mubr.bf16.mxu0 %v1545_v44 }
  0x50   : > { %1234 = vmatprep.mubr.bf16.mxu1 %v1547_v45 }
  0x56   : > { %1170 = vmatmul.mubr.bf16.gmra.mxu0 %v1544_v50 }
  0x57   : > { %1235 = vmatmul.mubr.bf16.gmra.mxu1 %v1546_v51  ;;  %1177 = vmatprep.mubr.bf16.mxu0 %v1553_v52 }
  0x58   : > { %1242 = vmatprep.mubr.bf16.mxu1 %v1555_v53 }
  0x5e   : > { %1178 = vmatmul.mubr.bf16.gmra.mxu0 %v1552_v58 }
  0x5f   : > { %1243 = vmatmul.mubr.bf16.gmra.mxu1 %v1554_v59  ;;  %1185 = vmatprep.mubr.bf16.mxu0 %v1561_v60 }
  0x60   : > { %1250 = vmatprep.mubr.bf16.mxu1 %v1563_v61 }
  0x66   : > { %1186 = vmatmul.mubr.bf16.gmra.mxu0 %v1560_v62 }
  0x67   : > { %1251 = vmatmul.mubr.bf16.gmra.mxu1 %v1562_v63 }
  0xee   : > { %v1686_v0 = vpop.f32.mrf.mxu0 }
  0xef   : > { %v1726_v1 = vpop.f32.mrf.mxu1 }
  0xf0   : > { %v1687_v2 = vpop.f32.mrf.mxu0 }
  0xf1   : > { %v1727_v3 = vpop.f32.mrf.mxu1  ;;  %v1688_v44 = vadd.f32 %v1687_v2, %v1686_v0 }
  0xf2   : > { %v1689_v4 = vpop.f32.mrf.mxu0  ;;  %v1728_v45 = vadd.f32 %v1727_v3, %v1726_v1 }
  0xf3   : > { %v1729_v5 = vpop.f32.mrf.mxu1 }
  0xf4   : > { %v1690_v6 = vpop.f32.mrf.mxu0  ;;  %v1099_v58 = vadd.f32 %v1728_v45, %v1688_v44 }
  0xf5   : > { %v1730_v7 = vpop.f32.mrf.mxu1  ;;  %v1691_v41 = vadd.f32 %v1690_v6, %v1689_v4 }
  0xf6   : > { %v1692_v8 = vpop.f32.mrf.mxu0  ;;  %v1731_v42 = vadd.f32 %v1730_v7, %v1729_v5 }
  0xf7   : > { %v1732_v9 = vpop.f32.mrf.mxu1 }
  0xf8   : > { %v1693_v10 = vpop.f32.mrf.mxu0  ;;  %v1102_v53 = vadd.f32 %v1731_v42, %v1691_v41 }
  0xf9   : > { %v1733_v11 = vpop.f32.mrf.mxu1  ;;  %v1694_v47 = vadd.f32 %v1693_v10, %v1692_v8 }
  0xfa   : > { %v1695_v12 = vpop.f32.mrf.mxu0  ;;  %v1734_v48 = vadd.f32 %v1733_v11, %v1732_v9 }
  0xfb   : > { %v1735_v13 = vpop.f32.mrf.mxu1 }
  0xfc   : > { %v1696_v14 = vpop.f32.mrf.mxu0  ;;  %v1107_v62 = vadd.f32 %v1734_v48, %v1694_v47 }
  0xfd   : > { %v1736_v15 = vpop.f32.mrf.mxu1  ;;  %v1697_v54 = vadd.f32 %v1696_v14, %v1695_v12 }
  0xfe   : > { %v1698_v16 = vpop.f32.mrf.mxu0  ;;  %v1737_v55 = vadd.f32 %v1736_v15, %v1735_v13 }
  0xff   : > { %v1738_v17 = vpop.f32.mrf.mxu1 }
 0x100   : > { %v1699_v18 = vpop.f32.mrf.mxu0  ;;  %v1110_v4 = vadd.f32 %v1737_v55, %v1697_v54 }
 0x101   : > { %v1739_v19 = vpop.f32.mrf.mxu1  ;;  %v1700_v59 = vadd.f32 %v1699_v18, %v1698_v16 }
 0x102   : > { %v1701_v20 = vpop.f32.mrf.mxu0  ;;  %v1740_v60 = vadd.f32 %v1739_v19, %v1738_v17 }
 0x103   : > { %v1741_v21 = vpop.f32.mrf.mxu1 }
 0x104   : > { %v1702_v22 = vpop.f32.mrf.mxu0  ;;  %v1115_v8 = vadd.f32 %v1740_v60, %v1700_v59 }
 0x105   : > { %v1742_v23 = vpop.f32.mrf.mxu1  ;;  %v1703_v9 = vadd.f32 %v1702_v22, %v1701_v20 }
 0x106   : > { %v2217_v24 = vpop.f32.mrf.mxu0  ;;  %v1743_v10 = vadd.f32 %v1742_v23, %v1741_v21 }
 0x107   : > { %v2219_v25 = vpop.f32.mrf.mxu1 }
 0x108   : > { %v2221_v26 = vpop.f32.mrf.mxu0 }
 0x109   : > { %v2223_v27 = vpop.f32.mrf.mxu1  ;;  %v1706_v20 = vadd.f32 %v2221_v26, %v2217_v24 }
 0x10a   : > { %v2225_v28 = vpop.f32.mrf.mxu0  ;;  %v1746_v21 = vadd.f32 %v2223_v27, %v2219_v25 }
 0x10b   : > { %v2227_v29 = vpop.f32.mrf.mxu1 }
 0x10c   : > { %v2229_v30 = vpop.f32.mrf.mxu0 }
 0x10d   : > { %v2231_v31 = vpop.f32.mrf.mxu1  ;;  %v1709_v24 = vadd.f32 %v2229_v30, %v2225_v28 }
 0x10e   : > { %v1766_v32 = vpop.f32.mrf.mxu0  ;;  %v1749_v25 = vadd.f32 %v2231_v31, %v2227_v29 }
 0x10f   : > { %v1806_v33 = vpop.f32.mrf.mxu1 }
 0x110   : > { %v1767_v34 = vpop.f32.mrf.mxu0  ;;  %v1126_v60 = vadd.f32 %v1749_v25, %v1709_v24 }
 0x111   : > { %v1807_v35 = vpop.f32.mrf.mxu1  ;;  %v1768_v51 = vadd.f32 %v1767_v34, %v1766_v32  ;;  %v1531_v32 = vld [vmem:[%s2267_s2] ss:$0 sm:$0xff] }
 0x112   : > { %v1769_v36 = vpop.f32.mrf.mxu0  ;;  %v1808_v11 = vadd.f32 %v1807_v35, %v1806_v33 }
 0x113   : > { %v1809_v37 = vpop.f32.mrf.mxu1  ;;  %v1164_v2 = vadd.f32 %v1768_v51, %v1099_v58 }
 0x114   : > { %v1770_v38 = vpop.f32.mrf.mxu0 }
 0x115   : > { %v1810_v39 = vpop.f32.mrf.mxu1  ;;  %v1771_v49 = vadd.f32 %v1770_v38, %v1769_v36  ;;  %v1229_v18 = vadd.f32 %v1808_v11, %v1164_v2 }
 0x116   : > { %v1772_v40 = vpop.f32.mrf.mxu0  ;;  %v1811_v5 = vadd.f32 %v1810_v39, %v1809_v37  ;;  %v1118_v39 = vadd.f32 %v1743_v10, %v1703_v9 }
 0x117   : > { %v1812_v43 = vpop.f32.mrf.mxu1  ;;  %v1167_v63 = vadd.f32 %v1771_v49, %v1102_v53  ;;  %v1259_v42 = vadd.f32 %v1531_v32, %v1229_v18  ;;  %v1123_v49 = vadd.f32 %v1746_v21, %v1706_v20 }
 0x118   : > { %v1773_v46 = vpop.f32.mrf.mxu0 }
 0x119   : > { %v1813_v50 = vpop.f32.mrf.mxu1  ;;  %v1774_v56 = vadd.f32 %v1773_v46, %v1772_v40  ;;  %v1232_v13 = vadd.f32 %v1811_v5, %v1167_v63 }
 0x11a   : > { %v1775_v52 = vpop.f32.mrf.mxu0  ;;  %v1814_v14 = vadd.f32 %v1813_v50, %v1812_v43 }
 0x11b   : > { %v1815_v57 = vpop.f32.mrf.mxu1  ;;  %v1172_v6 = vadd.f32 %v1774_v56, %v1107_v62  ;;  %v1260_v23 = vadd.f32 %v1531_v32, %v1232_v13 }
 0x11c   : > { %v1776_v61 = vpop.f32.mrf.mxu0 }
 0x11d   : > { %v1777_v0 = vadd.f32 %v1776_v61, %v1775_v52  ;;  %v1816_v1 = vpop.f32.mrf.mxu1  ;;  %v1237_v34 = vadd.f32 %v1814_v14, %v1172_v6  ;;  %v1286_v27 = vadd.f32 %v1260_v23, %v1259_v42 }
 0x11e   : > { %v1778_v3 = vpop.f32.mrf.mxu0  ;;  %v1817_v36 = vadd.f32 %v1816_v1, %v1815_v57 }
 0x11f   : > { %v1818_v7 = vpop.f32.mrf.mxu1  ;;  %v1175_v15 = vadd.f32 %v1777_v0, %v1110_v4  ;;  %v1261_v44 = vadd.f32 %v1531_v32, %v1237_v34 }
 0x120   : > { %v1779_v12 = vpop.f32.mrf.mxu0 }
 0x121   : > { %v1780_v16 = vadd.f32 %v1779_v12, %v1778_v3  ;;  %v1819_v17 = vpop.f32.mrf.mxu1  ;;  %v1240_v33 = vadd.f32 %v1817_v36, %v1175_v15  ;;  %v1287_v55 = vadd.f32 %v1286_v27, %v1261_v44 }
 0x122   : > { %v1781_v19 = vpop.f32.mrf.mxu0  ;;  %v1820_v35 = vadd.f32 %v1819_v17, %v1818_v7 }
 0x123   : > { %v1180_v37 = vadd.f32 %v1780_v16, %v1115_v8  ;;  %v1821_v38 = vpop.f32.mrf.mxu1  ;;  %v1262_v50 = vadd.f32 %v1531_v32, %v1240_v33 }
 0x124   : > { %v1782_v22 = vpop.f32.mrf.mxu0 }
 0x125   : > { %v1783_v40 = vadd.f32 %v1782_v22, %v1781_v19  ;;  %v1822_v41 = vpop.f32.mrf.mxu1  ;;  %v1245_v45 = vadd.f32 %v1820_v35, %v1180_v37  ;;  %v1288_v62 = vadd.f32 %v1287_v55, %v1262_v50 }
 0x126   : > { %v1784_v43 = vpop.f32.mrf.mxu0  ;;  %v1823_v47 = vadd.f32 %v1822_v41, %v1821_v38 }
 0x127   : > { %v1183_v46 = vadd.f32 %v1783_v40, %v1118_v39  ;;  %v1824_v48 = vpop.f32.mrf.mxu1  ;;  %v1263_v56 = vadd.f32 %v1531_v32, %v1245_v45 }
 0x128   : > { %v1785_v26 = vpop.f32.mrf.mxu0 }
 0x129   : > { %v1248_v51 = vadd.f32 %v1823_v47, %v1183_v46  ;;  %v1786_v52 = vadd.f32 %v1785_v26, %v1784_v43  ;;  %v1825_v53 = vpop.f32.mrf.mxu1  ;;  %v1289_v29 = vadd.f32 %v1288_v62, %v1263_v56 }
 0x12a   : > { %v1787_v54 = vpop.f32.mrf.mxu0  ;;  %v1826_v58 = vadd.f32 %v1825_v53, %v1824_v48 }
 0x12b   : > { %v1188_v57 = vadd.f32 %v1786_v52, %v1123_v49  ;;  %v1827_v59 = vpop.f32.mrf.mxu1  ;;  %v1264_v63 = vadd.f32 %v1531_v32, %v1248_v51 }
 0x12c   : > { %v1788_v61 = vpop.f32.mrf.mxu0 }
 0x12d   : > { %v1253_v28 = vadd.f32 %v1826_v58, %v1188_v57  ;;  %v1789_v30 = vadd.f32 %v1788_v61, %v1787_v54  ;;  %v1828_v0 = vpop.f32.mrf.mxu1  ;;  %v1290_v3 = vadd.f32 %v1289_v29, %v1264_v63 }
 0x12e   : > { %v1829_v2 = vadd.f32 %v1828_v0, %v1827_v59 }
 0x12f   : > { %v1265_v31 = vadd.f32 %v1531_v32, %v1253_v28  ;;  %v1191_v1 = vadd.f32 %v1789_v30, %v1126_v60 }
 0x131   : > { %v1256_v4 = vadd.f32 %v1829_v2, %v1191_v1  ;;  %v1291_v5 = vadd.f32 %v1290_v3, %v1265_v31 }
 0x133   : > { %v1266_v6 = vadd.f32 %v1531_v32, %v1256_v4 }
 0x135   : > { %v1292_v7 = vadd.f32 %v1291_v5, %v1266_v6 }
 0x137   : > { %v1293_v8 = vrot.slane %v1292_v7, 4 }
 0x139   : > { %v1294_v9 = vadd.f32 %v1293_v8, %v1292_v7 }
 0x13b   : > { %v1295_v10 = vrot.slane %v1294_v9, 2 }
 0x13d   : > { %v1296_v11 = vadd.f32 %v1295_v10, %v1294_v9 }
 0x13f   : > { %v1297_v12 = vrot.slane %v1296_v11, 1 }
 0x141   : > { %v1298_v13 = vadd.f32 %v1297_v12, %v1296_v11 }
 0x143   : > { %v1300_v14 = vmul.f32 0.015625, %v1298_v13 }
 0x145   : > { %v1301_v15 = vsub.f32 %v1259_v42, %v1300_v14  ;;  %v1302_v16 = vsub.f32 %v1260_v23, %v1300_v14  ;;  %v1303_v17 = vsub.f32 %v1261_v44, %v1300_v14  ;;  %v1304_v18 = vsub.f32 %v1262_v50, %v1300_v14 }
 0x146   : > { %v1305_v36 = vsub.f32 %v1263_v56, %v1300_v14  ;;  %v1306_v39 = vsub.f32 %v1264_v63, %v1300_v14  ;;  %v1307_v21 = vsub.f32 %v1265_v31, %v1300_v14  ;;  %v1308_v35 = vsub.f32 %v1266_v6, %v1300_v14 }
 0x147   : > { %v1309_v19 = vmul.f32 %v1301_v15, %v1301_v15  ;;  %v1310_v34 = vmul.f32 %v1302_v16, %v1302_v16  ;;  %v1311_v37 = vmul.f32 %v1303_v17, %v1303_v17  ;;  %v1312_v20 = vmul.f32 %v1304_v18, %v1304_v18 }
 0x148   : > { %v1313_v22 = vmul.f32 %v1305_v36, %v1305_v36  ;;  %v1314_v40 = vmul.f32 %v1306_v39, %v1306_v39  ;;  %v1315_v43 = vmul.f32 %v1307_v21, %v1307_v21  ;;  %v1316_v42 = vmul.f32 %v1308_v35, %v1308_v35 }
 0x149   : > { %v1317_v38 = vadd.f32 %v1310_v34, %v1309_v19 }
 0x14b   : > { %v1318_v32 = vadd.f32 %v1317_v38, %v1311_v37 }
 0x14d   : > { %v1319_v33 = vadd.f32 %v1318_v32, %v1312_v20 }
 0x14f   : > { %v1320_v41 = vadd.f32 %v1319_v33, %v1313_v22 }
 0x151   : > { %v1321_v45 = vadd.f32 %v1320_v41, %v1314_v40 }
 0x153   : > { %v1322_v23 = vadd.f32 %v1321_v45, %v1315_v43 }
 0x155   : > { %v1323_v44 = vadd.f32 %v1322_v23, %v1316_v42 }
 0x157   : > { %v1324_v46 = vrot.slane %v1323_v44, 4 }
 0x159   : > { %v1325_v47 = vadd.f32 %v1324_v46, %v1323_v44 }
 0x15b   : > { %v1326_v48 = vrot.slane %v1325_v47, 2 }
 0x15d   : > { %v1327_v49 = vadd.f32 %v1326_v48, %v1325_v47 }
 0x15f   : > { %v1328_v24 = vrot.slane %v1327_v49, 1 }
 0x161   : > { %v1329_v25 = vadd.f32 %v1328_v24, %v1327_v49 }
 0x163   : > { %v1330_v26 = vmul.f32 0.015625, %v1329_v25 }
 0x165   : > { %v1331_v27 = vadd.f32 1e-05, %v1330_v26 }
 0x167   : > { %1918 = vrsqrt.f32 %v1331_v27 }
 0x174   : > { %v1919_v50 = vpop.eup %1918 }
 0x175   : > { %v1333_v51 = vmul.f32 %v1919_v50, %v1301_v15  ;;  %v1334_v52 = vmul.f32 %v1919_v50, %v1302_v16  ;;  %v1335_v53 = vmul.f32 %v1919_v50, %v1303_v17  ;;  %v1336_v54 = vmul.f32 %v1919_v50, %v1304_v18 }
 0x176   : > { %v1337_v55 = vmul.f32 %v1919_v50, %v1305_v36  ;;  %v1338_v56 = vmul.f32 %v1919_v50, %v1306_v39  ;;  %v1339_v57 = vmul.f32 %v1919_v50, %v1307_v21  ;;  %v1340_v58 = vmul.f32 %v1919_v50, %v1308_v35 }
 0x177   : > { %vm1341_vm0 = vcmp.ge.f32.partialorder %v1333_v51, 0.0  ;;  %vm1342_vm1 = vcmp.ge.f32.partialorder %v1334_v52, 0.0  ;;  %vm1343_vm2 = vcmp.ge.f32.partialorder %v1335_v53, 0.0  ;;  %vm1344_vm3 = vcmp.ge.f32.partialorder %v1336_v54, 0.0 }
 0x178   : > { %vm1345_vm4 = vcmp.ge.f32.partialorder %v1337_v55, 0.0  ;;  %vm1346_vm5 = vcmp.ge.f32.partialorder %v1338_v56, 0.0  ;;  %vm1347_vm6 = vcmp.ge.f32.partialorder %v1339_v57, 0.0  ;;  %vm1348_vm7 = vcmp.ge.f32.partialorder %v1340_v58, 0.0 }
 0x179   : > { %v1349_v59 = vmul.f32 0.2, %v1333_v51  ;;  %v1350_v60 = vmul.f32 0.2, %v1334_v52  ;;  %v1351_v61 = vmul.f32 0.2, %v1335_v53 }
 0x17a   : > { %v1352_v62 = vmul.f32 0.2, %v1336_v54  ;;  %v1353_v63 = vmul.f32 0.2, %v1337_v55  ;;  %v1354_v28 = vmul.f32 0.2, %v1338_v56 }
 0x17b   : > { %v1355_v30 = vmul.f32 0.2, %v1339_v57  ;;  %v1356_v0 = vmul.f32 0.2, %v1340_v58  ;;  %v1357_v29 = vsel %vm1341_vm0, %v1333_v51, %v1349_v59  ;;  %v1358_v31 = vsel %vm1342_vm1, %v1334_v52, %v1350_v60 }
 0x17c   : > { %v1359_v1 = vsel %vm1343_vm2, %v1335_v53, %v1351_v61  ;;  %v1360_v2 = vsel %vm1344_vm3, %v1336_v54, %v1352_v62  ;;  %v1361_v3 = vsel %vm1345_vm4, %v1337_v55, %v1353_v63  ;;  %v1362_v4 = vsel %vm1346_vm5, %v1338_v56, %v1354_v28 }
 0x17d   : > { %v1363_v5 = vsel %vm1347_vm6, %v1339_v57, %v1355_v30  ;;  %v1364_v6 = vsel %vm1348_vm7, %v1340_v58, %v1356_v0  ;;  %v1650_v7 = vpack.c.bf16 %v1358_v31, %v1357_v29  ;;  %v1655_v8 = vpack.c.bf16 %v1360_v2, %v1359_v1 }
 0x17e   : > { %v1660_v9 = vpack.c.bf16 %v1362_v4, %v1361_v3  ;;  %v1665_v10 = vpack.c.bf16 %v1364_v6, %v1363_v5 }
 0x17f   : > { %1651 = vst [vmem:[%s265_s25] sm:$0xff] %v1650_v7   ;;  %1667 = vst [vmem:[%s265_s25 + $0x8] sm:$0xff] %v1655_v8  }
 0x180   : > { %1668 = vst [vmem:[%s265_s25 + $0x10] sm:$0xff] %v1660_v9   ;;  %1669 = vst [vmem:[%s265_s25 + $0x18] sm:$0xff] %v1665_v10  }
 0x181 PF: > { %s13_s14 = sadd.s32 1, %s1942_s14   ;;  %s2269_s12 = smov %s1938_s13 }
 0x182   : > { %p10_p5 = scmp.ge.s32.totalorder %s13_s14, 4   ;;  %s2270_s13 = smov %s2272_s15 }
 0x184   :  { %12 = sbr.rel (!%p10_p5) target bundleno = 2 (0x2), region = 76 }

// kernel: discriminator_forward.6
= control target key start
LH: loop header
LB: loop body
LE: loop exit
PB: predicated region body
PF: predicated region fallthrough
CT: control target
= control target key end

     0   :  { %s3250_s12 = smov 0   ;;  %s3252_s13 = smov 0   ;;  %s4127_s0 = inlined_call_operand.vmem [shape: bf16[32,2048], index: 0, kind: input, shape index: {}]   ;;  %s4128_s1 = inlined_call_operand.vmem [shape: bf16[2048,256], index: 1, kind: input, shape index: {}]   ;;  %s4129_s2 = inlined_call_operand.vmem [shape: f32[1,256], index: 2, kind: input, shape index: {}]   ;;  %s4130_s3 = inlined_call_operand.vmem [shape: bf16[32,256], index: 3, kind: output, shape index: {}]  }
   0x1   :  { %s3254_s14 = smov 0  }
   0x2 LB: > { %s32_s15 = sadd.s32 1, %s3224_s13  ;;  %p2507_p0 = scmp.ge.s32.totalorder %s3228_s14, 1  ;;  %s3228_s14 = sphi %s3254_s14, %s13_s14   ;;  %s3224_s13 = sphi %s3252_s13, %s4132_s13   ;;  %s3220_s12 = sphi %s3250_s12, %s4131_s12  }
   0x3   : > { %p34_p1 = scmp.ge.s32.totalorder %s32_s15, 2  ;;  %p196_p2 = scmp.lt.s32.totalorder %s3228_s14, 3 }
   0x5   : > { %s4134_s15 = smov (%p34_p1, %s32_s15), 0  ;;  %p197_p3 = pnand %p2507_p0, %p196_p2 }
   0x6   : > { %s2508_s30 = sshll.u32 (!%p197_p3), %s3220_s12, 1 }
   0x7   : > { %200 = sbr.rel (%p197_p3) target bundleno = 534 (0x216), region = 32  ;;  %p246_p4 = scmp.lt.s32.totalorder (!%p197_p3), %s2508_s30, 3 }
   0xc   : > { %v2818_v0 = vld [vmem:[%s4128_s1 + $0x74] ss:$8 sps:$4 sm:$0xff]   ;;  %v2822_v2 = vld [vmem:[%s4128_s1 + $0x70] ss:$8 sps:$4 sm:$0xff]   ;;  %v2824_v4 = vld [vmem:[%s4128_s1 + $0x64] ss:$8 sps:$4 sm:$0xff]  }
   0xd   : > { %v2820_v1 = vld [vmem:[%s4128_s1 + $0x174] ss:$8 sps:$4 sm:$0xff]   ;;  %1941 = vmatprep.subr.bf16.mxu0 %v2818_v0  ;;  %v2823_v3 = vld [vmem:[%s4128_s1 + $0x170] ss:$8 sps:$4 sm:$0xff]   ;;  %v2826_v5 = vld [vmem:[%s4128_s1 + $0x164] ss:$8 sps:$4 sm:$0xff]  }
   0xe   : > { %1984 = vmatprep.subr.bf16.mxu1 %v2820_v1  ;;  %1942 = vmatpush1.bf16.msra.mxu0 %v2822_v2  ;;  %v2828_v6 = vld [vmem:[%s4128_s1 + $0x60] ss:$8 sps:$4 sm:$0xff]   ;;  %v2830_v8 = vld [vmem:[%s4128_s1 + $0x54] ss:$8 sps:$4 sm:$0xff]   ;;  %v2834_v10 = vld [vmem:[%s4128_s1 + $0x50] ss:$8 sps:$4 sm:$0xff]  }
   0xf   : > { %1985 = vmatpush1.bf16.msra.mxu1 %v2823_v3  ;;  %1943 = vmatprep.subr.bf16.mxu0 %v2824_v4  ;;  %v2829_v7 = vld [vmem:[%s4128_s1 + $0x160] ss:$8 sps:$4 sm:$0xff]   ;;  %v2832_v9 = vld [vmem:[%s4128_s1 + $0x154] ss:$8 sps:$4 sm:$0xff]   ;;  %v2835_v11 = vld [vmem:[%s4128_s1 + $0x150] ss:$8 sps:$4 sm:$0xff]  }
  0x10   : > { %1986 = vmatprep.subr.bf16.mxu1 %v2826_v5  ;;  %v2836_v12 = vld [vmem:[%s4128_s1 + $0x44] ss:$8 sps:$4 sm:$0xff]   ;;  %v2840_v14 = vld [vmem:[%s4128_s1 + $0x40] ss:$8 sps:$4 sm:$0xff]   ;;  %v2842_v16 = vld [vmem:[%s4128_s1 + $0x34] ss:$8 sps:$4 sm:$0xff]  }
  0x11   : > { %v2838_v13 = vld [vmem:[%s4128_s1 + $0x144] ss:$8 sps:$4 sm:$0xff]   ;;  %v2841_v15 = vld [vmem:[%s4128_s1 + $0x140] ss:$8 sps:$4 sm:$0xff]   ;;  %v2844_v17 = vld [vmem:[%s4128_s1 + $0x134] ss:$8 sps:$4 sm:$0xff]  }
  0x12   : > { %1944 = vmatpush1.bf16.msra.mxu0 %v2828_v6  ;;  %v2846_v18 = vld [vmem:[%s4128_s1 + $0x30] ss:$8 sps:$4 sm:$0xff]   ;;  %v2848_v20 = vld [vmem:[%s4128_s1 + $0x24] ss:$8 sps:$4 sm:$0xff]   ;;  %v2852_v22 = vld [vmem:[%s4128_s1 + $0x20] ss:$8 sps:$4 sm:$0xff]  }
  0x13   : > { %1987 = vmatpush1.bf16.msra.mxu1 %v2829_v7  ;;  %1945 = vmatprep.subr.bf16.mxu0 %v2830_v8  ;;  %v2847_v19 = vld [vmem:[%s4128_s1 + $0x130] ss:$8 sps:$4 sm:$0xff]   ;;  %v2850_v21 = vld [vmem:[%s4128_s1 + $0x124] ss:$8 sps:$4 sm:$0xff]   ;;  %v2853_v23 = vld [vmem:[%s4128_s1 + $0x120] ss:$8 sps:$4 sm:$0xff]  }
  0x14   : > { %1988 = vmatprep.subr.bf16.mxu1 %v2832_v9  ;;  %v2854_v24 = vld [vmem:[%s4128_s1 + $0x14] ss:$8 sps:$4 sm:$0xff]   ;;  %v2858_v26 = vld [vmem:[%s4128_s1 + $0x10] ss:$8 sps:$4 sm:$0xff]   ;;  %v2860_v28 = vld [vmem:[%s4128_s1 + $0x4] ss:$8 sps:$4 sm:$0xff]  }
  0x15   : > { %v2856_v25 = vld [vmem:[%s4128_s1 + $0x114] ss:$8 sps:$4 sm:$0xff]   ;;  %v2859_v27 = vld [vmem:[%s4128_s1 + $0x110] ss:$8 sps:$4 sm:$0xff]   ;;  %v2862_v29 = vld [vmem:[%s4128_s1 + $0x104] ss:$8 sps:$4 sm:$0xff]  }
  0x16   : > { %1946 = vmatpush1.bf16.msra.mxu0 %v2834_v10  ;;  %v2864_v30 = vld [vmem:[%s4128_s1] ss:$8 sps:$4 sm:$0xff]   ;;  %v2866_v32 = vld [vmem:[%s4128_s1 + $0xf4] ss:$8 sps:$4 sm:$0xff]   ;;  %v2870_v34 = vld [vmem:[%s4128_s1 + $0xf0] ss:$8 sps:$4 sm:$0xff]  }
  0x17   : > { %1989 = vmatpush1.bf16.msra.mxu1 %v2835_v11  ;;  %1947 = vmatprep.subr.bf16.mxu0 %v2836_v12  ;;  %v2865_v31 = vld [vmem:[%s4128_s1 + $0x100] ss:$8 sps:$4 sm:$0xff]   ;;  %v2868_v33 = vld [vmem:[%s4128_s1 + $0x1f4] ss:$8 sps:$4 sm:$0xff]   ;;  %v2871_v35 = vld [vmem:[%s4128_s1 + $0x1f0] ss:$8 sps:$4 sm:$0xff]  }
  0x18   : > { %1990 = vmatprep.subr.bf16.mxu1 %v2838_v13  ;;  %v2872_v36 = vld [vmem:[%s4128_s1 + $0xe4] ss:$8 sps:$4 sm:$0xff]   ;;  %s4136_s30 = smov (!%p246_p4, %s2508_s30), 3  ;;  %v2876_v38 = vld [vmem:[%s4128_s1 + $0xe0] ss:$8 sps:$4 sm:$0xff]  }
  0x19   : > { %v2874_v37 = vld [vmem:[%s4128_s1 + $0x1e4] ss:$8 sps:$4 sm:$0xff]   ;;  %v2877_v39 = vld [vmem:[%s4128_s1 + $0x1e0] ss:$8 sps:$4 sm:$0xff]   ;;  %v2878_v40 = vld [vmem:[%s4128_s1 + $0xd4] ss:$8 sps:$4 sm:$0xff]  }
  0x1a   : > { %1948 = vmatpush1.bf16.msra.mxu0 %v2840_v14  ;;  %s2790_s29 = sshll.u32 %s4136_s30, 6  ;;  %v2880_v41 = vld [vmem:[%s4128_s1 + $0x1d4] ss:$8 sps:$4 sm:$0xff]   ;;  %v2882_v42 = vld [vmem:[%s4128_s1 + $0xd0] ss:$8 sps:$4 sm:$0xff]   ;;  %s2791_s18 = sshll.u32 %s4136_s30, 3 }
  0x1b   : > { %1991 = vmatpush1.bf16.msra.mxu1 %v2841_v15  ;;  %1949 = vmatprep.subr.bf16.mxu0 %v2842_v16  ;;  %v2883_v43 = vld [vmem:[%s4128_s1 + $0x1d0] ss:$8 sps:$4 sm:$0xff]   ;;  %s3409_s12 = scalar_lea.vmem %s4127_s0, %s2790_s29  ;;  %v2884_v44 = vld [vmem:[%s4128_s1 + $0xc4] ss:$8 sps:$4 sm:$0xff]   ;;  %v2888_v46 = vld [vmem:[%s4128_s1 + $0xc0] ss:$8 sps:$4 sm:$0xff]   ;;  %s282_s21 = scalar_lea.vmem %s4130_s3, %s2791_s18 }
  0x1c   : > { %1992 = vmatprep.subr.bf16.mxu1 %v2844_v17  ;;  %v2886_v45 = vld [vmem:[%s4128_s1 + $0x1c4] ss:$8 sps:$4 sm:$0xff]   ;;  %v2889_v47 = vld [vmem:[%s4128_s1 + $0x1c0] ss:$8 sps:$4 sm:$0xff]   ;;  %v2890_v52 = vld [vmem:[%s4128_s1 + $0xb4] ss:$8 sps:$4 sm:$0xff]  }
  0x1d   : > { %v309_v48 = vld [vmem:[%s3409_s12] sm:$0xff]  ;;  %v310_v50 = vld [vmem:[%s3409_s12 + $0x8] sm:$0xff]  ;;  %v2892_v54 = vld [vmem:[%s4128_s1 + $0x1b4] ss:$8 sps:$4 sm:$0xff]  }
  0x1e   : > { %1950 = vmatpush1.bf16.msra.mxu0 %v2846_v18  ;;  %v317_v49 = vld [vmem:[%s3409_s12 + $0x40] sm:$0xff]  ;;  %v318_v51 = vld [vmem:[%s3409_s12 + $0x48] sm:$0xff]  ;;  %v2894_v56 = vld [vmem:[%s4128_s1 + $0xb0] ss:$8 sps:$4 sm:$0xff]  }
  0x1f   : > { %1993 = vmatpush1.bf16.msra.mxu1 %v2847_v19  ;;  %1951 = vmatprep.subr.bf16.mxu0 %v2848_v20  ;;  %v2515_v53 = vcombine.high %v309_v48, %v317_v49  ;;  %v2517_v55 = vcombine.high %v310_v50, %v318_v51  ;;  %v2895_v57 = vld [vmem:[%s4128_s1 + $0x1b0] ss:$8 sps:$4 sm:$0xff]   ;;  %v2896_v58 = vld [vmem:[%s4128_s1 + $0xa4] ss:$8 sps:$4 sm:$0xff]   ;;  %v2900_v60 = vld [vmem:[%s4128_s1 + $0xa0] ss:$8 sps:$4 sm:$0xff]   ;;  %v2514_v8 = vcombine.low %v309_v48, %v317_v49 }
  0x20   : > { %1994 = vmatprep.subr.bf16.mxu1 %v2850_v21  ;;  %v2898_v59 = vld [vmem:[%s4128_s1 + $0x1a4] ss:$8 sps:$4 sm:$0xff]   ;;  %v2901_v61 = vld [vmem:[%s4128_s1 + $0x1a0] ss:$8 sps:$4 sm:$0xff]   ;;  %v2902_v62 = vld [vmem:[%s4128_s1 + $0x94] ss:$8 sps:$4 sm:$0xff]   ;;  %v2516_v9 = vcombine.low %v310_v50, %v318_v51 }
  0x21   : > { %1973 = vmatprep.mubr.bf16.mxu0 %v2515_v53  ;;  %2016 = vmatprep.mubr.bf16.mxu1 %v2517_v55  ;;  %v2904_v63 = vld [vmem:[%s4128_s1 + $0x194] ss:$8 sps:$4 sm:$0xff]   ;;  %v2906_v0 = vld [vmem:[%s4128_s1 + $0x90] ss:$8 sps:$4 sm:$0xff]   ;;  %v2908_v2 = vld [vmem:[%s4128_s1 + $0x84] ss:$8 sps:$4 sm:$0xff]  }
  0x22   : > { %1952 = vmatpush1.bf16.msra.mxu0 %v2852_v22  ;;  %v2907_v1 = vld [vmem:[%s4128_s1 + $0x190] ss:$8 sps:$4 sm:$0xff]   ;;  %v2910_v3 = vld [vmem:[%s4128_s1 + $0x184] ss:$8 sps:$4 sm:$0xff]   ;;  %v2912_v4 = vld [vmem:[%s4128_s1 + $0x80] ss:$8 sps:$4 sm:$0xff]  }
  0x23   : > { %1995 = vmatpush1.bf16.msra.mxu1 %v2853_v23  ;;  %1953 = vmatprep.subr.bf16.mxu0 %v2854_v24  ;;  %v2913_v5 = vld [vmem:[%s4128_s1 + $0x180] ss:$8 sps:$4 sm:$0xff]   ;;  %v2916_v6 = vld [vmem:[%s4128_s1 + $0x274] ss:$8 sps:$4 sm:$0xff]   ;;  %v2914_v10 = vld [vmem:[%s4128_s1 + $0x270] ss:$8 sps:$4 sm:$0xff]  }
  0x24   : > { %1996 = vmatprep.subr.bf16.mxu1 %v2856_v25  ;;  %v2919_v7 = vld [vmem:[%s4128_s1 + $0x374] ss:$8 sps:$4 sm:$0xff]   ;;  %v2917_v11 = vld [vmem:[%s4128_s1 + $0x370] ss:$8 sps:$4 sm:$0xff]   ;;  %v2922_v12 = vld [vmem:[%s4128_s1 + $0x264] ss:$8 sps:$4 sm:$0xff]  }
  0x25   : > { %v2925_v13 = vld [vmem:[%s4128_s1 + $0x364] ss:$8 sps:$4 sm:$0xff]   ;;  %v2920_v14 = vld [vmem:[%s4128_s1 + $0x260] ss:$8 sps:$4 sm:$0xff]   ;;  %v2928_v16 = vld [vmem:[%s4128_s1 + $0x254] ss:$8 sps:$4 sm:$0xff]  }
  0x26   : > { %1954 = vmatpush1.bf16.msra.mxu0 %v2858_v26  ;;  %v2923_v15 = vld [vmem:[%s4128_s1 + $0x360] ss:$8 sps:$4 sm:$0xff]   ;;  %v2931_v17 = vld [vmem:[%s4128_s1 + $0x354] ss:$8 sps:$4 sm:$0xff]   ;;  %v2926_v18 = vld [vmem:[%s4128_s1 + $0x250] ss:$8 sps:$4 sm:$0xff]  }
  0x27   : > { %1997 = vmatpush1.bf16.msra.mxu1 %v2859_v27  ;;  %1955 = vmatprep.subr.bf16.mxu0 %v2860_v28  ;;  %v2929_v19 = vld [vmem:[%s4128_s1 + $0x350] ss:$8 sps:$4 sm:$0xff]   ;;  %v2934_v20 = vld [vmem:[%s4128_s1 + $0x244] ss:$8 sps:$4 sm:$0xff]   ;;  %v2932_v22 = vld [vmem:[%s4128_s1 + $0x240] ss:$8 sps:$4 sm:$0xff]  }
  0x28   : > { %1998 = vmatprep.subr.bf16.mxu1 %v2862_v29  ;;  %v2937_v21 = vld [vmem:[%s4128_s1 + $0x344] ss:$8 sps:$4 sm:$0xff]   ;;  %v2935_v23 = vld [vmem:[%s4128_s1 + $0x340] ss:$8 sps:$4 sm:$0xff]   ;;  %v2940_v24 = vld [vmem:[%s4128_s1 + $0x234] ss:$8 sps:$4 sm:$0xff]  }
  0x29   : > { %v2943_v25 = vld [vmem:[%s4128_s1 + $0x334] ss:$8 sps:$4 sm:$0xff]   ;;  %v2938_v26 = vld [vmem:[%s4128_s1 + $0x230] ss:$8 sps:$4 sm:$0xff]   ;;  %v2946_v28 = vld [vmem:[%s4128_s1 + $0x224] ss:$8 sps:$4 sm:$0xff]  }
  0x2a   : > { %1956 = vmatpush1.bf16.msra.mxu0 %v2864_v30  ;;  %v2941_v27 = vld [vmem:[%s4128_s1 + $0x330] ss:$8 sps:$4 sm:$0xff]   ;;  %v2949_v29 = vld [vmem:[%s4128_s1 + $0x324] ss:$8 sps:$4 sm:$0xff]   ;;  %v2944_v30 = vld [vmem:[%s4128_s1 + $0x220] ss:$8 sps:$4 sm:$0xff]  }
  0x2b   : > { %1999 = vmatpush1.bf16.msra.mxu1 %v2865_v31  ;;  %1957 = vmatprep.subr.bf16.mxu0 %v2866_v32  ;;  %v2947_v31 = vld [vmem:[%s4128_s1 + $0x320] ss:$8 sps:$4 sm:$0xff]   ;;  %v2952_v32 = vld [vmem:[%s4128_s1 + $0x214] ss:$8 sps:$4 sm:$0xff]   ;;  %v2962_v48 = vld [vmem:[%s4128_s1 + $0x2f0] ss:$8 sps:$4 sm:$0xff]  }
  0x2c   : > { %2000 = vmatprep.subr.bf16.mxu1 %v2868_v33  ;;  %v2955_v33 = vld [vmem:[%s4128_s1 + $0x314] ss:$8 sps:$4 sm:$0xff]   ;;  %v2965_v49 = vld [vmem:[%s4128_s1 + $0x3f0] ss:$8 sps:$4 sm:$0xff]   ;;  %v2970_v50 = vld [vmem:[%s4128_s1 + $0x2e4] ss:$8 sps:$4 sm:$0xff]  }
  0x2d   : > { %v2973_v51 = vld [vmem:[%s4128_s1 + $0x3e4] ss:$8 sps:$4 sm:$0xff]   ;;  %v2971_v53 = vld [vmem:[%s4128_s1 + $0x3e0] ss:$8 sps:$4 sm:$0xff]   ;;  %v2979_v55 = vld [vmem:[%s4128_s1 + $0x3d4] ss:$8 sps:$4 sm:$0xff]  }
  0x2e   : > { %1958 = vmatpush2.bf16.msra.mxu0 %v2870_v34  ;;  %v2950_v34 = vld [vmem:[%s4128_s1 + $0x210] ss:$8 sps:$4 sm:$0xff]  }
  0x2f   : > { %2001 = vmatpush2.bf16.msra.mxu1 %v2871_v35  ;;  %1959 = vmatprep.subr.bf16.mxu0 %v2872_v36  ;;  %v2953_v35 = vld [vmem:[%s4128_s1 + $0x310] ss:$8 sps:$4 sm:$0xff]  }
  0x30   : > { %2002 = vmatprep.subr.bf16.mxu1 %v2874_v37  ;;  %v3560_v36 = vld [vmem:[%s3409_s12 + $0x10] sm:$0xff] }
  0x31   : > { %v3563_v37 = vld [vmem:[%s3409_s12 + $0x50] sm:$0xff] }
  0x32   : > { %1960 = vmatpush2.bf16.msra.mxu0 %v2876_v38  ;;  %v3566_v38 = vld [vmem:[%s3409_s12 + $0x18] sm:$0xff] }
  0x33   : > { %2003 = vmatpush2.bf16.msra.mxu1 %v2877_v39  ;;  %1961 = vmatprep.subr.bf16.mxu0 %v2878_v40  ;;  %v3569_v39 = vld [vmem:[%s3409_s12 + $0x58] sm:$0xff]  ;;  %v2958_v40 = vld [vmem:[%s4128_s1 + $0x204] ss:$8 sps:$4 sm:$0xff]  }
  0x34   : > { %2004 = vmatprep.subr.bf16.mxu1 %v2880_v41  ;;  %v2519_v41 = vcombine.high %v3560_v36, %v3563_v37 }
  0x36   : > { %1962 = vmatpush2.bf16.msra.mxu0 %v2882_v42  ;;  %v2961_v42 = vld [vmem:[%s4128_s1 + $0x304] ss:$8 sps:$4 sm:$0xff]  }
  0x37   : > { %2005 = vmatpush2.bf16.msra.mxu1 %v2883_v43  ;;  %1963 = vmatprep.subr.bf16.mxu0 %v2884_v44  ;;  %v2521_v43 = vcombine.high %v3566_v38, %v3569_v39  ;;  %v2956_v44 = vld [vmem:[%s4128_s1 + $0x200] ss:$8 sps:$4 sm:$0xff]  }
  0x38   : > { %2006 = vmatprep.subr.bf16.mxu1 %v2886_v45  ;;  %v2959_v45 = vld [vmem:[%s4128_s1 + $0x300] ss:$8 sps:$4 sm:$0xff]  }
  0x3a   : > { %1964 = vmatpush2.bf16.msra.mxu0 %v2888_v46  ;;  %v2964_v46 = vld [vmem:[%s4128_s1 + $0x2f4] ss:$8 sps:$4 sm:$0xff]  }
  0x3b   : > { %2007 = vmatpush2.bf16.msra.mxu1 %v2889_v47  ;;  %1965 = vmatprep.subr.bf16.mxu0 %v2890_v52  ;;  %v2967_v47 = vld [vmem:[%s4128_s1 + $0x3f4] ss:$8 sps:$4 sm:$0xff]   ;;  %v2968_v52 = vld [vmem:[%s4128_s1 + $0x2e0] ss:$8 sps:$4 sm:$0xff]  }
  0x3c   : > { %2008 = vmatprep.subr.bf16.mxu1 %v2892_v54  ;;  %v2976_v54 = vld [vmem:[%s4128_s1 + $0x2d4] ss:$8 sps:$4 sm:$0xff]  }
  0x3e   : > { %1966 = vmatpush2.bf16.msra.mxu0 %v2894_v56  ;;  %v2974_v56 = vld [vmem:[%s4128_s1 + $0x2d0] ss:$8 sps:$4 sm:$0xff]  }
  0x3f   : > { %2009 = vmatpush2.bf16.msra.mxu1 %v2895_v57  ;;  %1967 = vmatprep.subr.bf16.mxu0 %v2896_v58  ;;  %v2977_v57 = vld [vmem:[%s4128_s1 + $0x3d0] ss:$8 sps:$4 sm:$0xff]   ;;  %v2982_v58 = vld [vmem:[%s4128_s1 + $0x2c4] ss:$8 sps:$4 sm:$0xff]  }
  0x40   : > { %2010 = vmatprep.subr.bf16.mxu1 %v2898_v59  ;;  %v2985_v59 = vld [vmem:[%s4128_s1 + $0x3c4] ss:$8 sps:$4 sm:$0xff]  }
  0x42   : > { %1968 = vmatpush2.bf16.msra.mxu0 %v2900_v60  ;;  %v2980_v60 = vld [vmem:[%s4128_s1 + $0x2c0] ss:$8 sps:$4 sm:$0xff]  }
  0x43   : > { %2011 = vmatpush2.bf16.msra.mxu1 %v2901_v61  ;;  %1969 = vmatprep.subr.bf16.mxu0 %v2902_v62  ;;  %v2983_v61 = vld [vmem:[%s4128_s1 + $0x3c0] ss:$8 sps:$4 sm:$0xff]   ;;  %v2988_v62 = vld [vmem:[%s4128_s1 + $0x2b4] ss:$8 sps:$4 sm:$0xff]  }
  0x44   : > { %2012 = vmatprep.subr.bf16.mxu1 %v2904_v63  ;;  %v2991_v63 = vld [vmem:[%s4128_s1 + $0x3b4] ss:$8 sps:$4 sm:$0xff]  }
  0x46   : > { %1970 = vmatpush2.bf16.msra.mxu0 %v2906_v0  ;;  %v2986_v0 = vld [vmem:[%s4128_s1 + $0x2b0] ss:$8 sps:$4 sm:$0xff]  }
  0x47   : > { %2013 = vmatpush2.bf16.msra.mxu1 %v2907_v1  ;;  %1971 = vmatprep.subr.bf16.mxu0 %v2908_v2  ;;  %v2989_v1 = vld [vmem:[%s4128_s1 + $0x3b0] ss:$8 sps:$4 sm:$0xff]   ;;  %v2994_v2 = vld [vmem:[%s4128_s1 + $0x2a4] ss:$8 sps:$4 sm:$0xff]  }
  0x48   : > { %2014 = vmatprep.subr.bf16.mxu1 %v2910_v3  ;;  %v2997_v3 = vld [vmem:[%s4128_s1 + $0x3a4] ss:$8 sps:$4 sm:$0xff]  }
  0x4a   : > { %1972 = vmatpush2.bf16.msra.mxu0 %v2912_v4  ;;  %v2992_v4 = vld [vmem:[%s4128_s1 + $0x2a0] ss:$8 sps:$4 sm:$0xff]  }
  0x4b   : > { %2015 = vmatpush2.bf16.msra.mxu1 %v2913_v5  ;;  %2027 = vmatprep.subr.bf16.mxu0 %v2916_v6  ;;  %v2995_v5 = vld [vmem:[%s4128_s1 + $0x3a0] ss:$8 sps:$4 sm:$0xff]   ;;  %v3000_v6 = vld [vmem:[%s4128_s1 + $0x294] ss:$8 sps:$4 sm:$0xff]  }
  0x4c   : > { %2070 = vmatprep.subr.bf16.mxu1 %v2919_v7  ;;  %v3003_v7 = vld [vmem:[%s4128_s1 + $0x394] ss:$8 sps:$4 sm:$0xff]  }
  0x4d   : > { %1974 = vmatmul.mubr.bf16.vlgmr.msra.gmra.mxu0 %v2514_v8  ;;  %v2998_v8 = vld [vmem:[%s4128_s1 + $0x290] ss:$8 sps:$4 sm:$0xff]  }
  0x4e   : > { %2017 = vmatmul.mubr.bf16.vlgmr.msra.gmra.mxu1 %v2516_v9  ;;  %2028 = vmatpush1.bf16.msra.mxu0 %v2914_v10  ;;  %v3001_v9 = vld [vmem:[%s4128_s1 + $0x390] ss:$8 sps:$4 sm:$0xff]   ;;  %v3006_v10 = vld [vmem:[%s4128_s1 + $0x284] ss:$8 sps:$4 sm:$0xff]  }
  0x4f   : > { %2071 = vmatpush1.bf16.msra.mxu1 %v2917_v11  ;;  %2029 = vmatprep.subr.bf16.mxu0 %v2922_v12  ;;  %v3009_v11 = vld [vmem:[%s4128_s1 + $0x384] ss:$8 sps:$4 sm:$0xff]   ;;  %v3004_v12 = vld [vmem:[%s4128_s1 + $0x280] ss:$8 sps:$4 sm:$0xff]  }
  0x50   : > { %2072 = vmatprep.subr.bf16.mxu1 %v2925_v13  ;;  %2059 = vmatprep.mubr.bf16.mxu0 %v2519_v41  ;;  %v3007_v13 = vld [vmem:[%s4128_s1 + $0x380] ss:$8 sps:$4 sm:$0xff]   ;;  %v3037_v41 = vld [vmem:[%s4128_s1 + $0x530] ss:$8 sps:$4 sm:$0xff]  }
  0x51   : > { %2102 = vmatprep.mubr.bf16.mxu1 %v2521_v43  ;;  %v3045_v43 = vld [vmem:[%s4128_s1 + $0x524] ss:$8 sps:$4 sm:$0xff]  }
  0x52   : > { %2030 = vmatpush1.bf16.msra.mxu0 %v2920_v14  ;;  %v3012_v14 = vld [vmem:[%s4128_s1 + $0x474] ss:$8 sps:$4 sm:$0xff]  }
  0x53   : > { %2073 = vmatpush1.bf16.msra.mxu1 %v2923_v15  ;;  %2031 = vmatprep.subr.bf16.mxu0 %v2928_v16  ;;  %v3015_v15 = vld [vmem:[%s4128_s1 + $0x574] ss:$8 sps:$4 sm:$0xff]   ;;  %v2518_v16 = vcombine.low %v3560_v36, %v3563_v37  ;;  %v3028_v36 = vld [vmem:[%s4128_s1 + $0x440] ss:$8 sps:$4 sm:$0xff]  }
  0x54   : > { %2074 = vmatprep.subr.bf16.mxu1 %v2931_v17  ;;  %v2520_v17 = vcombine.low %v3566_v38, %v3569_v39  ;;  %v3031_v37 = vld [vmem:[%s4128_s1 + $0x540] ss:$8 sps:$4 sm:$0xff]   ;;  %v3036_v38 = vld [vmem:[%s4128_s1 + $0x434] ss:$8 sps:$4 sm:$0xff]  }
  0x55   : > { %v3039_v39 = vld [vmem:[%s4128_s1 + $0x534] ss:$8 sps:$4 sm:$0xff]  }
  0x56   : > { %2032 = vmatpush1.bf16.msra.mxu0 %v2926_v18  ;;  %v3010_v18 = vld [vmem:[%s4128_s1 + $0x470] ss:$8 sps:$4 sm:$0xff]  }
  0x57   : > { %2075 = vmatpush1.bf16.msra.mxu1 %v2929_v19  ;;  %2033 = vmatprep.subr.bf16.mxu0 %v2934_v20  ;;  %v3013_v19 = vld [vmem:[%s4128_s1 + $0x570] ss:$8 sps:$4 sm:$0xff]   ;;  %v3018_v20 = vld [vmem:[%s4128_s1 + $0x464] ss:$8 sps:$4 sm:$0xff]  }
  0x58   : > { %2076 = vmatprep.subr.bf16.mxu1 %v2937_v21  ;;  %v3021_v21 = vld [vmem:[%s4128_s1 + $0x564] ss:$8 sps:$4 sm:$0xff]  }
  0x5a   : > { %2034 = vmatpush1.bf16.msra.mxu0 %v2932_v22  ;;  %v3016_v22 = vld [vmem:[%s4128_s1 + $0x460] ss:$8 sps:$4 sm:$0xff]  }
  0x5b   : > { %2077 = vmatpush1.bf16.msra.mxu1 %v2935_v23  ;;  %2035 = vmatprep.subr.bf16.mxu0 %v2940_v24  ;;  %v3019_v23 = vld [vmem:[%s4128_s1 + $0x560] ss:$8 sps:$4 sm:$0xff]  }
  0x5c   : > { %2078 = vmatprep.subr.bf16.mxu1 %v2943_v25  ;;  %v3712_v24 = vld [vmem:[%s3409_s12 + $0x20] sm:$0xff] }
  0x5d   : > { %v3715_v25 = vld [vmem:[%s3409_s12 + $0x60] sm:$0xff] }
  0x5e   : > { %2036 = vmatpush1.bf16.msra.mxu0 %v2938_v26  ;;  %v3718_v26 = vld [vmem:[%s3409_s12 + $0x28] sm:$0xff] }
  0x5f   : > { %2079 = vmatpush1.bf16.msra.mxu1 %v2941_v27  ;;  %2037 = vmatprep.subr.bf16.mxu0 %v2946_v28  ;;  %v3721_v27 = vld [vmem:[%s3409_s12 + $0x68] sm:$0xff]  ;;  %v3024_v28 = vld [vmem:[%s4128_s1 + $0x454] ss:$8 sps:$4 sm:$0xff]  }
  0x60   : > { %2080 = vmatprep.subr.bf16.mxu1 %v2949_v29  ;;  %v2523_v29 = vcombine.high %v3712_v24, %v3715_v25 }
  0x62   : > { %2038 = vmatpush1.bf16.msra.mxu0 %v2944_v30  ;;  %v3027_v30 = vld [vmem:[%s4128_s1 + $0x554] ss:$8 sps:$4 sm:$0xff]  }
  0x63   : > { %2081 = vmatpush1.bf16.msra.mxu1 %v2947_v31  ;;  %2039 = vmatprep.subr.bf16.mxu0 %v2952_v32  ;;  %v2525_v31 = vcombine.high %v3718_v26, %v3721_v27  ;;  %v3022_v32 = vld [vmem:[%s4128_s1 + $0x450] ss:$8 sps:$4 sm:$0xff]  }
  0x64   : > { %2082 = vmatprep.subr.bf16.mxu1 %v2955_v33  ;;  %v3025_v33 = vld [vmem:[%s4128_s1 + $0x550] ss:$8 sps:$4 sm:$0xff]  }
  0x66   : > { %2040 = vmatpush1.bf16.msra.mxu0 %v2950_v34  ;;  %v3030_v34 = vld [vmem:[%s4128_s1 + $0x444] ss:$8 sps:$4 sm:$0xff]  }
  0x67   : > { %2083 = vmatpush1.bf16.msra.mxu1 %v2953_v35  ;;  %2041 = vmatprep.subr.bf16.mxu0 %v2958_v40  ;;  %v3033_v35 = vld [vmem:[%s4128_s1 + $0x544] ss:$8 sps:$4 sm:$0xff]   ;;  %v3034_v40 = vld [vmem:[%s4128_s1 + $0x430] ss:$8 sps:$4 sm:$0xff]  }
  0x68   : > { %2084 = vmatprep.subr.bf16.mxu1 %v2961_v42  ;;  %v3042_v42 = vld [vmem:[%s4128_s1 + $0x424] ss:$8 sps:$4 sm:$0xff]  }
  0x6a   : > { %2042 = vmatpush1.bf16.msra.mxu0 %v2956_v44  ;;  %v3040_v44 = vld [vmem:[%s4128_s1 + $0x420] ss:$8 sps:$4 sm:$0xff]  }
  0x6b   : > { %2085 = vmatpush1.bf16.msra.mxu1 %v2959_v45  ;;  %2043 = vmatprep.subr.bf16.mxu0 %v2964_v46  ;;  %v3043_v45 = vld [vmem:[%s4128_s1 + $0x520] ss:$8 sps:$4 sm:$0xff]   ;;  %v3048_v46 = vld [vmem:[%s4128_s1 + $0x414] ss:$8 sps:$4 sm:$0xff]  }
  0x6c   : > { %2086 = vmatprep.subr.bf16.mxu1 %v2967_v47  ;;  %v3051_v47 = vld [vmem:[%s4128_s1 + $0x514] ss:$8 sps:$4 sm:$0xff]  }
  0x6e   : > { %2044 = vmatpush2.bf16.msra.mxu0 %v2962_v48  ;;  %v3046_v48 = vld [vmem:[%s4128_s1 + $0x410] ss:$8 sps:$4 sm:$0xff]  }
  0x6f   : > { %2087 = vmatpush2.bf16.msra.mxu1 %v2965_v49  ;;  %2045 = vmatprep.subr.bf16.mxu0 %v2970_v50  ;;  %v3049_v49 = vld [vmem:[%s4128_s1 + $0x510] ss:$8 sps:$4 sm:$0xff]   ;;  %v3054_v50 = vld [vmem:[%s4128_s1 + $0x404] ss:$8 sps:$4 sm:$0xff]  }
  0x70   : > { %2088 = vmatprep.subr.bf16.mxu1 %v2973_v51  ;;  %v3057_v51 = vld [vmem:[%s4128_s1 + $0x504] ss:$8 sps:$4 sm:$0xff]  }
  0x72   : > { %2046 = vmatpush2.bf16.msra.mxu0 %v2968_v52  ;;  %v3052_v52 = vld [vmem:[%s4128_s1 + $0x400] ss:$8 sps:$4 sm:$0xff]  }
  0x73   : > { %2089 = vmatpush2.bf16.msra.mxu1 %v2971_v53  ;;  %2047 = vmatprep.subr.bf16.mxu0 %v2976_v54  ;;  %v3055_v53 = vld [vmem:[%s4128_s1 + $0x500] ss:$8 sps:$4 sm:$0xff]   ;;  %v3060_v54 = vld [vmem:[%s4128_s1 + $0x4f4] ss:$8 sps:$4 sm:$0xff]  }
  0x74   : > { %2090 = vmatprep.subr.bf16.mxu1 %v2979_v55  ;;  %v3063_v55 = vld [vmem:[%s4128_s1 + $0x5f4] ss:$8 sps:$4 sm:$0xff]  }
  0x76   : > { %2048 = vmatpush2.bf16.msra.mxu0 %v2974_v56  ;;  %v3058_v56 = vld [vmem:[%s4128_s1 + $0x4f0] ss:$8 sps:$4 sm:$0xff]  }
  0x77   : > { %2091 = vmatpush2.bf16.msra.mxu1 %v2977_v57  ;;  %2049 = vmatprep.subr.bf16.mxu0 %v2982_v58  ;;  %v3061_v57 = vld [vmem:[%s4128_s1 + $0x5f0] ss:$8 sps:$4 sm:$0xff]   ;;  %v3066_v58 = vld [vmem:[%s4128_s1 + $0x4e4] ss:$8 sps:$4 sm:$0xff]  }
  0x78   : > { %2092 = vmatprep.subr.bf16.mxu1 %v2985_v59  ;;  %v3069_v59 = vld [vmem:[%s4128_s1 + $0x5e4] ss:$8 sps:$4 sm:$0xff]  }
  0x7a   : > { %2050 = vmatpush2.bf16.msra.mxu0 %v2980_v60  ;;  %v3064_v60 = vld [vmem:[%s4128_s1 + $0x4e0] ss:$8 sps:$4 sm:$0xff]  }
  0x7b   : > { %2093 = vmatpush2.bf16.msra.mxu1 %v2983_v61  ;;  %2051 = vmatprep.subr.bf16.mxu0 %v2988_v62  ;;  %v3067_v61 = vld [vmem:[%s4128_s1 + $0x5e0] ss:$8 sps:$4 sm:$0xff]   ;;  %v3072_v62 = vld [vmem:[%s4128_s1 + $0x4d4] ss:$8 sps:$4 sm:$0xff]  }
  0x7c   : > { %2094 = vmatprep.subr.bf16.mxu1 %v2991_v63  ;;  %v3075_v63 = vld [vmem:[%s4128_s1 + $0x5d4] ss:$8 sps:$4 sm:$0xff]  }
  0x7e   : > { %2052 = vmatpush2.bf16.msra.mxu0 %v2986_v0  ;;  %v3070_v0 = vld [vmem:[%s4128_s1 + $0x4d0] ss:$8 sps:$4 sm:$0xff]  }
  0x7f   : > { %2095 = vmatpush2.bf16.msra.mxu1 %v2989_v1  ;;  %2053 = vmatprep.subr.bf16.mxu0 %v2994_v2  ;;  %v3073_v1 = vld [vmem:[%s4128_s1 + $0x5d0] ss:$8 sps:$4 sm:$0xff]   ;;  %v3078_v2 = vld [vmem:[%s4128_s1 + $0x4c4] ss:$8 sps:$4 sm:$0xff]  }
  0x80   : > { %2096 = vmatprep.subr.bf16.mxu1 %v2997_v3  ;;  %v3081_v3 = vld [vmem:[%s4128_s1 + $0x5c4] ss:$8 sps:$4 sm:$0xff]  }
  0x82   : > { %2054 = vmatpush2.bf16.msra.mxu0 %v2992_v4  ;;  %v3076_v4 = vld [vmem:[%s4128_s1 + $0x4c0] ss:$8 sps:$4 sm:$0xff]  }
  0x83   : > { %2097 = vmatpush2.bf16.msra.mxu1 %v2995_v5  ;;  %2055 = vmatprep.subr.bf16.mxu0 %v3000_v6  ;;  %v3079_v5 = vld [vmem:[%s4128_s1 + $0x5c0] ss:$8 sps:$4 sm:$0xff]   ;;  %v3084_v6 = vld [vmem:[%s4128_s1 + $0x4b4] ss:$8 sps:$4 sm:$0xff]  }
  0x84   : > { %2098 = vmatprep.subr.bf16.mxu1 %v3003_v7  ;;  %v3087_v7 = vld [vmem:[%s4128_s1 + $0x5b4] ss:$8 sps:$4 sm:$0xff]  }
  0x86   : > { %2056 = vmatpush2.bf16.msra.mxu0 %v2998_v8  ;;  %v3082_v8 = vld [vmem:[%s4128_s1 + $0x4b0] ss:$8 sps:$4 sm:$0xff]  }
  0x87   : > { %2099 = vmatpush2.bf16.msra.mxu1 %v3001_v9  ;;  %2057 = vmatprep.subr.bf16.mxu0 %v3006_v10  ;;  %v3085_v9 = vld [vmem:[%s4128_s1 + $0x5b0] ss:$8 sps:$4 sm:$0xff]   ;;  %v3090_v10 = vld [vmem:[%s4128_s1 + $0x4a4] ss:$8 sps:$4 sm:$0xff]  }
  0x88   : > { %2100 = vmatprep.subr.bf16.mxu1 %v3009_v11  ;;  %v3093_v11 = vld [vmem:[%s4128_s1 + $0x5a4] ss:$8 sps:$4 sm:$0xff]  }
  0x8a   : > { %2058 = vmatpush2.bf16.msra.mxu0 %v3004_v12  ;;  %v3088_v12 = vld [vmem:[%s4128_s1 + $0x4a0] ss:$8 sps:$4 sm:$0xff]  }
  0x8b   : > { %2101 = vmatpush2.bf16.msra.mxu1 %v3007_v13  ;;  %2113 = vmatprep.subr.bf16.mxu0 %v3012_v14  ;;  %v3091_v13 = vld [vmem:[%s4128_s1 + $0x5a0] ss:$8 sps:$4 sm:$0xff]   ;;  %v3096_v14 = vld [vmem:[%s4128_s1 + $0x494] ss:$8 sps:$4 sm:$0xff]  }
  0x8c   : > { %2156 = vmatprep.subr.bf16.mxu1 %v3015_v15  ;;  %v3099_v15 = vld [vmem:[%s4128_s1 + $0x594] ss:$8 sps:$4 sm:$0xff]  }
  0x8d   : > { %2060 = vmatmul.mubr.bf16.vlgmr.msra.gmra.mxu0 %v2518_v16  ;;  %v3094_v16 = vld [vmem:[%s4128_s1 + $0x490] ss:$8 sps:$4 sm:$0xff]  }
  0x8e   : > { %2103 = vmatmul.mubr.bf16.vlgmr.msra.gmra.mxu1 %v2520_v17  ;;  %2114 = vmatpush1.bf16.msra.mxu0 %v3010_v18  ;;  %v3097_v17 = vld [vmem:[%s4128_s1 + $0x590] ss:$8 sps:$4 sm:$0xff]   ;;  %v3102_v18 = vld [vmem:[%s4128_s1 + $0x484] ss:$8 sps:$4 sm:$0xff]  }
  0x8f   : > { %2157 = vmatpush1.bf16.msra.mxu1 %v3013_v19  ;;  %2115 = vmatprep.subr.bf16.mxu0 %v3018_v20  ;;  %v3105_v19 = vld [vmem:[%s4128_s1 + $0x584] ss:$8 sps:$4 sm:$0xff]   ;;  %v3100_v20 = vld [vmem:[%s4128_s1 + $0x480] ss:$8 sps:$4 sm:$0xff]  }
  0x90   : > { %2158 = vmatprep.subr.bf16.mxu1 %v3021_v21  ;;  %2145 = vmatprep.mubr.bf16.mxu0 %v2523_v29  ;;  %v3103_v21 = vld [vmem:[%s4128_s1 + $0x580] ss:$8 sps:$4 sm:$0xff]   ;;  %v2522_v29 = vcombine.low %v3712_v24, %v3715_v25  ;;  %v3114_v24 = vld [vmem:[%s4128_s1 + $0x664] ss:$8 sps:$4 sm:$0xff]  }
  0x91   : > { %2188 = vmatprep.mubr.bf16.mxu1 %v2525_v31  ;;  %v3909_v31 = vld [vmem:[%s3409_s12 + $0x70] sm:$0xff]  ;;  %v3117_v25 = vld [vmem:[%s4128_s1 + $0x764] ss:$8 sps:$4 sm:$0xff]  }
  0x92   : > { %2116 = vmatpush1.bf16.msra.mxu0 %v3016_v22  ;;  %v3108_v22 = vld [vmem:[%s4128_s1 + $0x674] ss:$8 sps:$4 sm:$0xff]  }
  0x93   : > { %2159 = vmatpush1.bf16.msra.mxu1 %v3019_v23  ;;  %2117 = vmatprep.subr.bf16.mxu0 %v3024_v28  ;;  %v3111_v23 = vld [vmem:[%s4128_s1 + $0x774] ss:$8 sps:$4 sm:$0xff]  }
  0x94   : > { %2160 = vmatprep.subr.bf16.mxu1 %v3027_v30  ;;  %v3902_v28 = vld [vmem:[%s3409_s12 + $0x30] sm:$0xff]  ;;  %v2524_v30 = vcombine.low %v3718_v26, %v3721_v27 }
  0x95   : > { %v2527_v26 = vcombine.high %v3902_v28, %v3909_v31 }
  0x96   : > { %2118 = vmatpush1.bf16.msra.mxu0 %v3022_v32  ;;  %v3912_v32 = vld [vmem:[%s3409_s12 + $0x38] sm:$0xff] }
  0x97   : > { %2161 = vmatpush1.bf16.msra.mxu1 %v3025_v33  ;;  %2119 = vmatprep.subr.bf16.mxu0 %v3030_v34  ;;  %v3915_v33 = vld [vmem:[%s3409_s12 + $0x78] sm:$0xff] }
  0x98   : > { %2162 = vmatprep.subr.bf16.mxu1 %v3033_v35  ;;  %v3106_v34 = vld [vmem:[%s4128_s1 + $0x670] ss:$8 sps:$4 sm:$0xff]   ;;  %v2529_v27 = vcombine.high %v3912_v32, %v3915_v33 }
  0x99   : > { %v3109_v35 = vld [vmem:[%s4128_s1 + $0x770] ss:$8 sps:$4 sm:$0xff]  }
  0x9a   : > { %2120 = vmatpush1.bf16.msra.mxu0 %v3028_v36  ;;  %v3112_v36 = vld [vmem:[%s4128_s1 + $0x660] ss:$8 sps:$4 sm:$0xff]  }
  0x9b   : > { %2163 = vmatpush1.bf16.msra.mxu1 %v3031_v37  ;;  %2121 = vmatprep.subr.bf16.mxu0 %v3036_v38  ;;  %v3115_v37 = vld [vmem:[%s4128_s1 + $0x760] ss:$8 sps:$4 sm:$0xff]   ;;  %v3120_v38 = vld [vmem:[%s4128_s1 + $0x654] ss:$8 sps:$4 sm:$0xff]  }
  0x9c   : > { %2164 = vmatprep.subr.bf16.mxu1 %v3039_v39  ;;  %v3123_v39 = vld [vmem:[%s4128_s1 + $0x754] ss:$8 sps:$4 sm:$0xff]  }
  0x9e   : > { %2122 = vmatpush1.bf16.msra.mxu0 %v3034_v40  ;;  %v3118_v40 = vld [vmem:[%s4128_s1 + $0x650] ss:$8 sps:$4 sm:$0xff]  }
  0x9f   : > { %2165 = vmatpush1.bf16.msra.mxu1 %v3037_v41  ;;  %2123 = vmatprep.subr.bf16.mxu0 %v3042_v42  ;;  %v3121_v41 = vld [vmem:[%s4128_s1 + $0x750] ss:$8 sps:$4 sm:$0xff]   ;;  %v3126_v42 = vld [vmem:[%s4128_s1 + $0x644] ss:$8 sps:$4 sm:$0xff]  }
  0xa0   : > { %2166 = vmatprep.subr.bf16.mxu1 %v3045_v43  ;;  %v3129_v43 = vld [vmem:[%s4128_s1 + $0x744] ss:$8 sps:$4 sm:$0xff]  }
  0xa2   : > { %2124 = vmatpush1.bf16.msra.mxu0 %v3040_v44  ;;  %v3124_v44 = vld [vmem:[%s4128_s1 + $0x640] ss:$8 sps:$4 sm:$0xff]  }
  0xa3   : > { %2167 = vmatpush1.bf16.msra.mxu1 %v3043_v45  ;;  %2125 = vmatprep.subr.bf16.mxu0 %v3048_v46  ;;  %v3127_v45 = vld [vmem:[%s4128_s1 + $0x740] ss:$8 sps:$4 sm:$0xff]   ;;  %v3132_v46 = vld [vmem:[%s4128_s1 + $0x634] ss:$8 sps:$4 sm:$0xff]  }
  0xa4   : > { %2168 = vmatprep.subr.bf16.mxu1 %v3051_v47  ;;  %v3135_v47 = vld [vmem:[%s4128_s1 + $0x734] ss:$8 sps:$4 sm:$0xff]  }
  0xa6   : > { %2126 = vmatpush1.bf16.msra.mxu0 %v3046_v48  ;;  %v3130_v48 = vld [vmem:[%s4128_s1 + $0x630] ss:$8 sps:$4 sm:$0xff]  }
  0xa7   : > { %2169 = vmatpush1.bf16.msra.mxu1 %v3049_v49  ;;  %2127 = vmatprep.subr.bf16.mxu0 %v3054_v50  ;;  %v3133_v49 = vld [vmem:[%s4128_s1 + $0x730] ss:$8 sps:$4 sm:$0xff]   ;;  %v3138_v50 = vld [vmem:[%s4128_s1 + $0x624] ss:$8 sps:$4 sm:$0xff]  }
  0xa8   : > { %2170 = vmatprep.subr.bf16.mxu1 %v3057_v51  ;;  %v3141_v51 = vld [vmem:[%s4128_s1 + $0x724] ss:$8 sps:$4 sm:$0xff]  }
  0xaa   : > { %2128 = vmatpush1.bf16.msra.mxu0 %v3052_v52  ;;  %v3136_v52 = vld [vmem:[%s4128_s1 + $0x620] ss:$8 sps:$4 sm:$0xff]  }
  0xab   : > { %2171 = vmatpush1.bf16.msra.mxu1 %v3055_v53  ;;  %2129 = vmatprep.subr.bf16.mxu0 %v3060_v54  ;;  %v3139_v53 = vld [vmem:[%s4128_s1 + $0x720] ss:$8 sps:$4 sm:$0xff]   ;;  %v3144_v54 = vld [vmem:[%s4128_s1 + $0x614] ss:$8 sps:$4 sm:$0xff]  }
  0xac   : > { %2172 = vmatprep.subr.bf16.mxu1 %v3063_v55  ;;  %v3147_v55 = vld [vmem:[%s4128_s1 + $0x714] ss:$8 sps:$4 sm:$0xff]  }
  0xae   : > { %2130 = vmatpush2.bf16.msra.mxu0 %v3058_v56  ;;  %v3142_v56 = vld [vmem:[%s4128_s1 + $0x610] ss:$8 sps:$4 sm:$0xff]  }
  0xaf   : > { %2173 = vmatpush2.bf16.msra.mxu1 %v3061_v57  ;;  %2131 = vmatprep.subr.bf16.mxu0 %v3066_v58  ;;  %v3145_v57 = vld [vmem:[%s4128_s1 + $0x710] ss:$8 sps:$4 sm:$0xff]   ;;  %v3150_v58 = vld [vmem:[%s4128_s1 + $0x604] ss:$8 sps:$4 sm:$0xff]  }
  0xb0   : > { %2174 = vmatprep.subr.bf16.mxu1 %v3069_v59  ;;  %v3153_v59 = vld [vmem:[%s4128_s1 + $0x704] ss:$8 sps:$4 sm:$0xff]  }
  0xb2   : > { %2132 = vmatpush2.bf16.msra.mxu0 %v3064_v60  ;;  %v3148_v60 = vld [vmem:[%s4128_s1 + $0x600] ss:$8 sps:$4 sm:$0xff]  }
  0xb3   : > { %2175 = vmatpush2.bf16.msra.mxu1 %v3067_v61  ;;  %2133 = vmatprep.subr.bf16.mxu0 %v3072_v62  ;;  %v3151_v61 = vld [vmem:[%s4128_s1 + $0x700] ss:$8 sps:$4 sm:$0xff]   ;;  %v3156_v62 = vld [vmem:[%s4128_s1 + $0x6f4] ss:$8 sps:$4 sm:$0xff]  }
  0xb4   : > { %2176 = vmatprep.subr.bf16.mxu1 %v3075_v63  ;;  %v3159_v63 = vld [vmem:[%s4128_s1 + $0x7f4] ss:$8 sps:$4 sm:$0xff]  }
  0xb6   : > { %2134 = vmatpush2.bf16.msra.mxu0 %v3070_v0  ;;  %v3154_v0 = vld [vmem:[%s4128_s1 + $0x6f0] ss:$8 sps:$4 sm:$0xff]  }
  0xb7   : > { %2177 = vmatpush2.bf16.msra.mxu1 %v3073_v1  ;;  %2135 = vmatprep.subr.bf16.mxu0 %v3078_v2  ;;  %v3157_v1 = vld [vmem:[%s4128_s1 + $0x7f0] ss:$8 sps:$4 sm:$0xff]   ;;  %v3162_v2 = vld [vmem:[%s4128_s1 + $0x6e4] ss:$8 sps:$4 sm:$0xff]  }
  0xb8   : > { %2178 = vmatprep.subr.bf16.mxu1 %v3081_v3  ;;  %v3165_v3 = vld [vmem:[%s4128_s1 + $0x7e4] ss:$8 sps:$4 sm:$0xff]  }
  0xba   : > { %2136 = vmatpush2.bf16.msra.mxu0 %v3076_v4  ;;  %v3160_v4 = vld [vmem:[%s4128_s1 + $0x6e0] ss:$8 sps:$4 sm:$0xff]  }
  0xbb   : > { %2179 = vmatpush2.bf16.msra.mxu1 %v3079_v5  ;;  %2137 = vmatprep.subr.bf16.mxu0 %v3084_v6  ;;  %v3163_v5 = vld [vmem:[%s4128_s1 + $0x7e0] ss:$8 sps:$4 sm:$0xff]   ;;  %v3168_v6 = vld [vmem:[%s4128_s1 + $0x6d4] ss:$8 sps:$4 sm:$0xff]  }
  0xbc   : > { %2180 = vmatprep.subr.bf16.mxu1 %v3087_v7  ;;  %v3171_v7 = vld [vmem:[%s4128_s1 + $0x7d4] ss:$8 sps:$4 sm:$0xff]  }
  0xbe   : > { %2138 = vmatpush2.bf16.msra.mxu0 %v3082_v8  ;;  %v3166_v8 = vld [vmem:[%s4128_s1 + $0x6d0] ss:$8 sps:$4 sm:$0xff]  }
  0xbf   : > { %2181 = vmatpush2.bf16.msra.mxu1 %v3085_v9  ;;  %2139 = vmatprep.subr.bf16.mxu0 %v3090_v10  ;;  %v3169_v9 = vld [vmem:[%s4128_s1 + $0x7d0] ss:$8 sps:$4 sm:$0xff]   ;;  %v3174_v10 = vld [vmem:[%s4128_s1 + $0x6c4] ss:$8 sps:$4 sm:$0xff]  }
  0xc0   : > { %2182 = vmatprep.subr.bf16.mxu1 %v3093_v11  ;;  %v3177_v11 = vld [vmem:[%s4128_s1 + $0x7c4] ss:$8 sps:$4 sm:$0xff]  }
  0xc2   : > { %2140 = vmatpush2.bf16.msra.mxu0 %v3088_v12  ;;  %v3172_v12 = vld [vmem:[%s4128_s1 + $0x6c0] ss:$8 sps:$4 sm:$0xff]  }
  0xc3   : > { %2183 = vmatpush2.bf16.msra.mxu1 %v3091_v13  ;;  %2141 = vmatprep.subr.bf16.mxu0 %v3096_v14  ;;  %v3175_v13 = vld [vmem:[%s4128_s1 + $0x7c0] ss:$8 sps:$4 sm:$0xff]   ;;  %v3180_v14 = vld [vmem:[%s4128_s1 + $0x6b4] ss:$8 sps:$4 sm:$0xff]  }
  0xc4   : > { %2184 = vmatprep.subr.bf16.mxu1 %v3099_v15  ;;  %v3183_v15 = vld [vmem:[%s4128_s1 + $0x7b4] ss:$8 sps:$4 sm:$0xff]  }
  0xc6   : > { %2142 = vmatpush2.bf16.msra.mxu0 %v3094_v16  ;;  %v3178_v16 = vld [vmem:[%s4128_s1 + $0x6b0] ss:$8 sps:$4 sm:$0xff]  }
  0xc7   : > { %2185 = vmatpush2.bf16.msra.mxu1 %v3097_v17  ;;  %2143 = vmatprep.subr.bf16.mxu0 %v3102_v18  ;;  %v3181_v17 = vld [vmem:[%s4128_s1 + $0x7b0] ss:$8 sps:$4 sm:$0xff]   ;;  %v3186_v18 = vld [vmem:[%s4128_s1 + $0x6a4] ss:$8 sps:$4 sm:$0xff]  }
  0xc8   : > { %2186 = vmatprep.subr.bf16.mxu1 %v3105_v19  ;;  %v3189_v19 = vld [vmem:[%s4128_s1 + $0x7a4] ss:$8 sps:$4 sm:$0xff]  }
  0xca   : > { %2144 = vmatpush2.bf16.msra.mxu0 %v3100_v20  ;;  %v3184_v20 = vld [vmem:[%s4128_s1 + $0x6a0] ss:$8 sps:$4 sm:$0xff]  }
  0xcb   : > { %2187 = vmatpush2.bf16.msra.mxu1 %v3103_v21  ;;  %2199 = vmatprep.subr.bf16.mxu0 %v3108_v22  ;;  %v3187_v21 = vld [vmem:[%s4128_s1 + $0x7a0] ss:$8 sps:$4 sm:$0xff]   ;;  %v3192_v22 = vld [vmem:[%s4128_s1 + $0x694] ss:$8 sps:$4 sm:$0xff]  }
  0xcc   : > { %2242 = vmatprep.subr.bf16.mxu1 %v3111_v23  ;;  %v3195_v23 = vld [vmem:[%s4128_s1 + $0x794] ss:$8 sps:$4 sm:$0xff]  }
  0xcd   : > { %2146 = vmatmul.mubr.bf16.vlgmr.msra.gmra.mxu0 %v2522_v29  ;;  %v3190_v29 = vld [vmem:[%s4128_s1 + $0x690] ss:$8 sps:$4 sm:$0xff]  }
  0xce   : > { %2189 = vmatmul.mubr.bf16.vlgmr.msra.gmra.mxu1 %v2524_v30  ;;  %2200 = vmatpush1.bf16.msra.mxu0 %v3106_v34  ;;  %v3193_v30 = vld [vmem:[%s4128_s1 + $0x790] ss:$8 sps:$4 sm:$0xff]   ;;  %v3198_v34 = vld [vmem:[%s4128_s1 + $0x684] ss:$8 sps:$4 sm:$0xff]  }
  0xcf   : > { %2243 = vmatpush1.bf16.msra.mxu1 %v3109_v35  ;;  %2201 = vmatprep.subr.bf16.mxu0 %v3114_v24  ;;  %v3201_v35 = vld [vmem:[%s4128_s1 + $0x784] ss:$8 sps:$4 sm:$0xff]   ;;  %v3196_v24 = vld [vmem:[%s4128_s1 + $0x680] ss:$8 sps:$4 sm:$0xff]  }
  0xd0   : > { %2244 = vmatprep.subr.bf16.mxu1 %v3117_v25  ;;  %2231 = vmatprep.mubr.bf16.mxu0 %v2527_v26  ;;  %v3199_v25 = vld [vmem:[%s4128_s1 + $0x780] ss:$8 sps:$4 sm:$0xff]   ;;  %v2526_v26 = vcombine.low %v3902_v28, %v3909_v31 }
  0xd1   : > { %2274 = vmatprep.mubr.bf16.mxu1 %v2529_v27  ;;  %v2528_v27 = vcombine.low %v3912_v32, %v3915_v33 }
  0xd2   : > { %2202 = vmatpush1.bf16.msra.mxu0 %v3112_v36 }
  0xd3   : > { %2245 = vmatpush1.bf16.msra.mxu1 %v3115_v37  ;;  %2203 = vmatprep.subr.bf16.mxu0 %v3120_v38 }
  0xd4   : > { %2246 = vmatprep.subr.bf16.mxu1 %v3123_v39 }
  0xd6   : > { %2204 = vmatpush1.bf16.msra.mxu0 %v3118_v40 }
  0xd7   : > { %2247 = vmatpush1.bf16.msra.mxu1 %v3121_v41  ;;  %2205 = vmatprep.subr.bf16.mxu0 %v3126_v42 }
  0xd8   : > { %2248 = vmatprep.subr.bf16.mxu1 %v3129_v43 }
  0xda   : > { %2206 = vmatpush1.bf16.msra.mxu0 %v3124_v44 }
  0xdb   : > { %2249 = vmatpush1.bf16.msra.mxu1 %v3127_v45  ;;  %2207 = vmatprep.subr.bf16.mxu0 %v3132_v46 }
  0xdc   : > { %2250 = vmatprep.subr.bf16.mxu1 %v3135_v47 }
  0xde   : > { %2208 = vmatpush1.bf16.msra.mxu0 %v3130_v48 }
  0xdf   : > { %2251 = vmatpush1.bf16.msra.mxu1 %v3133_v49  ;;  %2209 = vmatprep.subr.bf16.mxu0 %v3138_v50 }
  0xe0   : > { %2252 = vmatprep.subr.bf16.mxu1 %v3141_v51 }
  0xe2   : > { %2210 = vmatpush1.bf16.msra.mxu0 %v3136_v52 }
  0xe3   : > { %2253 = vmatpush1.bf16.msra.mxu1 %v3139_v53  ;;  %2211 = vmatprep.subr.bf16.mxu0 %v3144_v54 }
  0xe4   : > { %2254 = vmatprep.subr.bf16.mxu1 %v3147_v55 }
  0xe6   : > { %2212 = vmatpush1.bf16.msra.mxu0 %v3142_v56 }
  0xe7   : > { %2255 = vmatpush1.bf16.msra.mxu1 %v3145_v57  ;;  %2213 = vmatprep.subr.bf16.mxu0 %v3150_v58 }
  0xe8   : > { %2256 = vmatprep.subr.bf16.mxu1 %v3153_v59 }
  0xea   : > { %2214 = vmatpush1.bf16.msra.mxu0 %v3148_v60  ;;  %v291_v60 = vlaneseq }
  0xeb   : > { %2257 = vmatpush1.bf16.msra.mxu1 %v3151_v61  ;;  %2215 = vmatprep.subr.bf16.mxu0 %v3156_v62 }
  0xec   : > { %2258 = vmatprep.subr.bf16.mxu1 %v3159_v63 }
  0xee   : > { %2216 = vmatpush2.bf16.msra.mxu0 %v3154_v0 }
  0xef   : > { %2259 = vmatpush2.bf16.msra.mxu1 %v3157_v1  ;;  %2217 = vmatprep.subr.bf16.mxu0 %v3162_v2 }
  0xf0   : > { %2260 = vmatprep.subr.bf16.mxu1 %v3165_v3 }
  0xf2   : > { %2218 = vmatpush2.bf16.msra.mxu0 %v3160_v4  ;;  %v292_v4 = vshrl.u32 %v291_v60, 7 }
  0xf3   : > { %2261 = vmatpush2.bf16.msra.mxu1 %v3163_v5  ;;  %2219 = vmatprep.subr.bf16.mxu0 %v3168_v6 }
  0xf4   : > { %2262 = vmatprep.subr.bf16.mxu1 %v3171_v7 }
  0xf6   : > { %2220 = vmatpush2.bf16.msra.mxu0 %v3166_v8 }
  0xf7   : > { %2263 = vmatpush2.bf16.msra.mxu1 %v3169_v9  ;;  %2221 = vmatprep.subr.bf16.mxu0 %v3174_v10 }
  0xf8   : > { %2264 = vmatprep.subr.bf16.mxu1 %v3177_v11 }
  0xfa   : > { %2222 = vmatpush2.bf16.msra.mxu0 %v3172_v12 }
  0xfb   : > { %2265 = vmatpush2.bf16.msra.mxu1 %v3175_v13  ;;  %2223 = vmatprep.subr.bf16.mxu0 %v3180_v14 }
  0xfc   : > { %2266 = vmatprep.subr.bf16.mxu1 %v3183_v15  ;;  %v293_v15 = vsub.s32 0, %v292_v4 }
  0xfe   : > { %2224 = vmatpush2.bf16.msra.mxu0 %v3178_v16  ;;  %v289_v16 = vld [vmem:[%s4129_s2] sm:$0x3] }
  0xff   : > { %2267 = vmatpush2.bf16.msra.mxu1 %v3181_v17  ;;  %2225 = vmatprep.subr.bf16.mxu0 %v3186_v18 }
 0x100   : > { %2268 = vmatprep.subr.bf16.mxu1 %v3189_v19 }
 0x102   : > { %2226 = vmatpush2.bf16.msra.mxu0 %v3184_v20 }
 0x103   : > { %2269 = vmatpush2.bf16.msra.mxu1 %v3187_v21  ;;  %2227 = vmatprep.subr.bf16.mxu0 %v3192_v22  ;;  %v297_v21 = vsub.s32 1, %v292_v4 }
 0x104   : > { %2270 = vmatprep.subr.bf16.mxu1 %v3195_v23 }
 0x106   : > { %2228 = vmatpush2.bf16.msra.mxu0 %v3190_v29 }
 0x107   : > { %2271 = vmatpush2.bf16.msra.mxu1 %v3193_v30  ;;  %2229 = vmatprep.subr.bf16.mxu0 %v3198_v34  ;;  %v294_v30 = vrot.slane %v289_v16, %v293_v15 }
 0x108   : > { %2272 = vmatprep.subr.bf16.mxu1 %v3201_v35 }
 0x10a   : > { %2230 = vmatpush2.bf16.msra.mxu0 %v3196_v24 }
 0x10b   : > { %2273 = vmatpush2.bf16.msra.mxu1 %v3199_v25  ;;  %v298_v25 = vrot.slane %v289_v16, %v297_v21 }
 0x10d   : > { %2232 = vmatmul.mubr.bf16.vlgmr.msra.gmra.mxu0 %v2526_v26  ;;  %v1975_v36 = vpop.f32.mrf.mxu0 }
 0x10e   : > { %2275 = vmatmul.mubr.bf16.vlgmr.msra.gmra.mxu1 %v2528_v27  ;;  %v2018_v37 = vpop.f32.mrf.mxu1 }
 0x10f   : > { %v1977_v38 = vpop.f32.mrf.mxu0  ;;  %v2019_v50 = vadd.f32 %v2018_v37, %v1975_v36 }
 0x110   : > { %v2020_v39 = vpop.f32.mrf.mxu1 }
 0x111   : > { %v1979_v40 = vpop.f32.mrf.mxu0  ;;  %v2021_v51 = vadd.f32 %v2020_v39, %v1977_v38 }
 0x112   : > { %v2022_v41 = vpop.f32.mrf.mxu1 }
 0x113   : > { %v1981_v42 = vpop.f32.mrf.mxu0  ;;  %v2023_v55 = vadd.f32 %v2022_v41, %v1979_v40 }
 0x114   : > { %v2024_v43 = vpop.f32.mrf.mxu1 }
 0x115   : > { %v2025_v57 = vadd.f32 %v2024_v43, %v1981_v42 }
 0x14d   : > { %v2061_v44 = vpop.f32.mrf.mxu0 }
 0x14e   : > { %v2104_v45 = vpop.f32.mrf.mxu1  ;;  %v2062_v52 = vadd.f32 %v2061_v44, %v2019_v50 }
 0x14f   : > { %v2063_v46 = vpop.f32.mrf.mxu0 }
 0x150   : > { %v2106_v47 = vpop.f32.mrf.mxu1  ;;  %v2064_v56 = vadd.f32 %v2063_v46, %v2021_v51  ;;  %v2105_v58 = vadd.f32 %v2104_v45, %v2062_v52 }
 0x151   : > { %v2065_v28 = vpop.f32.mrf.mxu0 }
 0x152   : > { %v2108_v31 = vpop.f32.mrf.mxu1  ;;  %v2066_v59 = vadd.f32 %v2065_v28, %v2023_v55  ;;  %v2107_v63 = vadd.f32 %v2106_v47, %v2064_v56 }
 0x153   : > { %v2067_v48 = vpop.f32.mrf.mxu0 }
 0x154   : > { %v2110_v32 = vpop.f32.mrf.mxu1  ;;  %v2068_v0 = vadd.f32 %v2067_v48, %v2025_v57  ;;  %v2109_v2 = vadd.f32 %v2108_v31, %v2066_v59 }
 0x156   : > { %v2111_v7 = vadd.f32 %v2110_v32, %v2068_v0 }
 0x18d   : > { %v2147_v33 = vpop.f32.mrf.mxu0 }
 0x18e   : > { %v2190_v49 = vpop.f32.mrf.mxu1  ;;  %v2148_v1 = vadd.f32 %v2147_v33, %v2105_v58 }
 0x18f   : > { %v2149_v53 = vpop.f32.mrf.mxu0 }
 0x190   : > { %v2192_v54 = vpop.f32.mrf.mxu1  ;;  %v2150_v3 = vadd.f32 %v2149_v53, %v2107_v63  ;;  %v2191_v8 = vadd.f32 %v2190_v49, %v2148_v1 }
 0x191   : > { %v2151_v61 = vpop.f32.mrf.mxu0 }
 0x192   : > { %v2194_v62 = vpop.f32.mrf.mxu1  ;;  %v2152_v9 = vadd.f32 %v2151_v61, %v2109_v2  ;;  %v2193_v12 = vadd.f32 %v2192_v54, %v2150_v3 }
 0x193   : > { %v2153_v5 = vpop.f32.mrf.mxu0 }
 0x194   : > { %v2196_v6 = vpop.f32.mrf.mxu1  ;;  %v2154_v13 = vadd.f32 %v2153_v5, %v2111_v7  ;;  %v2195_v19 = vadd.f32 %v2194_v62, %v2152_v9 }
 0x196   : > { %v2197_v29 = vadd.f32 %v2196_v6, %v2154_v13 }
 0x1cd   : > { %v2233_v10 = vpop.f32.mrf.mxu0 }
 0x1ce   : > { %v2276_v11 = vpop.f32.mrf.mxu1  ;;  %v2234_v14 = vadd.f32 %v2233_v10, %v2191_v8 }
 0x1cf   : > { %v2235_v17 = vpop.f32.mrf.mxu0 }
 0x1d0   : > { %v2278_v18 = vpop.f32.mrf.mxu1  ;;  %v2236_v20 = vadd.f32 %v2235_v17, %v2193_v12  ;;  %v2277_v34 = vadd.f32 %v2276_v11, %v2234_v14 }
 0x1d1   : > { %v2237_v22 = vpop.f32.mrf.mxu0 }
 0x1d2   : > { %v2280_v23 = vpop.f32.mrf.mxu1  ;;  %v2238_v35 = vadd.f32 %v2237_v22, %v2195_v19  ;;  %v2279_v26 = vadd.f32 %v2278_v18, %v2236_v20  ;;  %v2285_v38 = vadd.f32 %v2277_v34, %v294_v30 }
 0x1d3   : > { %v2239_v24 = vpop.f32.mrf.mxu0 }
 0x1d4   : > { %v2281_v27 = vadd.f32 %v2280_v23, %v2238_v35  ;;  %v2240_v36 = vadd.f32 %v2239_v24, %v2197_v29  ;;  %v2282_v37 = vpop.f32.mrf.mxu1  ;;  %v2286_v41 = vadd.f32 %v2279_v26, %v298_v25 }
 0x1d6   : > { %v2287_v39 = vadd.f32 %v2281_v27, %v294_v30  ;;  %v2283_v40 = vadd.f32 %v2282_v37, %v2240_v36 }
 0x1d8   : > { %v2300_v42 = vadd.f32 %v2287_v39, %v2285_v38  ;;  %v2288_v43 = vadd.f32 %v2283_v40, %v298_v25 }
 0x1da   : > { %v2301_v44 = vrot.slane %v2300_v42, 4  ;;  %v2307_v45 = vadd.f32 %v2288_v43, %v2286_v41 }
 0x1dc   : > { %v2302_v46 = vadd.f32 %v2301_v44, %v2300_v42  ;;  %v2308_v47 = vrot.slane %v2307_v45, 4 }
 0x1de   : > { %v2303_v28 = vrot.slane %v2302_v46, 2  ;;  %v2309_v31 = vadd.f32 %v2308_v47, %v2307_v45 }
 0x1e0   : > { %v2304_v48 = vadd.f32 %v2303_v28, %v2302_v46  ;;  %v2310_v32 = vrot.slane %v2309_v31, 2 }
 0x1e2   : > { %v2305_v33 = vrot.slane %v2304_v48, 1  ;;  %v2311_v49 = vadd.f32 %v2310_v32, %v2309_v31 }
 0x1e4   : > { %v2306_v50 = vadd.f32 %v2305_v33, %v2304_v48  ;;  %v2312_v51 = vrot.slane %v2311_v49, 1 }
 0x1e6   : > { %v2315_v52 = vmul.f32 0.0625, %v2306_v50  ;;  %v2313_v53 = vadd.f32 %v2312_v51, %v2311_v49 }
 0x1e8   : > { %v2317_v54 = vsub.f32 %v2285_v38, %v2315_v52  ;;  %v2319_v55 = vsub.f32 %v2287_v39, %v2315_v52  ;;  %v2316_v56 = vmul.f32 0.0625, %v2313_v53 }
 0x1ea   : > { %v2321_v57 = vmul.f32 %v2317_v54, %v2317_v54  ;;  %v2323_v58 = vmul.f32 %v2319_v55, %v2319_v55  ;;  %v2318_v59 = vsub.f32 %v2286_v41, %v2316_v56  ;;  %v2320_v60 = vsub.f32 %v2288_v43, %v2316_v56 }
 0x1ec   : > { %v2325_v61 = vadd.f32 %v2323_v58, %v2321_v57  ;;  %v2322_v62 = vmul.f32 %v2318_v59, %v2318_v59  ;;  %v2324_v63 = vmul.f32 %v2320_v60, %v2320_v60 }
 0x1ee   : > { %v2326_v0 = vrot.slane %v2325_v61, 4  ;;  %v2332_v1 = vadd.f32 %v2324_v63, %v2322_v62 }
 0x1f0   : > { %v2327_v2 = vadd.f32 %v2326_v0, %v2325_v61  ;;  %v2333_v3 = vrot.slane %v2332_v1, 4 }
 0x1f2   : > { %v2328_v4 = vrot.slane %v2327_v2, 2  ;;  %v2334_v5 = vadd.f32 %v2333_v3, %v2332_v1 }
 0x1f4   : > { %v2329_v6 = vadd.f32 %v2328_v4, %v2327_v2  ;;  %v2335_v7 = vrot.slane %v2334_v5, 2 }
 0x1f6   : > { %v2330_v8 = vrot.slane %v2329_v6, 1  ;;  %v2336_v9 = vadd.f32 %v2335_v7, %v2334_v5 }
 0x1f8   : > { %v2331_v10 = vadd.f32 %v2330_v8, %v2329_v6  ;;  %v2337_v11 = vrot.slane %v2336_v9, 1 }
 0x1fa   : > { %v2339_v12 = vmul.f32 0.0625, %v2331_v10  ;;  %v2338_v13 = vadd.f32 %v2337_v11, %v2336_v9 }
 0x1fc   : > { %v2341_v14 = vadd.f32 1e-05, %v2339_v12  ;;  %v2340_v15 = vmul.f32 0.0625, %v2338_v13 }
 0x1fe   : > { %3202 = vrsqrt.f32 %v2341_v14  ;;  %v2342_v16 = vadd.f32 1e-05, %v2340_v15 }
 0x200   : > { %3204 = vrsqrt.f32 %v2342_v16 }
 0x20b   : > { %v3203_v17 = vpop.eup %3202 }
 0x20c   : > { %v2345_v18 = vmul.f32 %v3203_v17, %v2317_v54  ;;  %v2347_v19 = vmul.f32 %v3203_v17, %v2319_v55 }
 0x20d   : > { %v3205_v20 = vpop.eup %3204 }
 0x20e   : > { %v2353_v21 = vmul.f32 0.2, %v2345_v18  ;;  %v2355_v22 = vmul.f32 0.2, %v2347_v19  ;;  %v2346_v23 = vmul.f32 %v3205_v20, %v2318_v59  ;;  %v2348_v29 = vmul.f32 %v3205_v20, %v2320_v60 }
 0x20f   : > { %vm2349_vm0 = vcmp.ge.f32.partialorder %v2345_v18, 0.0  ;;  %vm2351_vm1 = vcmp.ge.f32.partialorder %v2347_v19, 0.0 }
 0x210   : > { %vm2350_vm2 = vcmp.ge.f32.partialorder %v2346_v23, 0.0  ;;  %vm2352_vm3 = vcmp.ge.f32.partialorder %v2348_v29, 0.0  ;;  %v2354_v30 = vmul.f32 0.2, %v2346_v23  ;;  %v2356_v34 = vmul.f32 0.2, %v2348_v29 }
 0x211   : > { %v2357_v35 = vsel %vm2349_vm0, %v2345_v18, %v2353_v21  ;;  %v2359_v24 = vsel %vm2351_vm1, %v2347_v19, %v2355_v22 }
 0x212   : > { %v2358_v25 = vsel %vm2350_vm2, %v2346_v23, %v2354_v30  ;;  %v2360_v26 = vsel %vm2352_vm3, %v2348_v29, %v2356_v34 }
 0x213   : > { %v2792_v27 = vpack.c.bf16 %v2358_v25, %v2357_v35  ;;  %v2793_v36 = vpack.c.bf16 %v2360_v26, %v2359_v24 }
 0x215   : > { %2373 = vst [vmem:[%s282_s21] sm:$0xff] %v2792_v27  ;;  %2374 = vst [vmem:[%s282_s21 + $0x8] sm:$0xff] %v2793_v36 }
 0x216 PF: > { %s13_s14 = sadd.s32 1, %s3228_s14   ;;  %s4131_s12 = smov %s3224_s13 }
 0x217   : > { %p10_p5 = scmp.ge.s32.totalorder %s13_s14, 4   ;;  %s4132_s13 = smov %s4134_s15 }
 0x219   :  { %12 = sbr.rel (!%p10_p5) target bundleno = 2 (0x2), region = 76 }

// kernel: discriminator_forward.7
= control target key start
LH: loop header
LB: loop body
LE: loop exit
PB: predicated region body
PF: predicated region fallthrough
CT: control target
= control target key end

     0   :  { %s5497_s1 = inlined_call_operand.vmem [shape: bf16[4096,128], index: 1, kind: input, shape index: {}]   ;;  %s5498_s0 = inlined_call_operand.vmem [shape: bf16[32,4096], index: 0, kind: input, shape index: {}]   ;;  %s5499_s2 = inlined_call_operand.vmem [shape: f32[1,128], index: 2, kind: input, shape index: {}]   ;;  %s5500_s3 = inlined_call_operand.vmem [shape: f32[32,128], index: 3, kind: output, shape index: {}]  }
   0x1   :  { %v4042_v0 = vld [vmem:[%s5497_s1 + $0x78] sm:$0xff]   ;;  %v4046_v4 = vld [vmem:[%s5497_s1 + $0x70] sm:$0xff]   ;;  %v4050_v8 = vld [vmem:[%s5497_s1 + $0x68] sm:$0xff]  }
   0x2   :  { %v4043_v1 = vld [vmem:[%s5497_s1 + $0xf8] sm:$0xff]   ;;  %3594 = vmatprep.subr.bf16.mxu0 %v4042_v0  ;;  %v4047_v5 = vld [vmem:[%s5497_s1 + $0xf0] sm:$0xff]   ;;  %v4051_v9 = vld [vmem:[%s5497_s1 + $0xe8] sm:$0xff]  }
   0x3   :  { %v4044_v2 = vld [vmem:[%s5497_s1 + $0x38] sm:$0xff]   ;;  %3622 = vmatprep.subr.bf16.mxu1 %v4043_v1  ;;  %v4048_v6 = vld [vmem:[%s5497_s1 + $0x30] sm:$0xff]   ;;  %v4052_v10 = vld [vmem:[%s5497_s1 + $0x28] sm:$0xff]  }
   0x4   :  { %v4045_v3 = vld [vmem:[%s5497_s1 + $0xb8] sm:$0xff]   ;;  %3595 = vmatpush3.bf16.msra.mxu0 %v4044_v2  ;;  %v4049_v7 = vld [vmem:[%s5497_s1 + $0xb0] sm:$0xff]   ;;  %v4053_v11 = vld [vmem:[%s5497_s1 + $0xa8] sm:$0xff]  }
   0x5   :  { %3623 = vmatpush3.bf16.msra.mxu1 %v4045_v3  ;;  %3596 = vmatprep.subr.bf16.mxu0 %v4046_v4  ;;  %v4054_v12 = vld [vmem:[%s5497_s1 + $0x60] sm:$0xff]   ;;  %v4058_v16 = vld [vmem:[%s5497_s1 + $0x58] sm:$0xff]   ;;  %v4062_v20 = vld [vmem:[%s5497_s1 + $0x50] sm:$0xff]  }
   0x6   :  { %3624 = vmatprep.subr.bf16.mxu1 %v4047_v5  ;;  %v4055_v13 = vld [vmem:[%s5497_s1 + $0xe0] sm:$0xff]   ;;  %v4059_v17 = vld [vmem:[%s5497_s1 + $0xd8] sm:$0xff]   ;;  %v4063_v21 = vld [vmem:[%s5497_s1 + $0xd0] sm:$0xff]  }
   0x7   :  { %v4056_v14 = vld [vmem:[%s5497_s1 + $0x20] sm:$0xff]   ;;  %v4060_v18 = vld [vmem:[%s5497_s1 + $0x18] sm:$0xff]   ;;  %v4064_v22 = vld [vmem:[%s5497_s1 + $0x10] sm:$0xff]  }
   0x8   :  { %3597 = vmatpush3.bf16.msra.mxu0 %v4048_v6  ;;  %v4057_v15 = vld [vmem:[%s5497_s1 + $0xa0] sm:$0xff]   ;;  %v4061_v19 = vld [vmem:[%s5497_s1 + $0x98] sm:$0xff]   ;;  %v4065_v23 = vld [vmem:[%s5497_s1 + $0x90] sm:$0xff]  }
   0x9   :  { %3625 = vmatpush3.bf16.msra.mxu1 %v4049_v7  ;;  %3598 = vmatprep.subr.bf16.mxu0 %v4050_v8  ;;  %v4066_v24 = vld [vmem:[%s5497_s1 + $0x48] sm:$0xff]   ;;  %v4070_v28 = vld [vmem:[%s5497_s1 + $0x40] sm:$0xff]   ;;  %v4074_v40 = vld [vmem:[%s5497_s1 + $0x178] sm:$0xff]  }
   0xa   :  { %3626 = vmatprep.subr.bf16.mxu1 %v4051_v9  ;;  %v4067_v25 = vld [vmem:[%s5497_s1 + $0xc8] sm:$0xff]   ;;  %v4071_v29 = vld [vmem:[%s5497_s1 + $0xc0] sm:$0xff]   ;;  %v4075_v41 = vld [vmem:[%s5497_s1 + $0x1f8] sm:$0xff]  }
   0xb   :  { %v4068_v26 = vld [vmem:[%s5497_s1 + $0x8] sm:$0xff]   ;;  %v4072_v30 = vld [vmem:[%s5497_s1] sm:$0xff]   ;;  %v4076_v42 = vld [vmem:[%s5497_s1 + $0x138] sm:$0xff]  }
   0xc   :  { %3599 = vmatpush3.bf16.msra.mxu0 %v4052_v10  ;;  %v4069_v27 = vld [vmem:[%s5497_s1 + $0x88] sm:$0xff]   ;;  %v4073_v31 = vld [vmem:[%s5497_s1 + $0x80] sm:$0xff]   ;;  %v4077_v43 = vld [vmem:[%s5497_s1 + $0x1b8] sm:$0xff]  }
   0xd   :  { %3627 = vmatpush3.bf16.msra.mxu1 %v4053_v11  ;;  %3600 = vmatprep.subr.bf16.mxu0 %v4054_v12  ;;  %v34_v32 = vld [vmem:[%s5498_s0] sm:$0xff]  ;;  %v35_v34 = vld [vmem:[%s5498_s0 + $0x8] sm:$0xff]  ;;  %v4078_v44 = vld [vmem:[%s5497_s1 + $0x170] sm:$0xff]  }
   0xe   :  { %3628 = vmatprep.subr.bf16.mxu1 %v4055_v13  ;;  %v50_v33 = vld [vmem:[%s5498_s0 + $0x80] sm:$0xff]  ;;  %v51_v37 = vld [vmem:[%s5498_s0 + $0x88] sm:$0xff]  ;;  %v4079_v45 = vld [vmem:[%s5497_s1 + $0x1f0] sm:$0xff]  }
   0xf   :  { %v3274_v35 = vcombine.low %v34_v32, %v50_v33  ;;  %v3275_v36 = vcombine.high %v34_v32, %v50_v33  ;;  %v3276_v38 = vcombine.low %v35_v34, %v51_v37  ;;  %v3277_v39 = vcombine.high %v35_v34, %v51_v37  ;;  %v4080_v46 = vld [vmem:[%s5497_s1 + $0x130] sm:$0xff]   ;;  %v4082_v48 = vld [vmem:[%s5497_s1 + $0x168] sm:$0xff]   ;;  %v4086_v52 = vld [vmem:[%s5497_s1 + $0x160] sm:$0xff]  }
  0x10   :  { %3601 = vmatpush3.bf16.msra.mxu0 %v4056_v14  ;;  %v4081_v47 = vld [vmem:[%s5497_s1 + $0x1b0] sm:$0xff]   ;;  %v4083_v49 = vld [vmem:[%s5497_s1 + $0x1e8] sm:$0xff]   ;;  %v4087_v53 = vld [vmem:[%s5497_s1 + $0x1e0] sm:$0xff]  }
  0x11   :  { %3629 = vmatpush3.bf16.msra.mxu1 %v4057_v15  ;;  %3602 = vmatprep.subr.bf16.mxu0 %v4058_v16  ;;  %v4084_v50 = vld [vmem:[%s5497_s1 + $0x128] sm:$0xff]   ;;  %v4088_v54 = vld [vmem:[%s5497_s1 + $0x120] sm:$0xff]   ;;  %v4090_v56 = vld [vmem:[%s5497_s1 + $0x158] sm:$0xff]  }
  0x12   :  { %3630 = vmatprep.subr.bf16.mxu1 %v4059_v17  ;;  %2498 = vmatprep.mubr.bf16.mxu0 %v3275_v36  ;;  %v4085_v51 = vld [vmem:[%s5497_s1 + $0x1a8] sm:$0xff]   ;;  %v4089_v55 = vld [vmem:[%s5497_s1 + $0x1a0] sm:$0xff]   ;;  %v4091_v57 = vld [vmem:[%s5497_s1 + $0x1d8] sm:$0xff]  }
  0x13   :  { %2547 = vmatprep.mubr.bf16.mxu1 %v3277_v39  ;;  %v4092_v58 = vld [vmem:[%s5497_s1 + $0x118] sm:$0xff]   ;;  %v66_v60 = vld [vmem:[%s5498_s0 + $0x100] sm:$0xff]  ;;  %v67_v63 = vld [vmem:[%s5498_s0 + $0x108] sm:$0xff] }
  0x14   :  { %3603 = vmatpush3.bf16.msra.mxu0 %v4060_v18  ;;  %v4093_v59 = vld [vmem:[%s5497_s1 + $0x198] sm:$0xff]   ;;  %v82_v61 = vld [vmem:[%s5498_s0 + $0x180] sm:$0xff]  ;;  %v83_v0 = vld [vmem:[%s5498_s0 + $0x188] sm:$0xff] }
  0x15   :  { %3631 = vmatpush3.bf16.msra.mxu1 %v4061_v19  ;;  %3604 = vmatprep.subr.bf16.mxu0 %v4062_v20  ;;  %v3307_v62 = vcombine.high %v66_v60, %v82_v61  ;;  %v3306_v1 = vcombine.low %v66_v60, %v82_v61  ;;  %v3309_v2 = vcombine.high %v67_v63, %v83_v0  ;;  %v4094_v4 = vld [vmem:[%s5497_s1 + $0x150] sm:$0xff]   ;;  %v4098_v8 = vld [vmem:[%s5497_s1 + $0x148] sm:$0xff]   ;;  %v4102_v12 = vld [vmem:[%s5497_s1 + $0x140] sm:$0xff]  }
  0x16   :  { %3632 = vmatprep.subr.bf16.mxu1 %v4063_v21  ;;  %v3308_v3 = vcombine.low %v67_v63, %v83_v0  ;;  %v4095_v5 = vld [vmem:[%s5497_s1 + $0x1d0] sm:$0xff]   ;;  %v4099_v9 = vld [vmem:[%s5497_s1 + $0x1c8] sm:$0xff]   ;;  %v4103_v13 = vld [vmem:[%s5497_s1 + $0x1c0] sm:$0xff]  }
  0x17   :  { %v4096_v6 = vld [vmem:[%s5497_s1 + $0x110] sm:$0xff]   ;;  %v4100_v10 = vld [vmem:[%s5497_s1 + $0x108] sm:$0xff]   ;;  %v4104_v14 = vld [vmem:[%s5497_s1 + $0x100] sm:$0xff]  }
  0x18   :  { %3605 = vmatpush3.bf16.msra.mxu0 %v4064_v22  ;;  %v4097_v7 = vld [vmem:[%s5497_s1 + $0x190] sm:$0xff]   ;;  %v4101_v11 = vld [vmem:[%s5497_s1 + $0x188] sm:$0xff]   ;;  %v4105_v15 = vld [vmem:[%s5497_s1 + $0x180] sm:$0xff]  }
  0x19   :  { %3633 = vmatpush3.bf16.msra.mxu1 %v4065_v23  ;;  %3606 = vmatprep.subr.bf16.mxu0 %v4066_v24  ;;  %v36_v16 = vld [vmem:[%s5498_s0 + $0x10] sm:$0xff]  ;;  %v37_v18 = vld [vmem:[%s5498_s0 + $0x18] sm:$0xff]  ;;  %v4114_v36 = vld [vmem:[%s5497_s1 + $0x268] sm:$0xff]  }
  0x1a   :  { %3634 = vmatprep.subr.bf16.mxu1 %v4067_v25  ;;  %v52_v17 = vld [vmem:[%s5498_s0 + $0x90] sm:$0xff]  ;;  %v53_v19 = vld [vmem:[%s5498_s0 + $0x98] sm:$0xff]  ;;  %v4115_v37 = vld [vmem:[%s5497_s1 + $0x2e8] sm:$0xff]  }
  0x1b   :  { %v3278_v20 = vcombine.low %v36_v16, %v52_v17  ;;  %v3279_v21 = vcombine.high %v36_v16, %v52_v17  ;;  %v3280_v22 = vcombine.low %v37_v18, %v53_v19  ;;  %v3281_v23 = vcombine.high %v37_v18, %v53_v19  ;;  %v4106_v24 = vld [vmem:[%s5497_s1 + $0x278] sm:$0xff]   ;;  %v68_v32 = vld [vmem:[%s5498_s0 + $0x110] sm:$0xff]  ;;  %v4134_v60 = vld [vmem:[%s5497_s1 + $0x240] sm:$0xff]  }
  0x1c   :  { %3607 = vmatpush3.bf16.msra.mxu0 %v4068_v26  ;;  %v4107_v25 = vld [vmem:[%s5497_s1 + $0x2f8] sm:$0xff]   ;;  %v84_v33 = vld [vmem:[%s5498_s0 + $0x190] sm:$0xff]  ;;  %v4135_v61 = vld [vmem:[%s5497_s1 + $0x2c0] sm:$0xff]  }
  0x1d   :  { %3635 = vmatpush3.bf16.msra.mxu1 %v4069_v27  ;;  %3608 = vmatprep.subr.bf16.mxu0 %v4070_v28  ;;  %v4108_v26 = vld [vmem:[%s5497_s1 + $0x238] sm:$0xff]   ;;  %v4110_v28 = vld [vmem:[%s5497_s1 + $0x270] sm:$0xff]   ;;  %v3311_v34 = vcombine.high %v68_v32, %v84_v33  ;;  %v4137_v63 = vld [vmem:[%s5497_s1 + $0x280] sm:$0xff]  }
  0x1e   :  { %3636 = vmatprep.subr.bf16.mxu1 %v4071_v29  ;;  %v4109_v27 = vld [vmem:[%s5497_s1 + $0x2b8] sm:$0xff]   ;;  %v4111_v29 = vld [vmem:[%s5497_s1 + $0x2f0] sm:$0xff]   ;;  %v38_v0 = vld [vmem:[%s5498_s0 + $0x20] sm:$0xff] }
  0x1f   :  { %v85_v39 = vld [vmem:[%s5498_s0 + $0x198] sm:$0xff]  ;;  %v70_v16 = vld [vmem:[%s5498_s0 + $0x120] sm:$0xff] }
  0x20   :  { %3609 = vmatpush3.bf16.msra.mxu0 %v4072_v30  ;;  %v4112_v30 = vld [vmem:[%s5497_s1 + $0x230] sm:$0xff]   ;;  %v86_v17 = vld [vmem:[%s5498_s0 + $0x1a0] sm:$0xff] }
  0x21   :  { %3637 = vmatpush3.bf16.msra.mxu1 %v4073_v31  ;;  %3650 = vmatprep.subr.bf16.mxu0 %v4074_v40  ;;  %v4113_v31 = vld [vmem:[%s5497_s1 + $0x2b0] sm:$0xff]   ;;  %v3315_v18 = vcombine.high %v70_v16, %v86_v17  ;;  %v3314_v19 = vcombine.low %v70_v16, %v86_v17  ;;  %v4186_v16 = vld [vmem:[%s5497_s1 + $0x458] sm:$0xff]  }
  0x22   :  { %3678 = vmatprep.subr.bf16.mxu1 %v4075_v41  ;;  %v4116_v41 = vld [vmem:[%s5497_s1 + $0x228] sm:$0xff]   ;;  %v4187_v17 = vld [vmem:[%s5497_s1 + $0x4d8] sm:$0xff]  }
  0x23   :  { %2499 = vmatmul.mubr.bf16.vlgmr.msra.gmra.mxu0 %v3274_v35  ;;  %v3310_v35 = vcombine.low %v68_v32, %v84_v33  ;;  %v4154_v32 = vld [vmem:[%s5497_s1 + $0x358] sm:$0xff]  }
  0x24   :  { %2548 = vmatmul.mubr.bf16.vlgmr.msra.gmra.mxu1 %v3276_v38  ;;  %3651 = vmatpush3.bf16.msra.mxu0 %v4076_v42  ;;  %v69_v38 = vld [vmem:[%s5498_s0 + $0x118] sm:$0xff] }
  0x25   :  { %3679 = vmatpush3.bf16.msra.mxu1 %v4077_v43  ;;  %3652 = vmatprep.subr.bf16.mxu0 %v4078_v44  ;;  %v3313_v40 = vcombine.high %v69_v38, %v85_v39  ;;  %v3312_v42 = vcombine.low %v69_v38, %v85_v39  ;;  %v4117_v43 = vld [vmem:[%s5497_s1 + $0x2a8] sm:$0xff]   ;;  %v4118_v44 = vld [vmem:[%s5497_s1 + $0x260] sm:$0xff]   ;;  %v4155_v33 = vld [vmem:[%s5497_s1 + $0x3d8] sm:$0xff]  }
  0x26   :  { %3680 = vmatprep.subr.bf16.mxu1 %v4079_v45  ;;  %2506 = vmatprep.mubr.bf16.mxu0 %v3307_v62  ;;  %v4119_v45 = vld [vmem:[%s5497_s1 + $0x2e0] sm:$0xff]   ;;  %v4160_v38 = vld [vmem:[%s5497_s1 + $0x310] sm:$0xff]  }
  0x27   :  { %2555 = vmatprep.mubr.bf16.mxu1 %v3309_v2  ;;  %v4136_v62 = vld [vmem:[%s5497_s1 + $0x200] sm:$0xff]   ;;  %v4161_v39 = vld [vmem:[%s5497_s1 + $0x390] sm:$0xff]  }
  0x28   :  { %3653 = vmatpush3.bf16.msra.mxu0 %v4080_v46  ;;  %v4120_v46 = vld [vmem:[%s5497_s1 + $0x220] sm:$0xff]  }
  0x29   :  { %3681 = vmatpush3.bf16.msra.mxu1 %v4081_v47  ;;  %3654 = vmatprep.subr.bf16.mxu0 %v4082_v48  ;;  %v4121_v47 = vld [vmem:[%s5497_s1 + $0x2a0] sm:$0xff]   ;;  %v4122_v48 = vld [vmem:[%s5497_s1 + $0x258] sm:$0xff]  }
  0x2a   :  { %3682 = vmatprep.subr.bf16.mxu1 %v4083_v49  ;;  %v4123_v49 = vld [vmem:[%s5497_s1 + $0x2d8] sm:$0xff]  }
  0x2b   :  { %2507 = vmatmul.mubr.bf16.gmra.mxu0 %v3306_v1  ;;  %v54_v1 = vld [vmem:[%s5498_s0 + $0xa0] sm:$0xff] }
  0x2c   :  { %3655 = vmatpush3.bf16.msra.mxu0 %v4084_v50  ;;  %2556 = vmatmul.mubr.bf16.gmra.mxu1 %v3308_v3  ;;  %v4124_v50 = vld [vmem:[%s5497_s1 + $0x218] sm:$0xff]   ;;  %v3282_v2 = vcombine.low %v38_v0, %v54_v1  ;;  %v3283_v3 = vcombine.high %v38_v0, %v54_v1  ;;  %v72_v0 = vld [vmem:[%s5498_s0 + $0x130] sm:$0xff] }
  0x2d   :  { %3683 = vmatpush3.bf16.msra.mxu1 %v4085_v51  ;;  %3656 = vmatprep.subr.bf16.mxu0 %v4086_v52  ;;  %v4125_v51 = vld [vmem:[%s5497_s1 + $0x298] sm:$0xff]   ;;  %v4126_v52 = vld [vmem:[%s5497_s1 + $0x250] sm:$0xff]  }
  0x2e   :  { %3684 = vmatprep.subr.bf16.mxu1 %v4087_v53  ;;  %2596 = vmatprep.mubr.bf16.mxu0 %v3279_v21  ;;  %v4127_v53 = vld [vmem:[%s5497_s1 + $0x2d0] sm:$0xff]   ;;  %v4147_v21 = vld [vmem:[%s5497_s1 + $0x3e8] sm:$0xff]  }
  0x2f   :  { %2645 = vmatprep.mubr.bf16.mxu1 %v3281_v23  ;;  %v87_v23 = vld [vmem:[%s5498_s0 + $0x1a8] sm:$0xff]  ;;  %v88_v1 = vld [vmem:[%s5498_s0 + $0x1b0] sm:$0xff] }
  0x30   :  { %3657 = vmatpush3.bf16.msra.mxu0 %v4088_v54  ;;  %v4128_v54 = vld [vmem:[%s5497_s1 + $0x210] sm:$0xff]  }
  0x31   :  { %3685 = vmatpush3.bf16.msra.mxu1 %v4089_v55  ;;  %3658 = vmatprep.subr.bf16.mxu0 %v4090_v56  ;;  %v4129_v55 = vld [vmem:[%s5497_s1 + $0x290] sm:$0xff]   ;;  %v4130_v56 = vld [vmem:[%s5497_s1 + $0x248] sm:$0xff]  }
  0x32   :  { %3686 = vmatprep.subr.bf16.mxu1 %v4091_v57  ;;  %v4131_v57 = vld [vmem:[%s5497_s1 + $0x2c8] sm:$0xff]  }
  0x34   :  { %3659 = vmatpush3.bf16.msra.mxu0 %v4092_v58  ;;  %v4132_v58 = vld [vmem:[%s5497_s1 + $0x208] sm:$0xff]  }
  0x35   :  { %3687 = vmatpush3.bf16.msra.mxu1 %v4093_v59  ;;  %3660 = vmatprep.subr.bf16.mxu0 %v4094_v4  ;;  %v4133_v59 = vld [vmem:[%s5497_s1 + $0x288] sm:$0xff]  }
  0x36   :  { %3688 = vmatprep.subr.bf16.mxu1 %v4095_v5  ;;  %v39_v4 = vld [vmem:[%s5498_s0 + $0x28] sm:$0xff] }
  0x37   :  { %v55_v5 = vld [vmem:[%s5498_s0 + $0xa8] sm:$0xff] }
  0x38   :  { %3661 = vmatpush3.bf16.msra.mxu0 %v4096_v6  ;;  %v3284_v6 = vcombine.low %v39_v4, %v55_v5 }
  0x39   :  { %3689 = vmatpush3.bf16.msra.mxu1 %v4097_v7  ;;  %3662 = vmatprep.subr.bf16.mxu0 %v4098_v8  ;;  %v3285_v7 = vcombine.high %v39_v4, %v55_v5  ;;  %v4138_v8 = vld [vmem:[%s5497_s1 + $0x378] sm:$0xff]   ;;  %v4178_v4 = vld [vmem:[%s5497_s1 + $0x468] sm:$0xff]  }
  0x3a   :  { %3690 = vmatprep.subr.bf16.mxu1 %v4099_v9  ;;  %v4139_v9 = vld [vmem:[%s5497_s1 + $0x3f8] sm:$0xff]   ;;  %v4179_v5 = vld [vmem:[%s5497_s1 + $0x4e8] sm:$0xff]  }
  0x3c   :  { %3663 = vmatpush3.bf16.msra.mxu0 %v4100_v10  ;;  %v4140_v10 = vld [vmem:[%s5497_s1 + $0x338] sm:$0xff]  }
  0x3d   :  { %3691 = vmatpush3.bf16.msra.mxu1 %v4101_v11  ;;  %3664 = vmatprep.subr.bf16.mxu0 %v4102_v12  ;;  %v4141_v11 = vld [vmem:[%s5497_s1 + $0x3b8] sm:$0xff]   ;;  %v4142_v12 = vld [vmem:[%s5497_s1 + $0x370] sm:$0xff]  }
  0x3e   :  { %3692 = vmatprep.subr.bf16.mxu1 %v4103_v13  ;;  %v4143_v13 = vld [vmem:[%s5497_s1 + $0x3f0] sm:$0xff]  }
  0x40   :  { %3665 = vmatpush3.bf16.msra.mxu0 %v4104_v14  ;;  %v4144_v14 = vld [vmem:[%s5497_s1 + $0x330] sm:$0xff]  }
  0x41   :  { %3693 = vmatpush3.bf16.msra.mxu1 %v4105_v15  ;;  %3706 = vmatprep.subr.bf16.mxu0 %v4106_v24  ;;  %v4145_v15 = vld [vmem:[%s5497_s1 + $0x3b0] sm:$0xff]  }
  0x42   :  { %3734 = vmatprep.subr.bf16.mxu1 %v4107_v25  ;;  %v4148_v25 = vld [vmem:[%s5497_s1 + $0x328] sm:$0xff]  }
  0x43   :  { %2597 = vmatmul.mubr.bf16.vlgmr.msra.gmra.mxu0 %v3278_v20  ;;  %v4146_v20 = vld [vmem:[%s5497_s1 + $0x368] sm:$0xff]  }
  0x44   :  { %2646 = vmatmul.mubr.bf16.vlgmr.msra.gmra.mxu1 %v3280_v22  ;;  %3707 = vmatpush3.bf16.msra.mxu0 %v4108_v26  ;;  %v71_v22 = vld [vmem:[%s5498_s0 + $0x128] sm:$0xff] }
  0x45   :  { %3735 = vmatpush3.bf16.msra.mxu1 %v4109_v27  ;;  %3708 = vmatprep.subr.bf16.mxu0 %v4110_v28  ;;  %v3317_v24 = vcombine.high %v71_v22, %v87_v23  ;;  %v3316_v26 = vcombine.low %v71_v22, %v87_v23  ;;  %v4149_v27 = vld [vmem:[%s5497_s1 + $0x3a8] sm:$0xff]   ;;  %v4150_v28 = vld [vmem:[%s5497_s1 + $0x360] sm:$0xff]   ;;  %v4192_v22 = vld [vmem:[%s5497_s1 + $0x410] sm:$0xff]  }
  0x46   :  { %3736 = vmatprep.subr.bf16.mxu1 %v4111_v29  ;;  %2604 = vmatprep.mubr.bf16.mxu0 %v3311_v34  ;;  %v4151_v29 = vld [vmem:[%s5497_s1 + $0x3e0] sm:$0xff]   ;;  %v4156_v34 = vld [vmem:[%s5497_s1 + $0x318] sm:$0xff]   ;;  %v4193_v23 = vld [vmem:[%s5497_s1 + $0x490] sm:$0xff]  }
  0x47   :  { %2653 = vmatprep.mubr.bf16.mxu1 %v3313_v40  ;;  %v4162_v40 = vld [vmem:[%s5497_s1 + $0x348] sm:$0xff]  }
  0x48   :  { %3709 = vmatpush3.bf16.msra.mxu0 %v4112_v30  ;;  %v4152_v30 = vld [vmem:[%s5497_s1 + $0x320] sm:$0xff]  }
  0x49   :  { %3737 = vmatpush3.bf16.msra.mxu1 %v4113_v31  ;;  %3710 = vmatprep.subr.bf16.mxu0 %v4114_v36  ;;  %v4153_v31 = vld [vmem:[%s5497_s1 + $0x3a0] sm:$0xff]   ;;  %v4158_v36 = vld [vmem:[%s5497_s1 + $0x350] sm:$0xff]  }
  0x4a   :  { %3738 = vmatprep.subr.bf16.mxu1 %v4115_v37  ;;  %v4159_v37 = vld [vmem:[%s5497_s1 + $0x3d0] sm:$0xff]  }
  0x4b   :  { %2605 = vmatmul.mubr.bf16.gmra.mxu0 %v3310_v35  ;;  %v4157_v35 = vld [vmem:[%s5497_s1 + $0x398] sm:$0xff]  }
  0x4c   :  { %3711 = vmatpush3.bf16.msra.mxu0 %v4116_v41  ;;  %2654 = vmatmul.mubr.bf16.gmra.mxu1 %v3312_v42  ;;  %v4163_v41 = vld [vmem:[%s5497_s1 + $0x3c8] sm:$0xff]  }
  0x4d   :  { %3739 = vmatpush3.bf16.msra.mxu1 %v4117_v43  ;;  %3712 = vmatprep.subr.bf16.mxu0 %v4118_v44  ;;  %v4164_v42 = vld [vmem:[%s5497_s1 + $0x308] sm:$0xff]   ;;  %v4166_v44 = vld [vmem:[%s5497_s1 + $0x340] sm:$0xff]  }
  0x4e   :  { %3740 = vmatprep.subr.bf16.mxu1 %v4119_v45  ;;  %2694 = vmatprep.mubr.bf16.mxu0 %v3283_v3  ;;  %v4165_v43 = vld [vmem:[%s5497_s1 + $0x388] sm:$0xff]   ;;  %v4167_v45 = vld [vmem:[%s5497_s1 + $0x3c0] sm:$0xff]   ;;  %v3318_v3 = vcombine.low %v72_v0, %v88_v1 }
  0x4f   :  { %2743 = vmatprep.mubr.bf16.mxu1 %v3285_v7  ;;  %v89_v7 = vld [vmem:[%s5498_s0 + $0x1b8] sm:$0xff] }
  0x50   :  { %3713 = vmatpush3.bf16.msra.mxu0 %v4120_v46  ;;  %v4168_v46 = vld [vmem:[%s5497_s1 + $0x300] sm:$0xff]  }
  0x51   :  { %3741 = vmatpush3.bf16.msra.mxu1 %v4121_v47  ;;  %3714 = vmatprep.subr.bf16.mxu0 %v4122_v48  ;;  %v4169_v47 = vld [vmem:[%s5497_s1 + $0x380] sm:$0xff]   ;;  %v40_v48 = vld [vmem:[%s5498_s0 + $0x30] sm:$0xff] }
  0x52   :  { %3742 = vmatprep.subr.bf16.mxu1 %v4123_v49  ;;  %v56_v49 = vld [vmem:[%s5498_s0 + $0xb0] sm:$0xff] }
  0x54   :  { %3715 = vmatpush3.bf16.msra.mxu0 %v4124_v50  ;;  %v41_v50 = vld [vmem:[%s5498_s0 + $0x38] sm:$0xff] }
  0x55   :  { %3743 = vmatpush3.bf16.msra.mxu1 %v4125_v51  ;;  %3716 = vmatprep.subr.bf16.mxu0 %v4126_v52  ;;  %v3286_v51 = vcombine.low %v40_v48, %v56_v49  ;;  %v3287_v52 = vcombine.high %v40_v48, %v56_v49  ;;  %v74_v48 = vld [vmem:[%s5498_s0 + $0x140] sm:$0xff] }
  0x56   :  { %3744 = vmatprep.subr.bf16.mxu1 %v4127_v53  ;;  %v57_v53 = vld [vmem:[%s5498_s0 + $0xb8] sm:$0xff]  ;;  %v90_v49 = vld [vmem:[%s5498_s0 + $0x1c0] sm:$0xff] }
  0x58   :  { %3717 = vmatpush3.bf16.msra.mxu0 %v4128_v54  ;;  %v3288_v54 = vcombine.low %v41_v50, %v57_v53 }
  0x59   :  { %3745 = vmatpush3.bf16.msra.mxu1 %v4129_v55  ;;  %3718 = vmatprep.subr.bf16.mxu0 %v4130_v56  ;;  %v3289_v55 = vcombine.high %v41_v50, %v57_v53  ;;  %v4170_v56 = vld [vmem:[%s5497_s1 + $0x478] sm:$0xff]   ;;  %v3323_v50 = vcombine.high %v74_v48, %v90_v49  ;;  %v4211_v53 = vld [vmem:[%s5497_s1 + $0x5e8] sm:$0xff]  }
  0x5a   :  { %3746 = vmatprep.subr.bf16.mxu1 %v4131_v57  ;;  %v4171_v57 = vld [vmem:[%s5497_s1 + $0x4f8] sm:$0xff]  }
  0x5c   :  { %3719 = vmatpush3.bf16.msra.mxu0 %v4132_v58  ;;  %v4172_v58 = vld [vmem:[%s5497_s1 + $0x438] sm:$0xff]  }
  0x5d   :  { %3747 = vmatpush3.bf16.msra.mxu1 %v4133_v59  ;;  %3720 = vmatprep.subr.bf16.mxu0 %v4134_v60  ;;  %v4173_v59 = vld [vmem:[%s5497_s1 + $0x4b8] sm:$0xff]   ;;  %v4174_v60 = vld [vmem:[%s5497_s1 + $0x470] sm:$0xff]  }
  0x5e   :  { %3748 = vmatprep.subr.bf16.mxu1 %v4135_v61  ;;  %v4175_v61 = vld [vmem:[%s5497_s1 + $0x4f0] sm:$0xff]  }
  0x60   :  { %3721 = vmatpush3.bf16.msra.mxu0 %v4136_v62  ;;  %v4176_v62 = vld [vmem:[%s5497_s1 + $0x430] sm:$0xff]  }
  0x61   :  { %3749 = vmatpush3.bf16.msra.mxu1 %v4137_v63  ;;  %3762 = vmatprep.subr.bf16.mxu0 %v4138_v8  ;;  %v4177_v63 = vld [vmem:[%s5497_s1 + $0x4b0] sm:$0xff]  }
  0x62   :  { %3790 = vmatprep.subr.bf16.mxu1 %v4139_v9  ;;  %v4180_v9 = vld [vmem:[%s5497_s1 + $0x428] sm:$0xff]  }
  0x63   :  { %2695 = vmatmul.mubr.bf16.vlgmr.msra.gmra.mxu0 %v3282_v2  ;;  %v3319_v2 = vcombine.high %v72_v0, %v88_v1  ;;  %v4218_v0 = vld [vmem:[%s5497_s1 + $0x558] sm:$0xff]  }
  0x64   :  { %2744 = vmatmul.mubr.bf16.vlgmr.msra.gmra.mxu1 %v3284_v6  ;;  %3763 = vmatpush3.bf16.msra.mxu0 %v4140_v10  ;;  %v73_v6 = vld [vmem:[%s5498_s0 + $0x138] sm:$0xff] }
  0x65   :  { %3791 = vmatpush3.bf16.msra.mxu1 %v4141_v11  ;;  %3764 = vmatprep.subr.bf16.mxu0 %v4142_v12  ;;  %v3321_v8 = vcombine.high %v73_v6, %v89_v7  ;;  %v3320_v10 = vcombine.low %v73_v6, %v89_v7  ;;  %v4181_v11 = vld [vmem:[%s5497_s1 + $0x4a8] sm:$0xff]   ;;  %v4182_v12 = vld [vmem:[%s5497_s1 + $0x460] sm:$0xff]   ;;  %v4219_v1 = vld [vmem:[%s5497_s1 + $0x5d8] sm:$0xff]  }
  0x66   :  { %3792 = vmatprep.subr.bf16.mxu1 %v4143_v13  ;;  %2702 = vmatprep.mubr.bf16.mxu0 %v3315_v18  ;;  %v4183_v13 = vld [vmem:[%s5497_s1 + $0x4e0] sm:$0xff]   ;;  %v4188_v18 = vld [vmem:[%s5497_s1 + $0x418] sm:$0xff]   ;;  %v4224_v6 = vld [vmem:[%s5497_s1 + $0x510] sm:$0xff]  }
  0x67   :  { %2751 = vmatprep.mubr.bf16.mxu1 %v3317_v24  ;;  %v4194_v24 = vld [vmem:[%s5497_s1 + $0x448] sm:$0xff]   ;;  %v4225_v7 = vld [vmem:[%s5497_s1 + $0x590] sm:$0xff]  }
  0x68   :  { %3765 = vmatpush3.bf16.msra.mxu0 %v4144_v14  ;;  %v4184_v14 = vld [vmem:[%s5497_s1 + $0x420] sm:$0xff]  }
  0x69   :  { %3793 = vmatpush3.bf16.msra.mxu1 %v4145_v15  ;;  %3766 = vmatprep.subr.bf16.mxu0 %v4146_v20  ;;  %v4185_v15 = vld [vmem:[%s5497_s1 + $0x4a0] sm:$0xff]   ;;  %v4190_v20 = vld [vmem:[%s5497_s1 + $0x450] sm:$0xff]  }
  0x6a   :  { %3794 = vmatprep.subr.bf16.mxu1 %v4147_v21  ;;  %v4191_v21 = vld [vmem:[%s5497_s1 + $0x4d0] sm:$0xff]  }
  0x6b   :  { %2703 = vmatmul.mubr.bf16.gmra.mxu0 %v3314_v19  ;;  %v4189_v19 = vld [vmem:[%s5497_s1 + $0x498] sm:$0xff]  }
  0x6c   :  { %3767 = vmatpush3.bf16.msra.mxu0 %v4148_v25  ;;  %2752 = vmatmul.mubr.bf16.gmra.mxu1 %v3316_v26  ;;  %v4195_v25 = vld [vmem:[%s5497_s1 + $0x4c8] sm:$0xff]  }
  0x6d   :  { %3795 = vmatpush3.bf16.msra.mxu1 %v4149_v27  ;;  %3768 = vmatprep.subr.bf16.mxu0 %v4150_v28  ;;  %v4196_v26 = vld [vmem:[%s5497_s1 + $0x408] sm:$0xff]   ;;  %v4198_v28 = vld [vmem:[%s5497_s1 + $0x440] sm:$0xff]  }
  0x6e   :  { %3796 = vmatprep.subr.bf16.mxu1 %v4151_v29  ;;  %2792 = vmatprep.mubr.bf16.mxu0 %v3287_v52  ;;  %v4197_v27 = vld [vmem:[%s5497_s1 + $0x488] sm:$0xff]   ;;  %v4199_v29 = vld [vmem:[%s5497_s1 + $0x4c0] sm:$0xff]  }
  0x6f   :  { %2841 = vmatprep.mubr.bf16.mxu1 %v3289_v55  ;;  %v4210_v52 = vld [vmem:[%s5497_s1 + $0x568] sm:$0xff]  }
  0x70   :  { %3769 = vmatpush3.bf16.msra.mxu0 %v4152_v30  ;;  %v4200_v30 = vld [vmem:[%s5497_s1 + $0x400] sm:$0xff]   ;;  %v91_v55 = vld [vmem:[%s5498_s0 + $0x1c8] sm:$0xff] }
  0x71   :  { %3797 = vmatpush3.bf16.msra.mxu1 %v4153_v31  ;;  %3770 = vmatprep.subr.bf16.mxu0 %v4154_v32  ;;  %v4201_v31 = vld [vmem:[%s5497_s1 + $0x480] sm:$0xff]  }
  0x72   :  { %3798 = vmatprep.subr.bf16.mxu1 %v4155_v33  ;;  %v42_v32 = vld [vmem:[%s5498_s0 + $0x40] sm:$0xff] }
  0x73   :  { %v58_v33 = vld [vmem:[%s5498_s0 + $0xc0] sm:$0xff] }
  0x74   :  { %3771 = vmatpush3.bf16.msra.mxu0 %v4156_v34  ;;  %v43_v34 = vld [vmem:[%s5498_s0 + $0x48] sm:$0xff] }
  0x75   :  { %3799 = vmatpush3.bf16.msra.mxu1 %v4157_v35  ;;  %3772 = vmatprep.subr.bf16.mxu0 %v4158_v36  ;;  %v59_v35 = vld [vmem:[%s5498_s0 + $0xc8] sm:$0xff]  ;;  %v3290_v36 = vcombine.low %v42_v32, %v58_v33 }
  0x76   :  { %3800 = vmatprep.subr.bf16.mxu1 %v4159_v37  ;;  %v3291_v37 = vcombine.high %v42_v32, %v58_v33  ;;  %v76_v32 = vld [vmem:[%s5498_s0 + $0x150] sm:$0xff] }
  0x77   :  { %v92_v33 = vld [vmem:[%s5498_s0 + $0x1d0] sm:$0xff] }
  0x78   :  { %3773 = vmatpush3.bf16.msra.mxu0 %v4160_v38  ;;  %v3292_v38 = vcombine.low %v43_v34, %v59_v35 }
  0x79   :  { %3801 = vmatpush3.bf16.msra.mxu1 %v4161_v39  ;;  %3774 = vmatprep.subr.bf16.mxu0 %v4162_v40  ;;  %v3293_v39 = vcombine.high %v43_v34, %v59_v35  ;;  %v4202_v40 = vld [vmem:[%s5497_s1 + $0x578] sm:$0xff]   ;;  %v3327_v34 = vcombine.high %v76_v32, %v92_v33  ;;  %v3326_v35 = vcombine.low %v76_v32, %v92_v33 }
  0x7a   :  { %3802 = vmatprep.subr.bf16.mxu1 %v4163_v41  ;;  %v4203_v41 = vld [vmem:[%s5497_s1 + $0x5f8] sm:$0xff]  }
  0x7c   :  { %3775 = vmatpush3.bf16.msra.mxu0 %v4164_v42  ;;  %v4204_v42 = vld [vmem:[%s5497_s1 + $0x538] sm:$0xff]  }
  0x7d   :  { %3803 = vmatpush3.bf16.msra.mxu1 %v4165_v43  ;;  %3776 = vmatprep.subr.bf16.mxu0 %v4166_v44  ;;  %v4205_v43 = vld [vmem:[%s5497_s1 + $0x5b8] sm:$0xff]   ;;  %v4206_v44 = vld [vmem:[%s5497_s1 + $0x570] sm:$0xff]  }
  0x7e   :  { %3804 = vmatprep.subr.bf16.mxu1 %v4167_v45  ;;  %v4207_v45 = vld [vmem:[%s5497_s1 + $0x5f0] sm:$0xff]  }
  0x80   :  { %3777 = vmatpush3.bf16.msra.mxu0 %v4168_v46  ;;  %v4208_v46 = vld [vmem:[%s5497_s1 + $0x530] sm:$0xff]  }
  0x81   :  { %3805 = vmatpush3.bf16.msra.mxu1 %v4169_v47  ;;  %3818 = vmatprep.subr.bf16.mxu0 %v4170_v56  ;;  %v4209_v47 = vld [vmem:[%s5497_s1 + $0x5b0] sm:$0xff]  }
  0x82   :  { %3846 = vmatprep.subr.bf16.mxu1 %v4171_v57  ;;  %v4212_v57 = vld [vmem:[%s5497_s1 + $0x528] sm:$0xff]  }
  0x83   :  { %2793 = vmatmul.mubr.bf16.vlgmr.msra.gmra.mxu0 %v3286_v51  ;;  %v3322_v51 = vcombine.low %v74_v48, %v90_v49  ;;  %v4250_v48 = vld [vmem:[%s5497_s1 + $0x658] sm:$0xff]  }
  0x84   :  { %2842 = vmatmul.mubr.bf16.vlgmr.msra.gmra.mxu1 %v3288_v54  ;;  %3819 = vmatpush3.bf16.msra.mxu0 %v4172_v58  ;;  %v75_v54 = vld [vmem:[%s5498_s0 + $0x148] sm:$0xff]  ;;  %v4251_v49 = vld [vmem:[%s5497_s1 + $0x6d8] sm:$0xff]  }
  0x85   :  { %3847 = vmatpush3.bf16.msra.mxu1 %v4173_v59  ;;  %3820 = vmatprep.subr.bf16.mxu0 %v4174_v60  ;;  %v3325_v56 = vcombine.high %v75_v54, %v91_v55  ;;  %v3324_v58 = vcombine.low %v75_v54, %v91_v55  ;;  %v4213_v59 = vld [vmem:[%s5497_s1 + $0x5a8] sm:$0xff]   ;;  %v4214_v60 = vld [vmem:[%s5497_s1 + $0x560] sm:$0xff]   ;;  %v4255_v54 = vld [vmem:[%s5497_s1 + $0x6d0] sm:$0xff]  }
  0x86   :  { %3848 = vmatprep.subr.bf16.mxu1 %v4175_v61  ;;  %2800 = vmatprep.mubr.bf16.mxu0 %v3319_v2  ;;  %v4215_v61 = vld [vmem:[%s5497_s1 + $0x5e0] sm:$0xff]   ;;  %v4220_v2 = vld [vmem:[%s5497_s1 + $0x518] sm:$0xff]  }
  0x87   :  { %2849 = vmatprep.mubr.bf16.mxu1 %v3321_v8  ;;  %v4226_v8 = vld [vmem:[%s5497_s1 + $0x548] sm:$0xff]  }
  0x88   :  { %3821 = vmatpush3.bf16.msra.mxu0 %v4176_v62  ;;  %v4216_v62 = vld [vmem:[%s5497_s1 + $0x520] sm:$0xff]  }
  0x89   :  { %3849 = vmatpush3.bf16.msra.mxu1 %v4177_v63  ;;  %3822 = vmatprep.subr.bf16.mxu0 %v4178_v4  ;;  %v4217_v63 = vld [vmem:[%s5497_s1 + $0x5a0] sm:$0xff]   ;;  %v4222_v4 = vld [vmem:[%s5497_s1 + $0x550] sm:$0xff]  }
  0x8a   :  { %3850 = vmatprep.subr.bf16.mxu1 %v4179_v5  ;;  %v4223_v5 = vld [vmem:[%s5497_s1 + $0x5d0] sm:$0xff]  }
  0x8b   :  { %2801 = vmatmul.mubr.bf16.gmra.mxu0 %v3318_v3  ;;  %v4221_v3 = vld [vmem:[%s5497_s1 + $0x598] sm:$0xff]  }
  0x8c   :  { %3823 = vmatpush3.bf16.msra.mxu0 %v4180_v9  ;;  %2850 = vmatmul.mubr.bf16.gmra.mxu1 %v3320_v10  ;;  %v4227_v9 = vld [vmem:[%s5497_s1 + $0x5c8] sm:$0xff]  }
  0x8d   :  { %3851 = vmatpush3.bf16.msra.mxu1 %v4181_v11  ;;  %3824 = vmatprep.subr.bf16.mxu0 %v4182_v12  ;;  %v4228_v10 = vld [vmem:[%s5497_s1 + $0x508] sm:$0xff]   ;;  %v4230_v12 = vld [vmem:[%s5497_s1 + $0x540] sm:$0xff]  }
  0x8e   :  { %3852 = vmatprep.subr.bf16.mxu1 %v4183_v13  ;;  %2890 = vmatprep.mubr.bf16.mxu0 %v3291_v37  ;;  %v4229_v11 = vld [vmem:[%s5497_s1 + $0x588] sm:$0xff]   ;;  %v4231_v13 = vld [vmem:[%s5497_s1 + $0x5c0] sm:$0xff]  }
  0x8f   :  { %2939 = vmatprep.mubr.bf16.mxu1 %v3293_v39  ;;  %v4243_v37 = vld [vmem:[%s5497_s1 + $0x6e8] sm:$0xff]   ;;  %v93_v39 = vld [vmem:[%s5498_s0 + $0x1d8] sm:$0xff] }
  0x90   :  { %3825 = vmatpush3.bf16.msra.mxu0 %v4184_v14  ;;  %v4232_v14 = vld [vmem:[%s5497_s1 + $0x500] sm:$0xff]  }
  0x91   :  { %3853 = vmatpush3.bf16.msra.mxu1 %v4185_v15  ;;  %3826 = vmatprep.subr.bf16.mxu0 %v4186_v16  ;;  %v4233_v15 = vld [vmem:[%s5497_s1 + $0x580] sm:$0xff]   ;;  %v44_v16 = vld [vmem:[%s5498_s0 + $0x50] sm:$0xff] }
  0x92   :  { %3854 = vmatprep.subr.bf16.mxu1 %v4187_v17  ;;  %v60_v17 = vld [vmem:[%s5498_s0 + $0xd0] sm:$0xff] }
  0x94   :  { %3827 = vmatpush3.bf16.msra.mxu0 %v4188_v18  ;;  %v3294_v18 = vcombine.low %v44_v16, %v60_v17 }
  0x95   :  { %3855 = vmatpush3.bf16.msra.mxu1 %v4189_v19  ;;  %3828 = vmatprep.subr.bf16.mxu0 %v4190_v20  ;;  %v3295_v19 = vcombine.high %v44_v16, %v60_v17  ;;  %v45_v20 = vld [vmem:[%s5498_s0 + $0x58] sm:$0xff]  ;;  %v47_v16 = vld [vmem:[%s5498_s0 + $0x68] sm:$0xff] }
  0x96   :  { %3856 = vmatprep.subr.bf16.mxu1 %v4191_v21  ;;  %v61_v21 = vld [vmem:[%s5498_s0 + $0xd8] sm:$0xff] }
  0x98   :  { %3829 = vmatpush3.bf16.msra.mxu0 %v4192_v22  ;;  %v3296_v22 = vcombine.low %v45_v20, %v61_v21 }
  0x99   :  { %3857 = vmatpush3.bf16.msra.mxu1 %v4193_v23  ;;  %3830 = vmatprep.subr.bf16.mxu0 %v4194_v24  ;;  %v3297_v23 = vcombine.high %v45_v20, %v61_v21  ;;  %v4234_v24 = vld [vmem:[%s5497_s1 + $0x678] sm:$0xff]  }
  0x9a   :  { %3858 = vmatprep.subr.bf16.mxu1 %v4195_v25  ;;  %v4235_v25 = vld [vmem:[%s5497_s1 + $0x6f8] sm:$0xff]  }
  0x9c   :  { %3831 = vmatpush3.bf16.msra.mxu0 %v4196_v26  ;;  %v4236_v26 = vld [vmem:[%s5497_s1 + $0x638] sm:$0xff]  }
  0x9d   :  { %3859 = vmatpush3.bf16.msra.mxu1 %v4197_v27  ;;  %3832 = vmatprep.subr.bf16.mxu0 %v4198_v28  ;;  %v4237_v27 = vld [vmem:[%s5497_s1 + $0x6b8] sm:$0xff]   ;;  %v4238_v28 = vld [vmem:[%s5497_s1 + $0x670] sm:$0xff]  }
  0x9e   :  { %3860 = vmatprep.subr.bf16.mxu1 %v4199_v29  ;;  %v4239_v29 = vld [vmem:[%s5497_s1 + $0x6f0] sm:$0xff]  }
  0xa0   :  { %3833 = vmatpush3.bf16.msra.mxu0 %v4200_v30  ;;  %v4240_v30 = vld [vmem:[%s5497_s1 + $0x630] sm:$0xff]  }
  0xa1   :  { %3861 = vmatpush3.bf16.msra.mxu1 %v4201_v31  ;;  %3874 = vmatprep.subr.bf16.mxu0 %v4202_v40  ;;  %v4241_v31 = vld [vmem:[%s5497_s1 + $0x6b0] sm:$0xff]  }
  0xa2   :  { %3902 = vmatprep.subr.bf16.mxu1 %v4203_v41  ;;  %v4244_v41 = vld [vmem:[%s5497_s1 + $0x628] sm:$0xff]  }
  0xa3   :  { %2891 = vmatmul.mubr.bf16.vlgmr.msra.gmra.mxu0 %v3290_v36  ;;  %v4242_v36 = vld [vmem:[%s5497_s1 + $0x668] sm:$0xff]  }
  0xa4   :  { %2940 = vmatmul.mubr.bf16.vlgmr.msra.gmra.mxu1 %v3292_v38  ;;  %3875 = vmatpush3.bf16.msra.mxu0 %v4204_v42  ;;  %v77_v38 = vld [vmem:[%s5498_s0 + $0x158] sm:$0xff] }
  0xa5   :  { %3903 = vmatpush3.bf16.msra.mxu1 %v4205_v43  ;;  %3876 = vmatprep.subr.bf16.mxu0 %v4206_v44  ;;  %v3329_v40 = vcombine.high %v77_v38, %v93_v39  ;;  %v3328_v42 = vcombine.low %v77_v38, %v93_v39  ;;  %v4245_v43 = vld [vmem:[%s5497_s1 + $0x6a8] sm:$0xff]   ;;  %v4246_v44 = vld [vmem:[%s5497_s1 + $0x660] sm:$0xff]  }
  0xa6   :  { %3904 = vmatprep.subr.bf16.mxu1 %v4207_v45  ;;  %2898 = vmatprep.mubr.bf16.mxu0 %v3323_v50  ;;  %v4247_v45 = vld [vmem:[%s5497_s1 + $0x6e0] sm:$0xff]   ;;  %v4252_v50 = vld [vmem:[%s5497_s1 + $0x618] sm:$0xff]   ;;  %v79_v39 = vld [vmem:[%s5498_s0 + $0x168] sm:$0xff] }
  0xa7   :  { %2947 = vmatprep.mubr.bf16.mxu1 %v3325_v56  ;;  %v4256_v56 = vld [vmem:[%s5497_s1 + $0x610] sm:$0xff]  }
  0xa8   :  { %3877 = vmatpush3.bf16.msra.mxu0 %v4208_v46  ;;  %v4248_v46 = vld [vmem:[%s5497_s1 + $0x620] sm:$0xff]  }
  0xa9   :  { %3905 = vmatpush3.bf16.msra.mxu1 %v4209_v47  ;;  %3878 = vmatprep.subr.bf16.mxu0 %v4210_v52  ;;  %v4249_v47 = vld [vmem:[%s5497_s1 + $0x6a0] sm:$0xff]   ;;  %v4254_v52 = vld [vmem:[%s5497_s1 + $0x650] sm:$0xff]  }
  0xaa   :  { %3906 = vmatprep.subr.bf16.mxu1 %v4211_v53 }
  0xab   :  { %2899 = vmatmul.mubr.bf16.gmra.mxu0 %v3322_v51  ;;  %v4253_v51 = vld [vmem:[%s5497_s1 + $0x698] sm:$0xff]  }
  0xac   :  { %3879 = vmatpush3.bf16.msra.mxu0 %v4212_v57  ;;  %2948 = vmatmul.mubr.bf16.gmra.mxu1 %v3324_v58  ;;  %v4257_v58 = vld [vmem:[%s5497_s1 + $0x690] sm:$0xff]  }
  0xad   :  { %3907 = vmatpush3.bf16.msra.mxu1 %v4213_v59  ;;  %3880 = vmatprep.subr.bf16.mxu0 %v4214_v60 }
  0xae   :  { %3908 = vmatprep.subr.bf16.mxu1 %v4215_v61  ;;  %2988 = vmatprep.mubr.bf16.mxu0 %v3295_v19  ;;  %v4258_v61 = vld [vmem:[%s5497_s1 + $0x648] sm:$0xff]  }
  0xaf   :  { %3037 = vmatprep.mubr.bf16.mxu1 %v3297_v23  ;;  %v63_v19 = vld [vmem:[%s5498_s0 + $0xe8] sm:$0xff]  ;;  %v4267_v23 = vld [vmem:[%s5497_s1 + $0x7f8] sm:$0xff]  }
  0xb0   :  { %3881 = vmatpush3.bf16.msra.mxu0 %v4216_v62  ;;  %v3300_v20 = vcombine.low %v47_v16, %v63_v19  ;;  %v3301_v21 = vcombine.high %v47_v16, %v63_v19 }
  0xb1   :  { %3909 = vmatpush3.bf16.msra.mxu1 %v4217_v63  ;;  %3882 = vmatprep.subr.bf16.mxu0 %v4218_v0  ;;  %v4259_v0 = vld [vmem:[%s5497_s1 + $0x6c8] sm:$0xff]  }
  0xb2   :  { %3910 = vmatprep.subr.bf16.mxu1 %v4219_v1 }
  0xb4   :  { %3883 = vmatpush3.bf16.msra.mxu0 %v4220_v2  ;;  %v4260_v2 = vld [vmem:[%s5497_s1 + $0x608] sm:$0xff]  }
  0xb5   :  { %3911 = vmatpush3.bf16.msra.mxu1 %v4221_v3  ;;  %3884 = vmatprep.subr.bf16.mxu0 %v4222_v4 }
  0xb6   :  { %3912 = vmatprep.subr.bf16.mxu1 %v4223_v5  ;;  %v4261_v5 = vld [vmem:[%s5497_s1 + $0x688] sm:$0xff]  }
  0xb8   :  { %3885 = vmatpush3.bf16.msra.mxu0 %v4224_v6 }
  0xb9   :  { %3913 = vmatpush3.bf16.msra.mxu1 %v4225_v7  ;;  %3886 = vmatprep.subr.bf16.mxu0 %v4226_v8  ;;  %v4262_v8 = vld [vmem:[%s5497_s1 + $0x640] sm:$0xff]  }
  0xba   :  { %3914 = vmatprep.subr.bf16.mxu1 %v4227_v9 }
  0xbc   :  { %3887 = vmatpush3.bf16.msra.mxu0 %v4228_v10  ;;  %v4263_v10 = vld [vmem:[%s5497_s1 + $0x6c0] sm:$0xff]  }
  0xbd   :  { %3915 = vmatpush3.bf16.msra.mxu1 %v4229_v11  ;;  %3888 = vmatprep.subr.bf16.mxu0 %v4230_v12  ;;  %v4264_v11 = vld [vmem:[%s5497_s1 + $0x600] sm:$0xff]  }
  0xbe   :  { %3916 = vmatprep.subr.bf16.mxu1 %v4231_v13  ;;  %v4265_v13 = vld [vmem:[%s5497_s1 + $0x680] sm:$0xff]  }
  0xc0   :  { %3889 = vmatpush3.bf16.msra.mxu0 %v4232_v14  ;;  %v46_v14 = vld [vmem:[%s5498_s0 + $0x60] sm:$0xff] }
  0xc1   :  { %3917 = vmatpush3.bf16.msra.mxu1 %v4233_v15  ;;  %3930 = vmatprep.subr.bf16.mxu0 %v4234_v24  ;;  %v62_v15 = vld [vmem:[%s5498_s0 + $0xe0] sm:$0xff]  ;;  %v4268_v24 = vld [vmem:[%s5497_s1 + $0x738] sm:$0xff]  }
  0xc2   :  { %3958 = vmatprep.subr.bf16.mxu1 %v4235_v25  ;;  %v3298_v17 = vcombine.low %v46_v14, %v62_v15  ;;  %v4269_v25 = vld [vmem:[%s5497_s1 + $0x7b8] sm:$0xff]  }
  0xc3   :  { %2989 = vmatmul.mubr.bf16.vlgmr.msra.gmra.mxu0 %v3294_v18  ;;  %v3299_v18 = vcombine.high %v46_v14, %v62_v15  ;;  %v4291_v15 = vld [vmem:[%s5497_s1 + $0x7c8] sm:$0xff]  }
  0xc4   :  { %3038 = vmatmul.mubr.bf16.vlgmr.msra.gmra.mxu1 %v3296_v22  ;;  %3931 = vmatpush3.bf16.msra.mxu0 %v4236_v26  ;;  %v4266_v22 = vld [vmem:[%s5497_s1 + $0x778] sm:$0xff]   ;;  %v4270_v26 = vld [vmem:[%s5497_s1 + $0x770] sm:$0xff]  }
  0xc5   :  { %3959 = vmatpush3.bf16.msra.mxu1 %v4237_v27  ;;  %3932 = vmatprep.subr.bf16.mxu0 %v4238_v28  ;;  %v4271_v27 = vld [vmem:[%s5497_s1 + $0x7f0] sm:$0xff]  }
  0xc6   :  { %3960 = vmatprep.subr.bf16.mxu1 %v4239_v29  ;;  %2996 = vmatprep.mubr.bf16.mxu0 %v3327_v34  ;;  %v4272_v28 = vld [vmem:[%s5497_s1 + $0x730] sm:$0xff]  }
  0xc7   :  { %3045 = vmatprep.mubr.bf16.mxu1 %v3329_v40  ;;  %v4273_v29 = vld [vmem:[%s5497_s1 + $0x7b0] sm:$0xff]   ;;  %v95_v40 = vld [vmem:[%s5498_s0 + $0x1e8] sm:$0xff] }
  0xc8   :  { %3933 = vmatpush3.bf16.msra.mxu0 %v4240_v30  ;;  %v78_v30 = vld [vmem:[%s5498_s0 + $0x160] sm:$0xff] }
  0xc9   :  { %3961 = vmatpush3.bf16.msra.mxu1 %v4241_v31  ;;  %3934 = vmatprep.subr.bf16.mxu0 %v4242_v36  ;;  %v94_v31 = vld [vmem:[%s5498_s0 + $0x1e0] sm:$0xff] }
  0xca   :  { %3962 = vmatprep.subr.bf16.mxu1 %v4243_v37  ;;  %v3331_v33 = vcombine.high %v78_v30, %v94_v31  ;;  %v3330_v34 = vcombine.low %v78_v30, %v94_v31  ;;  %v4275_v37 = vld [vmem:[%s5497_s1 + $0x7e8] sm:$0xff]  }
  0xcb   :  { %2997 = vmatmul.mubr.bf16.gmra.mxu0 %v3326_v35  ;;  %v4274_v35 = vld [vmem:[%s5497_s1 + $0x768] sm:$0xff]  }
  0xcc   :  { %3935 = vmatpush3.bf16.msra.mxu0 %v4244_v41  ;;  %3046 = vmatmul.mubr.bf16.gmra.mxu1 %v3328_v42 }
  0xcd   :  { %3963 = vmatpush3.bf16.msra.mxu1 %v4245_v43  ;;  %3936 = vmatprep.subr.bf16.mxu0 %v4246_v44  ;;  %v3333_v43 = vcombine.high %v79_v39, %v95_v40  ;;  %v4276_v44 = vld [vmem:[%s5497_s1 + $0x728] sm:$0xff]  }
  0xce   :  { %3964 = vmatprep.subr.bf16.mxu1 %v4247_v45  ;;  %3086 = vmatprep.mubr.bf16.mxu0 %v3299_v18  ;;  %v3332_v45 = vcombine.low %v79_v39, %v95_v40  ;;  %v80_v39 = vld [vmem:[%s5498_s0 + $0x170] sm:$0xff] }
  0xcf   :  { %3135 = vmatprep.mubr.bf16.mxu1 %v3301_v21  ;;  %v96_v40 = vld [vmem:[%s5498_s0 + $0x1f0] sm:$0xff] }
  0xd0   :  { %3937 = vmatpush3.bf16.msra.mxu0 %v4248_v46 }
  0xd1   :  { %3965 = vmatpush3.bf16.msra.mxu1 %v4249_v47  ;;  %3938 = vmatprep.subr.bf16.mxu0 %v4250_v48  ;;  %v4277_v48 = vld [vmem:[%s5497_s1 + $0x7a8] sm:$0xff]  }
  0xd2   :  { %3966 = vmatprep.subr.bf16.mxu1 %v4251_v49 }
  0xd4   :  { %3939 = vmatpush3.bf16.msra.mxu0 %v4252_v50  ;;  %v4278_v50 = vld [vmem:[%s5497_s1 + $0x760] sm:$0xff]  }
  0xd5   :  { %3967 = vmatpush3.bf16.msra.mxu1 %v4253_v51  ;;  %3940 = vmatprep.subr.bf16.mxu0 %v4254_v52 }
  0xd6   :  { %3968 = vmatprep.subr.bf16.mxu1 %v4255_v54 }
  0xd8   :  { %3941 = vmatpush3.bf16.msra.mxu0 %v4256_v56  ;;  %v4280_v56 = vld [vmem:[%s5497_s1 + $0x720] sm:$0xff]  }
  0xd9   :  { %3969 = vmatpush3.bf16.msra.mxu1 %v4257_v58  ;;  %3942 = vmatprep.subr.bf16.mxu0 %v4258_v61  ;;  %v4281_v58 = vld [vmem:[%s5497_s1 + $0x7a0] sm:$0xff]   ;;  %v4283_v61 = vld [vmem:[%s5497_s1 + $0x7d8] sm:$0xff]  }
  0xda   :  { %3970 = vmatprep.subr.bf16.mxu1 %v4259_v0  ;;  %v4286_v0 = vld [vmem:[%s5497_s1 + $0x750] sm:$0xff]  }
  0xdc   :  { %3943 = vmatpush3.bf16.msra.mxu0 %v4260_v2 }
  0xdd   :  { %3971 = vmatpush3.bf16.msra.mxu1 %v4261_v5  ;;  %3944 = vmatprep.subr.bf16.mxu0 %v4262_v8  ;;  %v4288_v5 = vld [vmem:[%s5497_s1 + $0x710] sm:$0xff]  }
  0xde   :  { %3972 = vmatprep.subr.bf16.mxu1 %v4263_v10  ;;  %v4289_v8 = vld [vmem:[%s5497_s1 + $0x790] sm:$0xff]  }
  0xe0   :  { %3945 = vmatpush3.bf16.msra.mxu0 %v4264_v11  ;;  %v4290_v11 = vld [vmem:[%s5497_s1 + $0x748] sm:$0xff]  }
  0xe1   :  { %3973 = vmatpush3.bf16.msra.mxu1 %v4265_v13  ;;  %3986 = vmatprep.subr.bf16.mxu0 %v4266_v22 }
  0xe2   :  { %4014 = vmatprep.subr.bf16.mxu1 %v4267_v23 }
  0xe3   :  { %v3610_v53 = vpop.f32.mrf.mxu0  ;;  %3087 = vmatmul.mubr.bf16.vlgmr.msra.gmra.mxu0 %v3298_v17  ;;  %v4292_v17 = vld [vmem:[%s5497_s1 + $0x708] sm:$0xff]  }
  0xe4   :  { %v3638_v55 = vpop.f32.mrf.mxu1  ;;  %3136 = vmatmul.mubr.bf16.vlgmr.msra.gmra.mxu1 %v3300_v20  ;;  %3987 = vmatpush3.bf16.msra.mxu0 %v4268_v24  ;;  %v4293_v20 = vld [vmem:[%s5497_s1 + $0x788] sm:$0xff]   ;;  %v4295_v24 = vld [vmem:[%s5497_s1 + $0x7c0] sm:$0xff]  }
  0xe5   :  { %v3611_v57 = vpop.f32.mrf.mxu0  ;;  %4015 = vmatpush3.bf16.msra.mxu1 %v4269_v25  ;;  %3988 = vmatprep.subr.bf16.mxu0 %v4270_v26 }
  0xe6   :  { %v3612_v59 = vadd.f32 %v3611_v57, %v3610_v53  ;;  %v3639_v60 = vpop.f32.mrf.mxu1  ;;  %4016 = vmatprep.subr.bf16.mxu1 %v4271_v27  ;;  %3094 = vmatprep.mubr.bf16.mxu0 %v3331_v33  ;;  %v4279_v53 = vld [vmem:[%s5497_s1 + $0x7e0] sm:$0xff]   ;;  %v65_v33 = vld [vmem:[%s5498_s0 + $0xf8] sm:$0xff] }
  0xe7   :  { %v3640_v62 = vadd.f32 %v3639_v60, %v3638_v55  ;;  %v3613_v63 = vpop.f32.mrf.mxu0  ;;  %3143 = vmatprep.mubr.bf16.mxu1 %v3333_v43  ;;  %v4296_v27 = vld [vmem:[%s5497_s1 + $0x700] sm:$0xff]  }
  0xe8   :  { %v3641_v1 = vpop.f32.mrf.mxu1  ;;  %3989 = vmatpush3.bf16.msra.mxu0 %v4272_v28  ;;  %v4297_v28 = vld [vmem:[%s5497_s1 + $0x780] sm:$0xff]  }
  0xe9   :  { %v5119_v3 = vadd.f32 %v3640_v62, %v3612_v59  ;;  %v3614_v4 = vpop.f32.mrf.mxu0  ;;  %4017 = vmatpush3.bf16.msra.mxu1 %v4273_v29  ;;  %3990 = vmatprep.subr.bf16.mxu0 %v4274_v35  ;;  %v4282_v59 = vld [vmem:[%s5497_s1 + $0x758] sm:$0xff]   ;;  %v48_v29 = vld [vmem:[%s5498_s0 + $0x70] sm:$0xff] }
  0xea   :  { %v3615_v6 = vadd.f32 %v3614_v4, %v3613_v63  ;;  %v3642_v7 = vpop.f32.mrf.mxu1  ;;  %4018 = vmatprep.subr.bf16.mxu1 %v4275_v37  ;;  %v4284_v62 = vld [vmem:[%s5497_s1 + $0x718] sm:$0xff]   ;;  %v4287_v4 = vld [vmem:[%s5497_s1 + $0x7d0] sm:$0xff]  }
  0xeb   :  { %v3643_v9 = vadd.f32 %v3642_v7, %v3641_v1  ;;  %v3616_v32 = vpop.f32.mrf.mxu0  ;;  %3095 = vmatmul.mubr.bf16.gmra.mxu0 %v3330_v34  ;;  %v4285_v63 = vld [vmem:[%s5497_s1 + $0x798] sm:$0xff]  }
  0xec   :  { %v3644_v36 = vpop.f32.mrf.mxu1  ;;  %3991 = vmatpush3.bf16.msra.mxu0 %v4276_v44  ;;  %3144 = vmatmul.mubr.bf16.gmra.mxu1 %v3332_v45  ;;  %v3335_v44 = vcombine.high %v80_v39, %v96_v40  ;;  %v97_v45 = vld [vmem:[%s5498_s0 + $0x1f8] sm:$0xff] }
  0xed   :  { %v5133_v12 = vadd.f32 %v3643_v9, %v3615_v6  ;;  %v3617_v38 = vpop.f32.mrf.mxu0  ;;  %4019 = vmatpush3.bf16.msra.mxu1 %v4277_v48  ;;  %3992 = vmatprep.subr.bf16.mxu0 %v4278_v50 }
  0xee   :  { %v3618_v41 = vadd.f32 %v3617_v38, %v3616_v32  ;;  %v3645_v42 = vpop.f32.mrf.mxu1  ;;  %4020 = vmatprep.subr.bf16.mxu1 %v4279_v53  ;;  %v49_v32 = vld [vmem:[%s5498_s0 + $0x78] sm:$0xff] }
  0xef   :  { %v3646_v46 = vadd.f32 %v3645_v42, %v3644_v36  ;;  %v3619_v47 = vpop.f32.mrf.mxu0  ;;  %v3304_v37 = vcombine.low %v49_v32, %v65_v33  ;;  %v3305_v38 = vcombine.high %v49_v32, %v65_v33 }
  0xf0   :  { %v3647_v49 = vpop.f32.mrf.mxu1  ;;  %3993 = vmatpush3.bf16.msra.mxu0 %v4280_v56 }
  0xf1   :  { %v5201_v51 = vadd.f32 %v3646_v46, %v3618_v41  ;;  %v3620_v52 = vpop.f32.mrf.mxu0  ;;  %4021 = vmatpush3.bf16.msra.mxu1 %v4281_v58  ;;  %3994 = vmatprep.subr.bf16.mxu0 %v4282_v59  ;;  %v81_v41 = vld [vmem:[%s5498_s0 + $0x178] sm:$0xff] }
  0xf2   :  { %v3621_v54 = vadd.f32 %v3620_v52, %v3619_v47  ;;  %v3648_v55 = vpop.f32.mrf.mxu1  ;;  %4022 = vmatprep.subr.bf16.mxu1 %v4283_v61  ;;  %3233 = vmatprep.mubr.bf16.mxu1 %v3305_v38  ;;  %v3337_v47 = vcombine.high %v81_v41, %v97_v45  ;;  %v3336_v58 = vcombine.low %v81_v41, %v97_v45 }
  0xf3   :  { %v3649_v57 = vadd.f32 %v3648_v55, %v3647_v49 }
  0xf4   :  { %3995 = vmatpush3.bf16.msra.mxu0 %v4284_v62 }
  0xf5   :  { %v5215_v60 = vadd.f32 %v3649_v57, %v3621_v54  ;;  %4023 = vmatpush3.bf16.msra.mxu1 %v4285_v63  ;;  %3996 = vmatprep.subr.bf16.mxu0 %v4286_v0  ;;  %v3334_v57 = vcombine.low %v80_v39, %v96_v40 }
  0xf6   :  { %4024 = vmatprep.subr.bf16.mxu1 %v4287_v4 }
  0xf8   :  { %3997 = vmatpush3.bf16.msra.mxu0 %v4288_v5 }
  0xf9   :  { %4025 = vmatpush3.bf16.msra.mxu1 %v4289_v8  ;;  %3998 = vmatprep.subr.bf16.mxu0 %v4290_v11 }
  0xfa   :  { %4026 = vmatprep.subr.bf16.mxu1 %v4291_v15 }
  0xfc   :  { %3999 = vmatpush3.bf16.msra.mxu0 %v4292_v17 }
  0xfd   :  { %4027 = vmatpush3.bf16.msra.mxu1 %v4293_v20 }
  0xfe   :  { %4028 = vmatprep.subr.bf16.mxu1 %v4295_v24 }
 0x101   :  { %4029 = vmatpush3.bf16.msra.mxu1 %v4297_v28 }
 0x103   :  { %v3666_v1 = vpop.f32.mrf.mxu0 }
 0x104   :  { %v3694_v2 = vpop.f32.mrf.mxu1  ;;  %3234 = vmatmul.mubr.bf16.vlgmr.msra.gmra.mxu1 %v3304_v37 }
 0x105   :  { %v3667_v6 = vpop.f32.mrf.mxu0  ;;  %3241 = vmatprep.mubr.bf16.mxu1 %v3337_v47 }
 0x106   :  { %v3695_v7 = vpop.f32.mrf.mxu1  ;;  %v3668_v9 = vadd.f32 %v3667_v6, %v3666_v1 }
 0x107   :  { %v3696_v10 = vadd.f32 %v3695_v7, %v3694_v2  ;;  %v3669_v13 = vpop.f32.mrf.mxu0 }
 0x108   :  { %v3697_v14 = vpop.f32.mrf.mxu1  ;;  %v2599_v16 = vadd.f32 %v3668_v9, %v5119_v3  ;;  %v4294_v3 = vld [vmem:[%s5497_s1 + $0x740] sm:$0xff]  }
 0x109   :  { %v3670_v18 = vpop.f32.mrf.mxu0  ;;  %4000 = vmatprep.subr.bf16.mxu0 %v4294_v3 }
 0x10a   :  { %v3698_v19 = vpop.f32.mrf.mxu1  ;;  %v5251_v21 = vadd.f32 %v3696_v10, %v2599_v16  ;;  %v3671_v22 = vadd.f32 %v3670_v18, %v3669_v13  ;;  %4001 = vmatpush3.bf16.msra.mxu0 %v4296_v27 }
 0x10b   :  { %v3699_v23 = vadd.f32 %v3698_v19, %v3697_v14  ;;  %v3672_v26 = vpop.f32.mrf.mxu0 }
 0x10c   :  { %v2602_v25 = vadd.f32 %v3671_v22, %v5133_v12  ;;  %v64_v12 = vld [vmem:[%s5498_s0 + $0xf0] sm:$0xff]  ;;  %v3700_v42 = vpop.f32.mrf.mxu1  ;;  %3242 = vmatmul.mubr.bf16.gmra.mxu1 %v3336_v58 }
 0x10d   :  { %v3673_v31 = vpop.f32.mrf.mxu0  ;;  %v3302_v35 = vcombine.low %v48_v29, %v64_v12  ;;  %v3303_v36 = vcombine.high %v48_v29, %v64_v12 }
 0x10e   :  { %v5269_v30 = vadd.f32 %v3699_v23, %v2602_v25  ;;  %v3674_v34 = vadd.f32 %v3673_v31, %v3672_v26  ;;  %v3701_v48 = vpop.f32.mrf.mxu1 }
 0x10f   :  { %v3675_v43 = vpop.f32.mrf.mxu0  ;;  %3184 = vmatprep.mubr.bf16.mxu0 %v3303_v36  ;;  %v3702_v50 = vadd.f32 %v3701_v48, %v3700_v42 }
 0x110   :  { %v2607_v46 = vadd.f32 %v3674_v34, %v5201_v51  ;;  %3185 = vmatmul.mubr.bf16.vlgmr.msra.gmra.mxu0 %v3302_v35  ;;  %v3703_v53 = vpop.f32.mrf.mxu1 }
 0x111   :  { %v3676_v49 = vpop.f32.mrf.mxu0  ;;  %3192 = vmatprep.mubr.bf16.mxu0 %v3335_v44 }
 0x112   :  { %v3677_v52 = vadd.f32 %v3676_v49, %v3675_v43  ;;  %v5293_v54 = vadd.f32 %v3702_v50, %v2607_v46  ;;  %v3704_v56 = vpop.f32.mrf.mxu1 }
 0x113   :  { %v3705_v51 = vadd.f32 %v3704_v56, %v3703_v53 }
 0x114   :  { %v2610_v55 = vadd.f32 %v3677_v52, %v5215_v60 }
 0x116   :  { %v5296_v59 = vadd.f32 %v3705_v51, %v2610_v55 }
 0x118   :  { %3193 = vmatmul.mubr.bf16.gmra.mxu0 %v3334_v57 }
 0x123   :  { %v5298_v61 = vpop.f32.mrf.mxu0 }
 0x124   :  { %v5304_v0 = vpop.f32.mrf.mxu1 }
 0x125   :  { %v5300_v62 = vpop.f32.mrf.mxu0 }
 0x126   :  { %v5308_v2 = vpop.f32.mrf.mxu1 }
 0x127   :  { %v5302_v63 = vpop.f32.mrf.mxu0 }
 0x128   :  { %v5312_v4 = vpop.f32.mrf.mxu1 }
 0x129   :  { %v5306_v1 = vpop.f32.mrf.mxu0 }
 0x12a   :  { %v5316_v6 = vpop.f32.mrf.mxu1 }
 0x12b   :  { %v5310_v60 = vpop.f32.mrf.mxu0 }
 0x12c   :  { %v5318_v7 = vpop.f32.mrf.mxu1 }
 0x12d   :  { %v5314_v5 = vpop.f32.mrf.mxu0 }
 0x12e   :  { %v5322_v9 = vpop.f32.mrf.mxu1 }
 0x12f   :  { %v5320_v8 = vpop.f32.mrf.mxu0 }
 0x130   :  { %v5326_v13 = vpop.f32.mrf.mxu1 }
 0x131   :  { %v5324_v10 = vpop.f32.mrf.mxu0 }
 0x132   :  { %v5328_v15 = vpop.f32.mrf.mxu1 }
 0x143   :  { %v3778_v11 = vpop.f32.mrf.mxu0 }
 0x144   :  { %v3806_v16 = vpop.f32.mrf.mxu1 }
 0x145   :  { %v3779_v14 = vpop.f32.mrf.mxu0 }
 0x146   :  { %v3807_v18 = vpop.f32.mrf.mxu1 }
 0x147   :  { %v3781_v17 = vpop.f32.mrf.mxu0 }
 0x148   :  { %v5330_v20 = vpop.f32.mrf.mxu1 }
 0x149   :  { %v3782_v19 = vpop.f32.mrf.mxu0 }
 0x14a   :  { %v5334_v23 = vpop.f32.mrf.mxu1 }
 0x14b   :  { %v5332_v22 = vpop.f32.mrf.mxu0 }
 0x14c   :  { %v5338_v24 = vpop.f32.mrf.mxu1 }
 0x14d   :  { %v5336_v3 = vpop.f32.mrf.mxu0 }
 0x14e   :  { %v5342_v26 = vpop.f32.mrf.mxu1 }
 0x14f   :  { %v5340_v25 = vpop.f32.mrf.mxu0 }
 0x150   :  { %v5346_v28 = vpop.f32.mrf.mxu1 }
 0x151   :  { %v5344_v27 = vpop.f32.mrf.mxu0 }
 0x152   :  { %v5348_v31 = vpop.f32.mrf.mxu1 }
 0x163   :  { %v3834_v29 = vpop.f32.mrf.mxu0 }
 0x164   :  { %v5350_v32 = vpop.f32.mrf.mxu1 }
 0x165   :  { %v3835_v12 = vpop.f32.mrf.mxu0 }
 0x166   :  { %v5354_v34 = vpop.f32.mrf.mxu1 }
 0x167   :  { %v5352_v33 = vpop.f32.mrf.mxu0 }
 0x168   :  { %v5358_v36 = vpop.f32.mrf.mxu1 }
 0x169   :  { %v5356_v35 = vpop.f32.mrf.mxu0 }
 0x16a   :  { %v5362_v38 = vpop.f32.mrf.mxu1 }
 0x16b   :  { %v5360_v37 = vpop.f32.mrf.mxu0 }
 0x16c   :  { %v5366_v40 = vpop.f32.mrf.mxu1 }
 0x16d   :  { %v5364_v39 = vpop.f32.mrf.mxu0 }
 0x16e   :  { %v5370_v42 = vpop.f32.mrf.mxu1 }
 0x16f   :  { %v5368_v41 = vpop.f32.mrf.mxu0  ;;  %5502 = vst [vmem:[#allocation4_spill] sm:$0xff] %v5370_v42 }
 0x170   :  { %5501 = vst [vmem:[#allocation3_spill] sm:$0xff] %v5368_v41  ;;  %v5374_v44 = vpop.f32.mrf.mxu1 }
 0x171   :  { %v5372_v43 = vpop.f32.mrf.mxu0  ;;  %5504 = vst [vmem:[#allocation6_spill] sm:$0xff] %v5374_v44 }
 0x172   :  { %5503 = vst [vmem:[#allocation5_spill] sm:$0xff] %v5372_v43  ;;  %v5376_v46 = vpop.f32.mrf.mxu1 }
 0x173   :  { %5505 = vst [vmem:[#allocation7_spill] sm:$0xff] %v5376_v46 }
 0x183   :  { %v3890_v45 = vpop.f32.mrf.mxu0 }
 0x184   :  { %v5378_v47 = vpop.f32.mrf.mxu1 }
 0x185   :  { %v3891_v48 = vpop.f32.mrf.mxu0 }
 0x186   :  { %v5380_v49 = vpop.f32.mrf.mxu1 }
 0x187   :  { %v5382_v50 = vpop.f32.mrf.mxu0 }
 0x188   :  { %v5384_v52 = vpop.f32.mrf.mxu1 }
 0x189   :  { %5506 = vst [vmem:[#allocation8_spill] sm:$0xff] %v5384_v52  ;;  %v5386_v53 = vpop.f32.mrf.mxu0 }
 0x18a   :  { %v5388_v55 = vpop.f32.mrf.mxu1 }
 0x18b   :  { %5507 = vst [vmem:[#allocation9_spill] sm:$0xff] %v5388_v55  ;;  %v5390_v56 = vpop.f32.mrf.mxu0  ;;  %v3724_v55 = vadd.f32 %v5300_v62, %v5298_v61 }
 0x18c   :  { %5508 = vst [vmem:[#allocation10_spill] sm:$0xff] %v5390_v56  ;;  %v5392_v57 = vpop.f32.mrf.mxu1 }
 0x18d   :  { %5509 = vst [vmem:[#allocation11_spill] sm:$0xff] %v5392_v57  ;;  %v5394_v58 = vpop.f32.mrf.mxu0  ;;  %v2697_v57 = vadd.f32 %v3724_v55, %v5251_v21  ;;  %v3755_v21 = vadd.f32 %v5316_v6, %v5312_v4  ;;  %v3783_v55 = vadd.f32 %v3782_v19, %v3781_v17  ;;  %v3839_v19 = vadd.f32 %v5356_v35, %v5352_v33 }
 0x18e   :  { %5510 = vst [vmem:[#allocation12_spill] sm:$0xff] %v5394_v58  ;;  %v5396_v51 = vpop.f32.mrf.mxu1  ;;  %v3817_v33 = vadd.f32 %v5348_v31, %v5346_v28 }
 0x18f   :  { %5511 = vst [vmem:[#allocation13_spill] sm:$0xff] %v5396_v51  ;;  %v5398_v46 = vpop.f32.mrf.mxu0  ;;  %v3752_v51 = vadd.f32 %v5308_v2, %v5304_v0  ;;  %v3808_v2 = vadd.f32 %v3807_v18, %v3806_v16  ;;  %v3864_v18 = vadd.f32 %v5354_v34, %v5350_v32 }
 0x190   :  { %5512 = vst [vmem:[#allocation14_spill] sm:$0xff] %v5398_v46  ;;  %v5400_v44 = vpop.f32.mrf.mxu1  ;;  %v3727_v46 = vadd.f32 %v5306_v1, %v5302_v63  ;;  %v3758_v1 = vadd.f32 %v5322_v9, %v5318_v7 }
 0x191   :  { %5513 = vst [vmem:[#allocation15_spill] sm:$0xff] %v5400_v44  ;;  %v5402_v43 = vpop.f32.mrf.mxu0  ;;  %v2746_v61 = vadd.f32 %v3752_v51, %v2697_v57 }
 0x192   :  { %5514 = vst [vmem:[#allocation16_spill] sm:$0xff] %v5402_v43  ;;  %v5404_v41 = vpop.f32.mrf.mxu1  ;;  %v3780_v43 = vadd.f32 %v3779_v14, %v3778_v11  ;;  %v2700_v62 = vadd.f32 %v3727_v46, %v5269_v30  ;;  %v3836_v14 = vadd.f32 %v3835_v12, %v3834_v29  ;;  %v3786_v30 = vadd.f32 %v5336_v3, %v5332_v22 }
 0x193   :  { %5515 = vst [vmem:[#allocation17_spill] sm:$0xff] %v5404_v41  ;;  %v3730_v41 = vadd.f32 %v5314_v5, %v5310_v60  ;;  %v3733_v60 = vadd.f32 %v5324_v10, %v5320_v8  ;;  %v3811_v8 = vadd.f32 %v5334_v23, %v5330_v20  ;;  %v3892_v3 = vadd.f32 %v3891_v48, %v3890_v45  ;;  %v5518_v45 = vld [vmem:[#allocation3_spill] sm:$0xff]  ;;  %v5519_v48 = vld [vmem:[#allocation5_spill] sm:$0xff] }
 0x194   :  { %v2795_v0 = vadd.f32 %v3780_v43, %v2746_v61  ;;  %v2749_v11 = vadd.f32 %v3755_v21, %v2700_v62  ;;  %v3842_v20 = vadd.f32 %v5364_v39, %v5360_v37  ;;  %v5517_v37 = vld [vmem:[#allocation4_spill] sm:$0xff]  ;;  %v3845_v57 = vadd.f32 %v5519_v48, %v5518_v45 }
 0x195   :  { %v2705_v63 = vadd.f32 %v3730_v41, %v5293_v54  ;;  %v2708_v17 = vadd.f32 %v3733_v60, %v5296_v59  ;;  %v3761_v54 = vadd.f32 %v5328_v15, %v5326_v13  ;;  %v3814_v59 = vadd.f32 %v5342_v26, %v5338_v24  ;;  %v5525_v60 = vld [vmem:[#allocation9_spill] sm:$0xff] }
 0x196   :  { %v2844_v4 = vadd.f32 %v3808_v2, %v2795_v0  ;;  %v2798_v6 = vadd.f32 %v3783_v55, %v2749_v11  ;;  %v3789_v13 = vadd.f32 %v5344_v27, %v5340_v25  ;;  %v3867_v24 = vadd.f32 %v5362_v38, %v5358_v36  ;;  %v5520_v36 = vld [vmem:[#allocation10_spill] sm:$0xff]  ;;  %v5521_v38 = vld [vmem:[#allocation12_spill] sm:$0xff] }
 0x197   :  { %v2754_v16 = vadd.f32 %v3758_v1, %v2705_v63  ;;  %v2757_v29 = vadd.f32 %v3761_v54, %v2708_v17  ;;  %v3920_v25 = vadd.f32 %v5380_v49, %v5378_v47  ;;  %v3895_v27 = vadd.f32 %v5386_v53, %v5382_v50  ;;  %v5522_v50 = vld [vmem:[#allocation6_spill] sm:$0xff]  ;;  %v5523_v53 = vld [vmem:[#allocation7_spill] sm:$0xff]  ;;  %v5524_v1 = vld [vmem:[#allocation8_spill] sm:$0xff] }
 0x198   :  { %v2893_v10 = vadd.f32 %v3836_v14, %v2844_v4  ;;  %v2847_v15 = vadd.f32 %v3811_v8, %v2798_v6  ;;  %v3870_v39 = vadd.f32 %v5517_v37, %v5366_v40  ;;  %v3898_v21 = vadd.f32 %v5521_v38, %v5520_v36  ;;  %v5527_v6 = vld [vmem:[#allocation11_spill] sm:$0xff]  ;;  %v5529_v54 = vld [vmem:[#allocation14_spill] sm:$0xff] }
 0x199   :  { %v2803_v22 = vadd.f32 %v3786_v30, %v2754_v16  ;;  %v2806_v43 = vadd.f32 %v3789_v13, %v2757_v29  ;;  %v3873_v55 = vadd.f32 %v5523_v53, %v5522_v50  ;;  %v3923_v11 = vadd.f32 %v5525_v60, %v5524_v1  ;;  %v5528_v16 = vld [vmem:[#allocation13_spill] sm:$0xff]  ;;  %v5530_v8 = vld [vmem:[#allocation16_spill] sm:$0xff] }
 0x19a   :  { %v2942_v41 = vadd.f32 %v3864_v18, %v2893_v10  ;;  %v2896_v32 = vadd.f32 %v3839_v19, %v2847_v15  ;;  %v3926_v17 = vadd.f32 %v5528_v16, %v5527_v6  ;;  %v3901_v10 = vadd.f32 %v5530_v8, %v5529_v54 }
 0x19b   :  { %v2852_v34 = vadd.f32 %v3814_v59, %v2803_v22  ;;  %v2855_v62 = vadd.f32 %v3817_v33, %v2806_v43  ;;  %v5532_v43 = vld [vmem:[#allocation17_spill] sm:$0xff] }
 0x19c   :  { %v2991_v26 = vadd.f32 %v3892_v3, %v2942_v41  ;;  %v2945_v28 = vadd.f32 %v3867_v24, %v2896_v32 }
 0x19d   :  { %v2901_v35 = vadd.f32 %v3842_v20, %v2852_v34  ;;  %v2904_v2 = vadd.f32 %v3845_v57, %v2855_v62  ;;  %v5531_v34 = vld [vmem:[#allocation15_spill] sm:$0xff] }
 0x19e   :  { %v3040_v0 = vadd.f32 %v3920_v25, %v2991_v26  ;;  %v2994_v47 = vadd.f32 %v3895_v27, %v2945_v28  ;;  %v3929_v33 = vadd.f32 %v5532_v43, %v5531_v34 }
 0x19f   :  { %v2950_v49 = vadd.f32 %v3870_v39, %v2901_v35  ;;  %v2953_v59 = vadd.f32 %v3873_v55, %v2904_v2 }
 0x1a0   :  { %v3043_v22 = vadd.f32 %v3923_v11, %v2994_v47 }
 0x1a1   :  { %v2999_v4 = vadd.f32 %v3898_v21, %v2950_v49  ;;  %v3002_v32 = vadd.f32 %v3901_v10, %v2953_v59 }
 0x1a3   :  { %v3946_v52 = vpop.f32.mrf.mxu0  ;;  %v3051_v62 = vadd.f32 %v3929_v33, %v3002_v32 }
 0x1a4   :  { %v5408_v42 = vpop.f32.mrf.mxu1 }
 0x1a5   :  { %5516 = vst [vmem:[#allocation18_spill] sm:$0xff] %v5408_v42  ;;  %v3947_v56 = vpop.f32.mrf.mxu0 }
 0x1a6   :  { %v5415_v44 = vpop.f32.mrf.mxu1  ;;  %v3948_v31 = vadd.f32 %v3947_v56, %v3946_v52 }
 0x1a7   :  { %v5419_v58 = vpop.f32.mrf.mxu0 }
 0x1a8   :  { %v5422_v42 = vpop.f32.mrf.mxu1  ;;  %v3089_v14 = vadd.f32 %v3948_v31, %v3040_v0 }
 0x1a9   :  { %v3950_v5 = vpop.f32.mrf.mxu0 }
 0x1aa   :  { %v5433_v46 = vpop.f32.mrf.mxu1  ;;  %v3951_v56 = vadd.f32 %v3950_v5, %v5419_v58 }
 0x1ab   :  { %v3952_v7 = vpop.f32.mrf.mxu0  ;;  %v3979_v24 = vadd.f32 %v5433_v46, %v5422_v42 }
 0x1ac   :  { %v5438_v9 = vpop.f32.mrf.mxu1  ;;  %v5526_v30 = vld [vmem:[#allocation18_spill] sm:$0xff]  ;;  %v3092_v20 = vadd.f32 %v3951_v56, %v3043_v22 }
 0x1ad   :  { %v3953_v23 = vpop.f32.mrf.mxu0  ;;  %v3976_v52 = vadd.f32 %v5415_v44, %v5526_v30  ;;  %v3048_v44 = vadd.f32 %v3926_v17, %v2999_v4 }
 0x1ae   :  { %v3981_v12 = vpop.f32.mrf.mxu1  ;;  %v3954_v13 = vadd.f32 %v3953_v23, %v3952_v7  ;;  %v3273_v23 = vld [vmem:[%s5499_s2] ss:$0 sm:$0xff]  ;;  %v3141_v39 = vadd.f32 %v3979_v24, %v3092_v20 }
 0x1af   :  { %v3955_v51 = vpop.f32.mrf.mxu0  ;;  %v3138_v29 = vadd.f32 %v3976_v52, %v3089_v14  ;;  %v3982_v7 = vadd.f32 %v3981_v12, %v5438_v9 }
 0x1b0   :  { %v3983_v61 = vpop.f32.mrf.mxu1  ;;  %v3097_v27 = vadd.f32 %v3954_v13, %v3048_v44 }
 0x1b1   :  { %v3956_v63 = vpop.f32.mrf.mxu0 }
 0x1b2   :  { %v3984_v40 = vpop.f32.mrf.mxu1  ;;  %v3957_v45 = vadd.f32 %v3956_v63, %v3955_v51  ;;  %v3146_v38 = vadd.f32 %v3982_v7, %v3097_v27 }
 0x1b3   :  { %v3985_v12 = vadd.f32 %v3984_v40, %v3983_v61 }
 0x1b4   :  { %v3100_v9 = vadd.f32 %v3957_v45, %v3051_v62 }
 0x1b6   :  { %v3149_v60 = vadd.f32 %v3985_v12, %v3100_v9 }
 0x1c4   :  { %v4030_v19 = vpop.f32.mrf.mxu1 }
 0x1c6   :  { %v4031_v3 = vpop.f32.mrf.mxu1 }
 0x1c7   :  { %v4032_v25 = vadd.f32 %v4031_v3, %v4030_v19 }
 0x1c8   :  { %v4033_v5 = vpop.f32.mrf.mxu1 }
 0x1ca   :  { %v4034_v37 = vpop.f32.mrf.mxu1 }
 0x1cb   :  { %v4035_v46 = vadd.f32 %v4034_v37, %v4033_v5 }
 0x1cc   :  { %v4036_v31 = vpop.f32.mrf.mxu1 }
 0x1ce   :  { %v4037_v0 = vpop.f32.mrf.mxu1 }
 0x1cf   :  { %v4038_v55 = vadd.f32 %v4037_v0, %v4036_v31 }
 0x1d0   :  { %v4002_v18 = vpop.f32.mrf.mxu0  ;;  %v4039_v2 = vpop.f32.mrf.mxu1 }
 0x1d2   :  { %v4003_v15 = vpop.f32.mrf.mxu0  ;;  %v4040_v1 = vpop.f32.mrf.mxu1 }
 0x1d3   :  { %v4004_v41 = vadd.f32 %v4003_v15, %v4002_v18  ;;  %v4041_v30 = vadd.f32 %v4040_v1, %v4039_v2 }
 0x1d4   :  { %v4005_v58 = vpop.f32.mrf.mxu0 }
 0x1d5   :  { %v3187_v26 = vadd.f32 %v4004_v41, %v3138_v29 }
 0x1d6   :  { %v4006_v35 = vpop.f32.mrf.mxu0 }
 0x1d7   :  { %v3236_v48 = vadd.f32 %v4032_v25, %v3187_v26  ;;  %v4007_v57 = vadd.f32 %v4006_v35, %v4005_v58 }
 0x1d8   :  { %v4008_v28 = vpop.f32.mrf.mxu0 }
 0x1d9   :  { %v3250_v36 = vadd.f32 %v3273_v23, %v3236_v48  ;;  %v3190_v42 = vadd.f32 %v4007_v57, %v3141_v39 }
 0x1da   :  { %v4009_v21 = vpop.f32.mrf.mxu0 }
 0x1db   :  { %3265 = vst [vmem:[%s5500_s3] sm:$0xff] %v3250_v36  ;;  %v3239_v47 = vadd.f32 %v4035_v46, %v3190_v42  ;;  %v4010_v49 = vadd.f32 %v4009_v21, %v4008_v28 }
 0x1dc   :  { %v4011_v51 = vpop.f32.mrf.mxu0 }
 0x1dd   :  { %v3251_v50 = vadd.f32 %v3273_v23, %v3239_v47  ;;  %v3195_v53 = vadd.f32 %v4010_v49, %v3146_v38 }
 0x1de   :  { %v4012_v63 = vpop.f32.mrf.mxu0 }
 0x1df   :  { %3266 = vst [vmem:[%s5500_s3 + $0x8] sm:$0xff] %v3251_v50  ;;  %v3244_v11 = vadd.f32 %v4038_v55, %v3195_v53  ;;  %v4013_v61 = vadd.f32 %v4012_v63, %v4011_v51 }
 0x1e1   :  { %v3252_v40 = vadd.f32 %v3273_v23, %v3244_v11  ;;  %v3198_v14 = vadd.f32 %v4013_v61, %v3149_v60 }
 0x1e3   :  { %3267 = vst [vmem:[%s5500_s3 + $0x10] sm:$0xff] %v3252_v40  ;;  %v3247_v52 = vadd.f32 %v4041_v30, %v3198_v14 }
 0x1e5   :  { %v3253_v56 = vadd.f32 %v3273_v23, %v3247_v52 }
 0x1e7   :  { %3268 = vst [vmem:[%s5500_s3 + $0x18] sm:$0xff] %v3253_v56 }

</bundles_post_ra>
